<compile_context>
chip_gen: v6e
topology: v6e:2x2x1
jax: 0.10.0
libtpu: 0.0.40
codegen_flags: <defaults>
</compile_context>

<pallas_src>
import functools
import math

import numpy as np

import jax
import jax.numpy as jnp
from jax.experimental import pallas as pl
from jax.experimental.pallas import tpu as pltpu


MATMUL_DTYPE = jnp.bfloat16      # MXU operand dtype; accumulation stays f32
VMEM_LIMIT = 32 * 1024 * 1024    # safe on v5e/v6e (128 MiB phys) and v7x (64 MiB)
NEG_BIG = -1e30                  # additive mask for invalid max-pool taps


def _gelu_tanh(h):
    c = 0.7978845608028654  # sqrt(2/pi)
    return 0.5 * h * (1.0 + jnp.tanh(c * (h + 0.044715 * h * h * h)))


# =========================================================================
# Tokenizer: Conv2d + ReLU + MaxPool2d + pos-emb, fused in one kernel.
# =========================================================================

def _tokenizer_kernel(p_ref, nm_ref, w_ref, b_ref, pos_ref, o_ref, *, taps):
    w = w_ref[...]                                        # (K, E) bf16
    m = None
    for t in range(taps):                                 # static unroll (9 taps)
        h = jnp.dot(p_ref[0, t], w, preferred_element_type=jnp.float32)
        h = jnp.maximum(h + b_ref[...], 0.0)              # conv bias + ReLU
        h = h + nm_ref[t]                                 # -1e30 on invalid taps
        m = h if m is None else jnp.maximum(m, h)         # max-pool over taps
    o_ref[0] = m + pos_ref[0]                             # + positional embedding


def conv_pool_tokenize(tap_patches, negmask, conv_w, conv_b, pos_emb):
    """tap_patches: (B, T, S, K) bf16, negmask: (T, S, 1) f32 -> tokens (B, S, E)."""
    B, T, S, K = tap_patches.shape
    E = conv_w.shape[1]
    return pl.pallas_call(
        functools.partial(_tokenizer_kernel, taps=T),
        out_shape=jax.ShapeDtypeStruct((B, S, E), jnp.float32),
        grid=(B,),
        in_specs=[
            pl.BlockSpec((1, T, S, K), lambda b: (b, 0, 0, 0)),
            pl.BlockSpec((T, S, 1), lambda b: (0, 0, 0)),
            pl.BlockSpec((K, E), lambda b: (0, 0)),
            pl.BlockSpec((1, E), lambda b: (0, 0)),
            pl.BlockSpec((1, S, E), lambda b: (0, 0, 0)),
        ],
        out_specs=pl.BlockSpec((1, S, E), lambda b: (b, 0, 0)),
        compiler_params=pltpu.CompilerParams(
            dimension_semantics=("parallel",), vmem_limit_bytes=VMEM_LIMIT),
    )(tap_patches, negmask, conv_w, conv_b, pos_emb)


def _build_pool_patches(x, *, conv_kernel, conv_stride, conv_pad,
                        pool_kernel, pool_stride, pool_pad):
    """Per-pool-tap im2col patches (bf16) + validity mask.

    Only the narrow K=C*k*k input patches are replicated per pool tap; the
    E-channel conv output is never materialized in HBM.
    """
    B, C, H, W = x.shape
    Hc = (H + 2 * conv_pad - conv_kernel) // conv_stride + 1
    Wc = (W + 2 * conv_pad - conv_kernel) // conv_stride + 1
    xb = x.astype(MATMUL_DTYPE)
    xp = jnp.pad(xb, ((0, 0), (0, 0), (conv_pad, conv_pad), (conv_pad, conv_pad)))
    cols = []
    for ki in range(conv_kernel):
        for kj in range(conv_kernel):
            cols.append(xp[:, :, ki:ki + conv_stride * Hc:conv_stride,
                           kj:kj + conv_stride * Wc:conv_stride])
    patches = jnp.stack(cols, axis=2)                      # (B, C, k*k, Hc, Wc)
    patches = jnp.transpose(patches, (0, 3, 4, 1, 2))      # (B, Hc, Wc, C, k*k)
    K = C * conv_kernel * conv_kernel
    patches = patches.reshape(B, Hc * Wc, K)

    Hp = (Hc + 2 * pool_pad - pool_kernel) // pool_stride + 1
    Wp = (Wc + 2 * pool_pad - pool_kernel) // pool_stride + 1
    S = Hp * Wp
    T = pool_kernel * pool_kernel
    tap_idx = np.zeros((T, S), dtype=np.int32)
    tap_valid = np.zeros((T, S), dtype=bool)
    for di in range(pool_kernel):
        for dj in range(pool_kernel):
            t = di * pool_kernel + dj
            for oi in range(Hp):
                for oj in range(Wp):
                    s = oi * Wp + oj
                    ci = oi * pool_stride - pool_pad + di
                    cj = oj * pool_stride - pool_pad + dj
                    ok = (0 <= ci < Hc) and (0 <= cj < Wc)
                    tap_valid[t, s] = ok
                    tap_idx[t, s] = (min(max(ci, 0), Hc - 1) * Wc
                                     + min(max(cj, 0), Wc - 1))
    tap_patches = patches[:, jnp.asarray(tap_idx), :]      # (B, T, S, K) gather
    negmask = jnp.asarray(np.where(tap_valid, 0.0, NEG_BIG),
                          dtype=jnp.float32)[:, :, None]   # (T, S, 1)
    return tap_patches, negmask, Hp, Wp


# =========================================================================
# Fused transformer encoder stack: grid=(B, L), activations resident in VMEM.
# =========================================================================

def _encoder_stack_kernel(x_ref, wq_ref, wk_ref, wv_ref, bq_ref, bk_ref, bv_ref,
                          wo_ref, bo_ref, ln1g_ref, ln1b_ref,
                          w1_ref, b1_ref, w2_ref, b2_ref, ln2g_ref, ln2b_ref,
                          o_ref, *, heads, scale, eps):
    layer = pl.program_id(1)

    @pl.when(layer == 0)
    def _():
        o_ref[...] = x_ref[...]          # seed the resident activation block

    x_in = o_ref[0]                      # (S, E) f32, previous layer's output
    x_bf = x_in.astype(MATMUL_DTYPE)

    # ---- MSA: per-head QKV, softmax(QK^T/sqrt(Dh))V, per-head out-proj accum
    proj = None
    for h in range(heads):               # static unroll over heads
        q = jnp.dot(x_bf, wq_ref[0, h], preferred_element_type=jnp.float32) + bq_ref[0, h]
        k = jnp.dot(x_bf, wk_ref[0, h], preferred_element_type=jnp.float32) + bk_ref[0, h]
        v = jnp.dot(x_bf, wv_ref[0, h], preferred_element_type=jnp.float32) + bv_ref[0, h]
        s = jax.lax.dot_general(q.astype(MATMUL_DTYPE), k.astype(MATMUL_DTYPE),
                                (((1,), (1,)), ((), ())),
                                preferred_element_type=jnp.float32) * scale   # (S, S)
        m = jnp.max(s, axis=-1, keepdims=True)
        e = jnp.exp(s - m)
        p = e / jnp.sum(e, axis=-1, keepdims=True)
        ctx = jnp.dot(p.astype(MATMUL_DTYPE), v.astype(MATMUL_DTYPE),
                      preferred_element_type=jnp.float32)                     # (S, Dh)
        contrib = jnp.dot(ctx.astype(MATMUL_DTYPE), wo_ref[0, h],
                          preferred_element_type=jnp.float32)                 # (S, E)
        proj = contrib if proj is None else proj + contrib

    # ---- residual + LayerNorm1
    z = proj + bo_ref[0] + x_in
    mu = jnp.mean(z, axis=-1, keepdims=True)
    var = jnp.mean((z - mu) * (z - mu), axis=-1, keepdims=True)
    x1 = (z - mu) * jax.lax.rsqrt(var + eps) * ln1g_ref[0] + ln1b_ref[0]

    # ---- MLP: linear -> GELU -> linear, residual + LayerNorm2
    h1 = jnp.dot(x1.astype(MATMUL_DTYPE), w1_ref[0],
                 preferred_element_type=jnp.float32) + b1_ref[0]
    h1 = _gelu_tanh(h1)
    z2 = jnp.dot(h1.astype(MATMUL_DTYPE), w2_ref[0],
                 preferred_element_type=jnp.float32) + b2_ref[0] + x1
    mu2 = jnp.mean(z2, axis=-1, keepdims=True)
    var2 = jnp.mean((z2 - mu2) * (z2 - mu2), axis=-1, keepdims=True)
    o_ref[0] = (z2 - mu2) * jax.lax.rsqrt(var2 + eps) * ln2g_ref[0] + ln2b_ref[0]


def encoder_stack(x, p, *, heads, eps=1e-5):
    B, S, E = x.shape
    L = p["wq"].shape[0]
    F = p["w1"].shape[-1]
    Dh = E // heads
    scale = 1.0 / math.sqrt(Dh)

    def wspec(*shape):
        # per-layer weight block: leading axis indexed by the layer grid dim
        return pl.BlockSpec((1,) + shape, lambda b, l: (l,) + (0,) * len(shape))

    in_specs = [
        pl.BlockSpec((1, S, E), lambda b, l: (b, 0, 0)),                   # x
        wspec(heads, E, Dh), wspec(heads, E, Dh), wspec(heads, E, Dh),     # wq wk wv
        wspec(heads, 1, Dh), wspec(heads, 1, Dh), wspec(heads, 1, Dh),     # bq bk bv
        wspec(heads, Dh, E),                                               # wo
        wspec(1, E), wspec(1, E), wspec(1, E),                             # bo ln1_g ln1_b
        wspec(E, F), wspec(1, F),                                          # w1 b1
        wspec(F, E), wspec(1, E),                                          # w2 b2
        wspec(1, E), wspec(1, E),                                          # ln2_g ln2_b
    ]
    return pl.pallas_call(
        functools.partial(_encoder_stack_kernel, heads=heads, scale=scale, eps=eps),
        out_shape=jax.ShapeDtypeStruct((B, S, E), jnp.float32),
        grid=(B, L),
        in_specs=in_specs,
        out_specs=pl.BlockSpec((1, S, E), lambda b, l: (b, 0, 0)),
        compiler_params=pltpu.CompilerParams(
            dimension_semantics=("parallel", "arbitrary"),
            vmem_limit_bytes=VMEM_LIMIT),
    )(x, p["wq"], p["wk"], p["wv"], p["bq"], p["bk"], p["bv"],
      p["wo"], p["bo"], p["ln1_g"], p["ln1_b"],
      p["w1"], p["b1"], p["w2"], p["b2"], p["ln2_g"], p["ln2_b"])


# =========================================================================
# SeqPool (attention pooling) + classification head, one kernel, no grid.
# =========================================================================

def _seqpool_head_kernel(x_ref, spw_ref, hw_ref, hb_ref, o_ref):
    spw = spw_ref[0]                                      # (1, E)
    for b in range(x_ref.shape[0]):                       # static unroll over batch
        xb = x_ref[b]                                     # (S, E) f32
        # dense(E->1) as VPU multiply + lane reduce (no 1-lane MXU matmul);
        # dense bias dropped: softmax over S is invariant to a constant shift.
        a = jnp.sum(xb * spw, axis=-1, keepdims=True)     # (S, 1)
        m = jnp.max(a, axis=0, keepdims=True)
        e = jnp.exp(a - m)
        p = e / jnp.sum(e, axis=0, keepdims=True)         # (S, 1)
        pooled = jax.lax.dot_general(p.astype(MATMUL_DTYPE), xb.astype(MATMUL_DTYPE),
                                     (((0,), (0,)), ((), ())),
                                     preferred_element_type=jnp.float32)   # (1, E)
        logits = jnp.dot(pooled.astype(MATMUL_DTYPE), hw_ref[...],
                         preferred_element_type=jnp.float32) + hb_ref[...]  # (1, C)
        o_ref[b] = logits


def seq_pool_head(x, sp_w, head_w, head_b):
    B, S, E = x.shape
    C = head_w.shape[1]
    out = pl.pallas_call(
        _seqpool_head_kernel,
        out_shape=jax.ShapeDtypeStruct((B, 1, C), jnp.float32),
        compiler_params=pltpu.CompilerParams(vmem_limit_bytes=VMEM_LIMIT),
    )(x, sp_w, head_w, head_b)
    return out.reshape(B, C)


# =========================================================================
# Full forward pass
# =========================================================================

def cct_forward(x, params, *, heads,
                conv_kernel=3, conv_stride=2, conv_pad=3,
                pool_kernel=3, pool_stride=2, pool_pad=1):
    # --- ConvTokenizer: conv + ReLU + maxpool + pos-emb (dropout == identity)
    tap_patches, negmask, Hp, Wp = _build_pool_patches(
        x, conv_kernel=conv_kernel, conv_stride=conv_stride, conv_pad=conv_pad,
        pool_kernel=pool_kernel, pool_stride=pool_stride, pool_pad=pool_pad)
    tokens = conv_pool_tokenize(tap_patches, negmask,
                                params["conv_w"], params["conv_b"],
                                params["pos_emb"])                    # (B, S, E)

    # --- transformer encoder stack (single fused pallas_call)
    h = encoder_stack(tokens, params, heads=heads)

    # --- SeqPool + classification head
    return seq_pool_head(h, params["sp_w"], params["head_w"], params["head_b"])


# =========================================================================
# Parameter init (stacked per-layer weights, kernel-native layouts)
# =========================================================================

def init_params(key, *, channels, emb_dim, heads, feat_dim, layers, num_class,
                seq_len, conv_kernel):
    Dh = emb_dim // heads
    K = channels * conv_kernel * conv_kernel
    wdt = MATMUL_DTYPE    # matmul weights stored bf16 (halves weight DMA)

    def nrm(k, shape, std=0.02, dtype=jnp.float32):
        return (std * jax.random.normal(k, shape, dtype=jnp.float32)).astype(dtype)

    ks = jax.random.split(key, 18)
    params = {
        "conv_w": nrm(ks[0], (K, emb_dim), dtype=wdt),          # == torch w.reshape(E,K).T
        "conv_b": nrm(ks[1], (1, emb_dim)),
        "pos_emb": nrm(ks[2], (1, seq_len, emb_dim)),
        "sp_w": nrm(ks[3], (1, 1, emb_dim)),                    # SeqPool dense (bias dropped)
        "head_w": nrm(ks[4], (emb_dim, num_class), dtype=wdt),
        "head_b": nrm(ks[5], (1, num_class)),
        # per-layer stacks (leading dim = layers), per-head layouts
        "wq": nrm(ks[6], (layers, heads, emb_dim, Dh), dtype=wdt),
        "wk": nrm(ks[7], (layers, heads, emb_dim, Dh), dtype=wdt),
        "wv": nrm(ks[8], (layers, heads, emb_dim, Dh), dtype=wdt),
        "bq": nrm(ks[9], (layers, heads, 1, Dh)),
        "bk": nrm(ks[10], (layers, heads, 1, Dh)),
        "bv": nrm(ks[11], (layers, heads, 1, Dh)),
        "wo": nrm(ks[12], (layers, heads, Dh, emb_dim), dtype=wdt),
        "bo": nrm(ks[13], (layers, 1, emb_dim)),
        "ln1_g": jnp.ones((layers, 1, emb_dim), jnp.float32),
        "ln1_b": jnp.zeros((layers, 1, emb_dim), jnp.float32),
        "w1": nrm(ks[14], (layers, emb_dim, feat_dim), dtype=wdt),
        "b1": nrm(ks[15], (layers, 1, feat_dim), std=1e-6),
        "w2": nrm(ks[16], (layers, feat_dim, emb_dim), dtype=wdt),
        "b2": nrm(ks[17], (layers, 1, emb_dim), std=1e-6),
        "ln2_g": jnp.ones((layers, 1, emb_dim), jnp.float32),
        "ln2_b": jnp.zeros((layers, 1, emb_dim), jnp.float32),
    }
    return params


# =========================================================================
# main
# =========================================================================

if __name__ == "__main__":
    # Small shapes consistent with the module (defaults scaled down).
    B, C, IMG = 2, 3, 16
    EMB, HEADS, FEAT, LAYERS, NCLS = 64, 4, 128, 2, 10

    # Same arithmetic as the PyTorch __init__ tokenizer probe.
    hc = (IMG + 2 * 3 - 3) // 2 + 1          # conv: k=3, s=2, p=3  -> 10
    hp = (hc + 2 * 1 - 3) // 2 + 1           # pool: k=3, s=2, p=1  -> 5
    seq_len = hp * hp                        # 25

    key = jax.random.PRNGKey(0)
    kx, kp = jax.random.split(key)
    x = jax.random.normal(kx, (B, C, IMG, IMG), dtype=jnp.float32)   # NCHW input
    params = init_params(kp, channels=C, emb_dim=EMB, heads=HEADS, feat_dim=FEAT,
                         layers=LAYERS, num_class=NCLS,
                         seq_len=seq_len, conv_kernel=3)

    fwd = jax.jit(functools.partial(cct_forward, heads=HEADS))
    logits = fwd(x, params)
    jax.block_until_ready(logits)
    assert logits.shape == (B, NCLS)
    assert bool(jnp.all(jnp.isfinite(logits)))
    print("KERNEL_OK")
</pallas_src>

<mosaic_0001>
module attributes {stable_mosaic.version = 11 : i64} {
  func.func @_tokenizer_kernel(%arg0: i32, %arg1: memref<1x9x25x27xbf16, #tpu.memory_space<vmem>>, %arg2: memref<9x25x1xf32, #tpu.memory_space<vmem>>, %arg3: memref<27x64xbf16, #tpu.memory_space<vmem>>, %arg4: memref<1x64xf32, #tpu.memory_space<vmem>>, %arg5: memref<1x25x64xf32, #tpu.memory_space<vmem>>, %arg6: memref<1x25x64xf32, #tpu.memory_space<vmem>>) attributes {dimension_semantics = [#tpu.dimension_semantics<parallel>], iteration_bounds = array<i64: 2>, scalar_prefetch = 0 : i64, scratch_operands = 0 : i64, tpu.core_type = #tpu.core_type<tc>, window_params = [{transform_indices = @transform_0, window_bounds = array<i64: 1, 9, 25, 27>}, {pipeline_mode = #tpu.pipeline_mode<synchronous>, transform_indices = @transform_1, window_bounds = array<i64: 9, 25, 1>}, {pipeline_mode = #tpu.pipeline_mode<synchronous>, transform_indices = @transform_2, window_bounds = array<i64: 27, 64>}, {pipeline_mode = #tpu.pipeline_mode<synchronous>, transform_indices = @transform_3, window_bounds = array<i64: 1, 64>}, {pipeline_mode = #tpu.pipeline_mode<synchronous>, transform_indices = @transform_4, window_bounds = array<i64: 1, 25, 64>}, {transform_indices = @transform_5, window_bounds = array<i64: 1, 25, 64>}]} {
    %c0 = arith.constant 0 : index
    %c0_0 = arith.constant 0 : index
    %0 = vector.load %arg3[%c0, %c0_0] : memref<27x64xbf16, #tpu.memory_space<vmem>>, vector<27x64xbf16>
    %c0_1 = arith.constant 0 : index
    %c0_2 = arith.constant 0 : index
    %c0_3 = arith.constant 0 : index
    %c0_4 = arith.constant 0 : index
    %1 = vector.load %arg1[%c0_1, %c0_2, %c0_3, %c0_4] : memref<1x9x25x27xbf16, #tpu.memory_space<vmem>>, vector<1x1x25x27xbf16>
    %2 = vector.shape_cast %1 : vector<1x1x25x27xbf16> to vector<25x27xbf16>
    %cst = arith.constant dense<0.000000e+00> : vector<25x64xf32>
    %3 = tpu.matmul %2, %0, %cst {dimension_numbers = #tpu.dot_dimension_numbers<[1], [0], [0], [1], [0, 0, 1, 1], [], []>} : vector<25x27xbf16>, vector<27x64xbf16>, vector<25x64xf32> -> vector<25x64xf32>
    %c0_5 = arith.constant 0 : index
    %c0_6 = arith.constant 0 : index
    %4 = vector.load %arg4[%c0_5, %c0_6] : memref<1x64xf32, #tpu.memory_space<vmem>>, vector<1x64xf32>
    %5 = vector.broadcast %4 : vector<1x64xf32> to vector<25x64xf32>
    %6 = arith.addf %3, %5 : vector<25x64xf32>
    %cst_7 = arith.constant 0.000000e+00 : f32
    %7 = vector.broadcast %cst_7 : f32 to vector<25x64xf32>
    %8 = arith.maximumf %6, %7 : vector<25x64xf32>
    %c0_8 = arith.constant 0 : index
    %c0_9 = arith.constant 0 : index
    %c0_10 = arith.constant 0 : index
    %9 = vector.load %arg2[%c0_8, %c0_9, %c0_10] : memref<9x25x1xf32, #tpu.memory_space<vmem>>, vector<1x25x1xf32>
    %10 = vector.shape_cast %9 : vector<1x25x1xf32> to vector<25x1xf32>
    %11 = vector.broadcast %10 : vector<25x1xf32> to vector<25x64xf32>
    %12 = arith.addf %8, %11 : vector<25x64xf32>
    %c0_11 = arith.constant 0 : index
    %c1 = arith.constant 1 : index
    %c0_12 = arith.constant 0 : index
    %c0_13 = arith.constant 0 : index
    %13 = vector.load %arg1[%c0_11, %c1, %c0_12, %c0_13] : memref<1x9x25x27xbf16, #tpu.memory_space<vmem>>, vector<1x1x25x27xbf16>
    %14 = vector.shape_cast %13 : vector<1x1x25x27xbf16> to vector<25x27xbf16>
    %cst_14 = arith.constant dense<0.000000e+00> : vector<25x64xf32>
    %15 = tpu.matmul %14, %0, %cst_14 {dimension_numbers = #tpu.dot_dimension_numbers<[1], [0], [0], [1], [0, 0, 1, 1], [], []>} : vector<25x27xbf16>, vector<27x64xbf16>, vector<25x64xf32> -> vector<25x64xf32>
    %c0_15 = arith.constant 0 : index
    %c0_16 = arith.constant 0 : index
    %16 = vector.load %arg4[%c0_15, %c0_16] : memref<1x64xf32, #tpu.memory_space<vmem>>, vector<1x64xf32>
    %17 = vector.broadcast %16 : vector<1x64xf32> to vector<25x64xf32>
    %18 = arith.addf %15, %17 : vector<25x64xf32>
    %cst_17 = arith.constant 0.000000e+00 : f32
    %19 = vector.broadcast %cst_17 : f32 to vector<25x64xf32>
    %20 = arith.maximumf %18, %19 : vector<25x64xf32>
    %c1_18 = arith.constant 1 : index
    %c0_19 = arith.constant 0 : index
    %c0_20 = arith.constant 0 : index
    %21 = vector.load %arg2[%c1_18, %c0_19, %c0_20] : memref<9x25x1xf32, #tpu.memory_space<vmem>>, vector<1x25x1xf32>
    %22 = vector.shape_cast %21 : vector<1x25x1xf32> to vector<25x1xf32>
    %23 = vector.broadcast %22 : vector<25x1xf32> to vector<25x64xf32>
    %24 = arith.addf %20, %23 : vector<25x64xf32>
    %25 = arith.maximumf %12, %24 : vector<25x64xf32>
    %c0_21 = arith.constant 0 : index
    %c2 = arith.constant 2 : index
    %c0_22 = arith.constant 0 : index
    %c0_23 = arith.constant 0 : index
    %26 = vector.load %arg1[%c0_21, %c2, %c0_22, %c0_23] : memref<1x9x25x27xbf16, #tpu.memory_space<vmem>>, vector<1x1x25x27xbf16>
    %27 = vector.shape_cast %26 : vector<1x1x25x27xbf16> to vector<25x27xbf16>
    %cst_24 = arith.constant dense<0.000000e+00> : vector<25x64xf32>
    %28 = tpu.matmul %27, %0, %cst_24 {dimension_numbers = #tpu.dot_dimension_numbers<[1], [0], [0], [1], [0, 0, 1, 1], [], []>} : vector<25x27xbf16>, vector<27x64xbf16>, vector<25x64xf32> -> vector<25x64xf32>
    %c0_25 = arith.constant 0 : index
    %c0_26 = arith.constant 0 : index
    %29 = vector.load %arg4[%c0_25, %c0_26] : memref<1x64xf32, #tpu.memory_space<vmem>>, vector<1x64xf32>
    %30 = vector.broadcast %29 : vector<1x64xf32> to vector<25x64xf32>
    %31 = arith.addf %28, %30 : vector<25x64xf32>
    %cst_27 = arith.constant 0.000000e+00 : f32
    %32 = vector.broadcast %cst_27 : f32 to vector<25x64xf32>
    %33 = arith.maximumf %31, %32 : vector<25x64xf32>
    %c2_28 = arith.constant 2 : index
    %c0_29 = arith.constant 0 : index
    %c0_30 = arith.constant 0 : index
    %34 = vector.load %arg2[%c2_28, %c0_29, %c0_30] : memref<9x25x1xf32, #tpu.memory_space<vmem>>, vector<1x25x1xf32>
    %35 = vector.shape_cast %34 : vector<1x25x1xf32> to vector<25x1xf32>
    %36 = vector.broadcast %35 : vector<25x1xf32> to vector<25x64xf32>
    %37 = arith.addf %33, %36 : vector<25x64xf32>
    %38 = arith.maximumf %25, %37 : vector<25x64xf32>
    %c0_31 = arith.constant 0 : index
    %c3 = arith.constant 3 : index
    %c0_32 = arith.constant 0 : index
    %c0_33 = arith.constant 0 : index
    %39 = vector.load %arg1[%c0_31, %c3, %c0_32, %c0_33] : memref<1x9x25x27xbf16, #tpu.memory_space<vmem>>, vector<1x1x25x27xbf16>
    %40 = vector.shape_cast %39 : vector<1x1x25x27xbf16> to vector<25x27xbf16>
    %cst_34 = arith.constant dense<0.000000e+00> : vector<25x64xf32>
    %41 = tpu.matmul %40, %0, %cst_34 {dimension_numbers = #tpu.dot_dimension_numbers<[1], [0], [0], [1], [0, 0, 1, 1], [], []>} : vector<25x27xbf16>, vector<27x64xbf16>, vector<25x64xf32> -> vector<25x64xf32>
    %c0_35 = arith.constant 0 : index
    %c0_36 = arith.constant 0 : index
    %42 = vector.load %arg4[%c0_35, %c0_36] : memref<1x64xf32, #tpu.memory_space<vmem>>, vector<1x64xf32>
    %43 = vector.broadcast %42 : vector<1x64xf32> to vector<25x64xf32>
    %44 = arith.addf %41, %43 : vector<25x64xf32>
    %cst_37 = arith.constant 0.000000e+00 : f32
    %45 = vector.broadcast %cst_37 : f32 to vector<25x64xf32>
    %46 = arith.maximumf %44, %45 : vector<25x64xf32>
    %c3_38 = arith.constant 3 : index
    %c0_39 = arith.constant 0 : index
    %c0_40 = arith.constant 0 : index
    %47 = vector.load %arg2[%c3_38, %c0_39, %c0_40] : memref<9x25x1xf32, #tpu.memory_space<vmem>>, vector<1x25x1xf32>
    %48 = vector.shape_cast %47 : vector<1x25x1xf32> to vector<25x1xf32>
    %49 = vector.broadcast %48 : vector<25x1xf32> to vector<25x64xf32>
    %50 = arith.addf %46, %49 : vector<25x64xf32>
    %51 = arith.maximumf %38, %50 : vector<25x64xf32>
    %c0_41 = arith.constant 0 : index
    %c4 = arith.constant 4 : index
    %c0_42 = arith.constant 0 : index
    %c0_43 = arith.constant 0 : index
    %52 = vector.load %arg1[%c0_41, %c4, %c0_42, %c0_43] : memref<1x9x25x27xbf16, #tpu.memory_space<vmem>>, vector<1x1x25x27xbf16>
    %53 = vector.shape_cast %52 : vector<1x1x25x27xbf16> to vector<25x27xbf16>
    %cst_44 = arith.constant dense<0.000000e+00> : vector<25x64xf32>
    %54 = tpu.matmul %53, %0, %cst_44 {dimension_numbers = #tpu.dot_dimension_numbers<[1], [0], [0], [1], [0, 0, 1, 1], [], []>} : vector<25x27xbf16>, vector<27x64xbf16>, vector<25x64xf32> -> vector<25x64xf32>
    %c0_45 = arith.constant 0 : index
    %c0_46 = arith.constant 0 : index
    %55 = vector.load %arg4[%c0_45, %c0_46] : memref<1x64xf32, #tpu.memory_space<vmem>>, vector<1x64xf32>
    %56 = vector.broadcast %55 : vector<1x64xf32> to vector<25x64xf32>
    %57 = arith.addf %54, %56 : vector<25x64xf32>
    %cst_47 = arith.constant 0.000000e+00 : f32
    %58 = vector.broadcast %cst_47 : f32 to vector<25x64xf32>
    %59 = arith.maximumf %57, %58 : vector<25x64xf32>
    %c4_48 = arith.constant 4 : index
    %c0_49 = arith.constant 0 : index
    %c0_50 = arith.constant 0 : index
    %60 = vector.load %arg2[%c4_48, %c0_49, %c0_50] : memref<9x25x1xf32, #tpu.memory_space<vmem>>, vector<1x25x1xf32>
    %61 = vector.shape_cast %60 : vector<1x25x1xf32> to vector<25x1xf32>
    %62 = vector.broadcast %61 : vector<25x1xf32> to vector<25x64xf32>
    %63 = arith.addf %59, %62 : vector<25x64xf32>
    %64 = arith.maximumf %51, %63 : vector<25x64xf32>
    %c0_51 = arith.constant 0 : index
    %c5 = arith.constant 5 : index
    %c0_52 = arith.constant 0 : index
    %c0_53 = arith.constant 0 : index
    %65 = vector.load %arg1[%c0_51, %c5, %c0_52, %c0_53] : memref<1x9x25x27xbf16, #tpu.memory_space<vmem>>, vector<1x1x25x27xbf16>
    %66 = vector.shape_cast %65 : vector<1x1x25x27xbf16> to vector<25x27xbf16>
    %cst_54 = arith.constant dense<0.000000e+00> : vector<25x64xf32>
    %67 = tpu.matmul %66, %0, %cst_54 {dimension_numbers = #tpu.dot_dimension_numbers<[1], [0], [0], [1], [0, 0, 1, 1], [], []>} : vector<25x27xbf16>, vector<27x64xbf16>, vector<25x64xf32> -> vector<25x64xf32>
    %c0_55 = arith.constant 0 : index
    %c0_56 = arith.constant 0 : index
    %68 = vector.load %arg4[%c0_55, %c0_56] : memref<1x64xf32, #tpu.memory_space<vmem>>, vector<1x64xf32>
    %69 = vector.broadcast %68 : vector<1x64xf32> to vector<25x64xf32>
    %70 = arith.addf %67, %69 : vector<25x64xf32>
    %cst_57 = arith.constant 0.000000e+00 : f32
    %71 = vector.broadcast %cst_57 : f32 to vector<25x64xf32>
    %72 = arith.maximumf %70, %71 : vector<25x64xf32>
    %c5_58 = arith.constant 5 : index
    %c0_59 = arith.constant 0 : index
    %c0_60 = arith.constant 0 : index
    %73 = vector.load %arg2[%c5_58, %c0_59, %c0_60] : memref<9x25x1xf32, #tpu.memory_space<vmem>>, vector<1x25x1xf32>
    %74 = vector.shape_cast %73 : vector<1x25x1xf32> to vector<25x1xf32>
    %75 = vector.broadcast %74 : vector<25x1xf32> to vector<25x64xf32>
    %76 = arith.addf %72, %75 : vector<25x64xf32>
    %77 = arith.maximumf %64, %76 : vector<25x64xf32>
    %c0_61 = arith.constant 0 : index
    %c6 = arith.constant 6 : index
    %c0_62 = arith.constant 0 : index
    %c0_63 = arith.constant 0 : index
    %78 = vector.load %arg1[%c0_61, %c6, %c0_62, %c0_63] : memref<1x9x25x27xbf16, #tpu.memory_space<vmem>>, vector<1x1x25x27xbf16>
    %79 = vector.shape_cast %78 : vector<1x1x25x27xbf16> to vector<25x27xbf16>
    %cst_64 = arith.constant dense<0.000000e+00> : vector<25x64xf32>
    %80 = tpu.matmul %79, %0, %cst_64 {dimension_numbers = #tpu.dot_dimension_numbers<[1], [0], [0], [1], [0, 0, 1, 1], [], []>} : vector<25x27xbf16>, vector<27x64xbf16>, vector<25x64xf32> -> vector<25x64xf32>
    %c0_65 = arith.constant 0 : index
    %c0_66 = arith.constant 0 : index
    %81 = vector.load %arg4[%c0_65, %c0_66] : memref<1x64xf32, #tpu.memory_space<vmem>>, vector<1x64xf32>
    %82 = vector.broadcast %81 : vector<1x64xf32> to vector<25x64xf32>
    %83 = arith.addf %80, %82 : vector<25x64xf32>
    %cst_67 = arith.constant 0.000000e+00 : f32
    %84 = vector.broadcast %cst_67 : f32 to vector<25x64xf32>
    %85 = arith.maximumf %83, %84 : vector<25x64xf32>
    %c6_68 = arith.constant 6 : index
    %c0_69 = arith.constant 0 : index
    %c0_70 = arith.constant 0 : index
    %86 = vector.load %arg2[%c6_68, %c0_69, %c0_70] : memref<9x25x1xf32, #tpu.memory_space<vmem>>, vector<1x25x1xf32>
    %87 = vector.shape_cast %86 : vector<1x25x1xf32> to vector<25x1xf32>
    %88 = vector.broadcast %87 : vector<25x1xf32> to vector<25x64xf32>
    %89 = arith.addf %85, %88 : vector<25x64xf32>
    %90 = arith.maximumf %77, %89 : vector<25x64xf32>
    %c0_71 = arith.constant 0 : index
    %c7 = arith.constant 7 : index
    %c0_72 = arith.constant 0 : index
    %c0_73 = arith.constant 0 : index
    %91 = vector.load %arg1[%c0_71, %c7, %c0_72, %c0_73] : memref<1x9x25x27xbf16, #tpu.memory_space<vmem>>, vector<1x1x25x27xbf16>
    %92 = vector.shape_cast %91 : vector<1x1x25x27xbf16> to vector<25x27xbf16>
    %cst_74 = arith.constant dense<0.000000e+00> : vector<25x64xf32>
    %93 = tpu.matmul %92, %0, %cst_74 {dimension_numbers = #tpu.dot_dimension_numbers<[1], [0], [0], [1], [0, 0, 1, 1], [], []>} : vector<25x27xbf16>, vector<27x64xbf16>, vector<25x64xf32> -> vector<25x64xf32>
    %c0_75 = arith.constant 0 : index
    %c0_76 = arith.constant 0 : index
    %94 = vector.load %arg4[%c0_75, %c0_76] : memref<1x64xf32, #tpu.memory_space<vmem>>, vector<1x64xf32>
    %95 = vector.broadcast %94 : vector<1x64xf32> to vector<25x64xf32>
    %96 = arith.addf %93, %95 : vector<25x64xf32>
    %cst_77 = arith.constant 0.000000e+00 : f32
    %97 = vector.broadcast %cst_77 : f32 to vector<25x64xf32>
    %98 = arith.maximumf %96, %97 : vector<25x64xf32>
    %c7_78 = arith.constant 7 : index
    %c0_79 = arith.constant 0 : index
    %c0_80 = arith.constant 0 : index
    %99 = vector.load %arg2[%c7_78, %c0_79, %c0_80] : memref<9x25x1xf32, #tpu.memory_space<vmem>>, vector<1x25x1xf32>
    %100 = vector.shape_cast %99 : vector<1x25x1xf32> to vector<25x1xf32>
    %101 = vector.broadcast %100 : vector<25x1xf32> to vector<25x64xf32>
    %102 = arith.addf %98, %101 : vector<25x64xf32>
    %103 = arith.maximumf %90, %102 : vector<25x64xf32>
    %c0_81 = arith.constant 0 : index
    %c8 = arith.constant 8 : index
    %c0_82 = arith.constant 0 : index
    %c0_83 = arith.constant 0 : index
    %104 = vector.load %arg1[%c0_81, %c8, %c0_82, %c0_83] : memref<1x9x25x27xbf16, #tpu.memory_space<vmem>>, vector<1x1x25x27xbf16>
    %105 = vector.shape_cast %104 : vector<1x1x25x27xbf16> to vector<25x27xbf16>
    %cst_84 = arith.constant dense<0.000000e+00> : vector<25x64xf32>
    %106 = tpu.matmul %105, %0, %cst_84 {dimension_numbers = #tpu.dot_dimension_numbers<[1], [0], [0], [1], [0, 0, 1, 1], [], []>} : vector<25x27xbf16>, vector<27x64xbf16>, vector<25x64xf32> -> vector<25x64xf32>
    %c0_85 = arith.constant 0 : index
    %c0_86 = arith.constant 0 : index
    %107 = vector.load %arg4[%c0_85, %c0_86] : memref<1x64xf32, #tpu.memory_space<vmem>>, vector<1x64xf32>
    %108 = vector.broadcast %107 : vector<1x64xf32> to vector<25x64xf32>
    %109 = arith.addf %106, %108 : vector<25x64xf32>
    %cst_87 = arith.constant 0.000000e+00 : f32
    %110 = vector.broadcast %cst_87 : f32 to vector<25x64xf32>
    %111 = arith.maximumf %109, %110 : vector<25x64xf32>
    %c8_88 = arith.constant 8 : index
    %c0_89 = arith.constant 0 : index
    %c0_90 = arith.constant 0 : index
    %112 = vector.load %arg2[%c8_88, %c0_89, %c0_90] : memref<9x25x1xf32, #tpu.memory_space<vmem>>, vector<1x25x1xf32>
    %113 = vector.shape_cast %112 : vector<1x25x1xf32> to vector<25x1xf32>
    %114 = vector.broadcast %113 : vector<25x1xf32> to vector<25x64xf32>
    %115 = arith.addf %111, %114 : vector<25x64xf32>
    %116 = arith.maximumf %103, %115 : vector<25x64xf32>
    %c0_91 = arith.constant 0 : index
    %c0_92 = arith.constant 0 : index
    %c0_93 = arith.constant 0 : index
    %117 = vector.load %arg5[%c0_91, %c0_92, %c0_93] : memref<1x25x64xf32, #tpu.memory_space<vmem>>, vector<1x25x64xf32>
    %118 = vector.shape_cast %117 : vector<1x25x64xf32> to vector<25x64xf32>
    %119 = arith.addf %116, %118 : vector<25x64xf32>
    %c0_94 = arith.constant 0 : index
    %c0_95 = arith.constant 0 : index
    %c0_96 = arith.constant 0 : index
    %120 = vector.load %arg6[%c0_94, %c0_95, %c0_96] : memref<1x25x64xf32, #tpu.memory_space<vmem>>, vector<1x25x64xf32>
    %121 = vector.shape_cast %120 : vector<1x25x64xf32> to vector<25x64xf32>
    %122 = vector.shape_cast %119 : vector<25x64xf32> to vector<1x25x64xf32>
    tpu.vector_store %arg6[%c0_94, %c0_95, %c0_96], %122 {strides = array<i32>} : memref<1x25x64xf32, #tpu.memory_space<vmem>>, vector<1x25x64xf32>,
    return
  }
  func.func @transform_0(%arg0: i32) -> (i32, i32, i32, i32) {
    %c0_i32 = arith.constant 0 : i32
    %c0_i32_0 = arith.constant 0 : i32
    %c0_i32_1 = arith.constant 0 : i32
    %c0_i32_2 = arith.constant 0 : i32
    return %arg0, %c0_i32, %c0_i32_0, %c0_i32_1 : i32, i32, i32, i32
  }
  func.func @transform_1(%arg0: i32) -> (i32, i32, i32) {
    %c0_i32 = arith.constant 0 : i32
    %c0_i32_0 = arith.constant 0 : i32
    %c0_i32_1 = arith.constant 0 : i32
    %c0_i32_2 = arith.constant 0 : i32
    return %c0_i32, %c0_i32_0, %c0_i32_1 : i32, i32, i32
  }
  func.func @transform_2(%arg0: i32) -> (i32, i32) {
    %c0_i32 = arith.constant 0 : i32
    %c0_i32_0 = arith.constant 0 : i32
    %c0_i32_1 = arith.constant 0 : i32
    return %c0_i32, %c0_i32_0 : i32, i32
  }
  func.func @transform_3(%arg0: i32) -> (i32, i32) {
    %c0_i32 = arith.constant 0 : i32
    %c0_i32_0 = arith.constant 0 : i32
    %c0_i32_1 = arith.constant 0 : i32
    return %c0_i32, %c0_i32_0 : i32, i32
  }
  func.func @transform_4(%arg0: i32) -> (i32, i32, i32) {
    %c0_i32 = arith.constant 0 : i32
    %c0_i32_0 = arith.constant 0 : i32
    %c0_i32_1 = arith.constant 0 : i32
    %c0_i32_2 = arith.constant 0 : i32
    return %c0_i32, %c0_i32_0, %c0_i32_1 : i32, i32, i32
  }
  func.func @transform_5(%arg0: i32) -> (i32, i32, i32) {
    %c0_i32 = arith.constant 0 : i32
    %c0_i32_0 = arith.constant 0 : i32
    %c0_i32_1 = arith.constant 0 : i32
    return %arg0, %c0_i32, %c0_i32_0 : i32, i32, i32
  }
}

module attributes {stable_mosaic.version = 11 : i64} {
  func.func @_encoder_stack_kernel(%arg0: i32, %arg1: i32, %arg2: memref<1x25x64xf32, #tpu.memory_space<vmem>>, %arg3: memref<1x4x64x16xbf16, #tpu.memory_space<vmem>>, %arg4: memref<1x4x64x16xbf16, #tpu.memory_space<vmem>>, %arg5: memref<1x4x64x16xbf16, #tpu.memory_space<vmem>>, %arg6: memref<1x4x1x16xf32, #tpu.memory_space<vmem>>, %arg7: memref<1x4x1x16xf32, #tpu.memory_space<vmem>>, %arg8: memref<1x4x1x16xf32, #tpu.memory_space<vmem>>, %arg9: memref<1x4x16x64xbf16, #tpu.memory_space<vmem>>, %arg10: memref<1x1x64xf32, #tpu.memory_space<vmem>>, %arg11: memref<1x1x64xf32, #tpu.memory_space<vmem>>, %arg12: memref<1x1x64xf32, #tpu.memory_space<vmem>>, %arg13: memref<1x64x128xbf16, #tpu.memory_space<vmem>>, %arg14: memref<1x1x128xf32, #tpu.memory_space<vmem>>, %arg15: memref<1x128x64xbf16, #tpu.memory_space<vmem>>, %arg16: memref<1x1x64xf32, #tpu.memory_space<vmem>>, %arg17: memref<1x1x64xf32, #tpu.memory_space<vmem>>, %arg18: memref<1x1x64xf32, #tpu.memory_space<vmem>>, %arg19: memref<1x25x64xf32, #tpu.memory_space<vmem>>) attributes {dimension_semantics = [#tpu.dimension_semantics<parallel>, #tpu.dimension_semantics<arbitrary>], iteration_bounds = array<i64: 2, 2>, scalar_prefetch = 0 : i64, scratch_operands = 0 : i64, tpu.core_type = #tpu.core_type<tc>, window_params = [{transform_indices = @transform_0, window_bounds = array<i64: 1, 25, 64>}, {transform_indices = @transform_1, window_bounds = array<i64: 1, 4, 64, 16>}, {transform_indices = @transform_2, window_bounds = array<i64: 1, 4, 64, 16>}, {transform_indices = @transform_3, window_bounds = array<i64: 1, 4, 64, 16>}, {transform_indices = @transform_4, window_bounds = array<i64: 1, 4, 1, 16>}, {transform_indices = @transform_5, window_bounds = array<i64: 1, 4, 1, 16>}, {transform_indices = @transform_6, window_bounds = array<i64: 1, 4, 1, 16>}, {transform_indices = @transform_7, window_bounds = array<i64: 1, 4, 16, 64>}, {transform_indices = @transform_8, window_bounds = array<i64: 1, 1, 64>}, {transform_indices = @transform_9, window_bounds = array<i64: 1, 1, 64>}, {transform_indices = @transform_10, window_bounds = array<i64: 1, 1, 64>}, {transform_indices = @transform_11, window_bounds = array<i64: 1, 64, 128>}, {transform_indices = @transform_12, window_bounds = array<i64: 1, 1, 128>}, {transform_indices = @transform_13, window_bounds = array<i64: 1, 128, 64>}, {transform_indices = @transform_14, window_bounds = array<i64: 1, 1, 64>}, {transform_indices = @transform_15, window_bounds = array<i64: 1, 1, 64>}, {transform_indices = @transform_16, window_bounds = array<i64: 1, 1, 64>}, {transform_indices = @transform_17, window_bounds = array<i64: 1, 25, 64>}]} {
    %c0_i32 = arith.constant 0 : i32
    %0 = arith.cmpi eq, %arg1, %c0_i32 : i32
    %1 = arith.extui %0 : i1 to i32
    %c0_i32_0 = arith.constant 0 : i32
    %2 = arith.cmpi ne, %1, %c0_i32_0 : i32
    scf.if %2 {
      %c0_193 = arith.constant 0 : index
      %c0_194 = arith.constant 0 : index
      %c0_195 = arith.constant 0 : index
      %271 = vector.load %arg2[%c0_193, %c0_194, %c0_195] : memref<1x25x64xf32, #tpu.memory_space<vmem>>, vector<1x25x64xf32>
      %c0_196 = arith.constant 0 : index
      %c0_197 = arith.constant 0 : index
      %c0_198 = arith.constant 0 : index
      %272 = vector.load %arg19[%c0_196, %c0_197, %c0_198] : memref<1x25x64xf32, #tpu.memory_space<vmem>>, vector<1x25x64xf32>
      tpu.vector_store %arg19[%c0_196, %c0_197, %c0_198], %271 {strides = array<i32>} : memref<1x25x64xf32, #tpu.memory_space<vmem>>, vector<1x25x64xf32>,
    } else {
    }
    %c0 = arith.constant 0 : index
    %c0_1 = arith.constant 0 : index
    %c0_2 = arith.constant 0 : index
    %3 = vector.load %arg19[%c0, %c0_1, %c0_2] : memref<1x25x64xf32, #tpu.memory_space<vmem>>, vector<1x25x64xf32>
    %4 = vector.shape_cast %3 : vector<1x25x64xf32> to vector<25x64xf32>
    %5 = arith.truncf %4 : vector<25x64xf32> to vector<25x64xbf16>
    %c0_3 = arith.constant 0 : index
    %c0_4 = arith.constant 0 : index
    %c0_5 = arith.constant 0 : index
    %c0_6 = arith.constant 0 : index
    %6 = vector.load %arg3[%c0_3, %c0_4, %c0_5, %c0_6] : memref<1x4x64x16xbf16, #tpu.memory_space<vmem>>, vector<1x1x64x16xbf16>
    %7 = vector.shape_cast %6 : vector<1x1x64x16xbf16> to vector<64x16xbf16>
    %cst = arith.constant dense<0.000000e+00> : vector<25x16xf32>
    %8 = tpu.matmul %5, %7, %cst {dimension_numbers = #tpu.dot_dimension_numbers<[1], [0], [0], [1], [0, 0, 1, 1], [], []>} : vector<25x64xbf16>, vector<64x16xbf16>, vector<25x16xf32> -> vector<25x16xf32>
    %c0_7 = arith.constant 0 : index
    %c0_8 = arith.constant 0 : index
    %c0_9 = arith.constant 0 : index
    %c0_10 = arith.constant 0 : index
    %9 = vector.load %arg6[%c0_7, %c0_8, %c0_9, %c0_10] : memref<1x4x1x16xf32, #tpu.memory_space<vmem>>, vector<1x1x1x16xf32>
    %10 = vector.shape_cast %9 : vector<1x1x1x16xf32> to vector<1x16xf32>
    %11 = vector.broadcast %10 : vector<1x16xf32> to vector<25x16xf32>
    %12 = arith.addf %8, %11 : vector<25x16xf32>
    %c0_11 = arith.constant 0 : index
    %c0_12 = arith.constant 0 : index
    %c0_13 = arith.constant 0 : index
    %c0_14 = arith.constant 0 : index
    %13 = vector.load %arg4[%c0_11, %c0_12, %c0_13, %c0_14] : memref<1x4x64x16xbf16, #tpu.memory_space<vmem>>, vector<1x1x64x16xbf16>
    %14 = vector.shape_cast %13 : vector<1x1x64x16xbf16> to vector<64x16xbf16>
    %cst_15 = arith.constant dense<0.000000e+00> : vector<25x16xf32>
    %15 = tpu.matmul %5, %14, %cst_15 {dimension_numbers = #tpu.dot_dimension_numbers<[1], [0], [0], [1], [0, 0, 1, 1], [], []>} : vector<25x64xbf16>, vector<64x16xbf16>, vector<25x16xf32> -> vector<25x16xf32>
    %c0_16 = arith.constant 0 : index
    %c0_17 = arith.constant 0 : index
    %c0_18 = arith.constant 0 : index
    %c0_19 = arith.constant 0 : index
    %16 = vector.load %arg7[%c0_16, %c0_17, %c0_18, %c0_19] : memref<1x4x1x16xf32, #tpu.memory_space<vmem>>, vector<1x1x1x16xf32>
    %17 = vector.shape_cast %16 : vector<1x1x1x16xf32> to vector<1x16xf32>
    %18 = vector.broadcast %17 : vector<1x16xf32> to vector<25x16xf32>
    %19 = arith.addf %15, %18 : vector<25x16xf32>
    %c0_20 = arith.constant 0 : index
    %c0_21 = arith.constant 0 : index
    %c0_22 = arith.constant 0 : index
    %c0_23 = arith.constant 0 : index
    %20 = vector.load %arg5[%c0_20, %c0_21, %c0_22, %c0_23] : memref<1x4x64x16xbf16, #tpu.memory_space<vmem>>, vector<1x1x64x16xbf16>
    %21 = vector.shape_cast %20 : vector<1x1x64x16xbf16> to vector<64x16xbf16>
    %cst_24 = arith.constant dense<0.000000e+00> : vector<25x16xf32>
    %22 = tpu.matmul %5, %21, %cst_24 {dimension_numbers = #tpu.dot_dimension_numbers<[1], [0], [0], [1], [0, 0, 1, 1], [], []>} : vector<25x64xbf16>, vector<64x16xbf16>, vector<25x16xf32> -> vector<25x16xf32>
    %c0_25 = arith.constant 0 : index
    %c0_26 = arith.constant 0 : index
    %c0_27 = arith.constant 0 : index
    %c0_28 = arith.constant 0 : index
    %23 = vector.load %arg8[%c0_25, %c0_26, %c0_27, %c0_28] : memref<1x4x1x16xf32, #tpu.memory_space<vmem>>, vector<1x1x1x16xf32>
    %24 = vector.shape_cast %23 : vector<1x1x1x16xf32> to vector<1x16xf32>
    %25 = vector.broadcast %24 : vector<1x16xf32> to vector<25x16xf32>
    %26 = arith.addf %22, %25 : vector<25x16xf32>
    %27 = arith.truncf %12 : vector<25x16xf32> to vector<25x16xbf16>
    %28 = arith.truncf %19 : vector<25x16xf32> to vector<25x16xbf16>
    %cst_29 = arith.constant dense<0.000000e+00> : vector<25x25xf32>
    %29 = tpu.matmul %27, %28, %cst_29 {dimension_numbers = #tpu.dot_dimension_numbers<[1], [1], [0], [0], [0, 0, 1, 0], [], []>} : vector<25x16xbf16>, vector<25x16xbf16>, vector<25x25xf32> -> vector<25x25xf32>
    %cst_30 = arith.constant 2.500000e-01 : f32
    %30 = vector.broadcast %cst_30 : f32 to vector<25x25xf32>
    %31 = arith.mulf %29, %30 : vector<25x25xf32>
    %cst_31 = arith.constant dense<0xFF800000> : vector<25xf32>
    %32 = vector.multi_reduction <maximumf>, %31, %cst_31 [1] : vector<25x25xf32> to vector<25xf32>
    %33 = vector.shape_cast %32 : vector<25xf32> to vector<25x1xf32>
    %34 = vector.broadcast %33 : vector<25x1xf32> to vector<25x25xf32>
    %35 = arith.subf %31, %34 : vector<25x25xf32>
    %36 = math.exp %35 : vector<25x25xf32>
    %cst_32 = arith.constant dense<0.000000e+00> : vector<25xf32>
    %37 = vector.multi_reduction <add>, %36, %cst_32 [1] : vector<25x25xf32> to vector<25xf32>
    %38 = vector.shape_cast %37 : vector<25xf32> to vector<25x1xf32>
    %39 = vector.broadcast %38 : vector<25x1xf32> to vector<25x25xf32>
    %40 = arith.divf %36, %39 : vector<25x25xf32>
    %41 = arith.truncf %40 : vector<25x25xf32> to vector<25x25xbf16>
    %42 = arith.truncf %26 : vector<25x16xf32> to vector<25x16xbf16>
    %cst_33 = arith.constant dense<0.000000e+00> : vector<25x16xf32>
    %43 = tpu.matmul %41, %42, %cst_33 {dimension_numbers = #tpu.dot_dimension_numbers<[1], [0], [0], [1], [0, 0, 1, 1], [], []>} : vector<25x25xbf16>, vector<25x16xbf16>, vector<25x16xf32> -> vector<25x16xf32>
    %44 = arith.truncf %43 : vector<25x16xf32> to vector<25x16xbf16>
    %c0_34 = arith.constant 0 : index
    %c0_35 = arith.constant 0 : index
    %c0_36 = arith.constant 0 : index
    %c0_37 = arith.constant 0 : index
    %45 = vector.load %arg9[%c0_34, %c0_35, %c0_36, %c0_37] : memref<1x4x16x64xbf16, #tpu.memory_space<vmem>>, vector<1x1x16x64xbf16>
    %46 = vector.shape_cast %45 : vector<1x1x16x64xbf16> to vector<16x64xbf16>
    %cst_38 = arith.constant dense<0.000000e+00> : vector<25x64xf32>
    %47 = tpu.matmul %44, %46, %cst_38 {dimension_numbers = #tpu.dot_dimension_numbers<[1], [0], [0], [1], [0, 0, 1, 1], [], []>} : vector<25x16xbf16>, vector<16x64xbf16>, vector<25x64xf32> -> vector<25x64xf32>
    %c0_39 = arith.constant 0 : index
    %c1 = arith.constant 1 : index
    %c0_40 = arith.constant 0 : index
    %c0_41 = arith.constant 0 : index
    %48 = vector.load %arg3[%c0_39, %c1, %c0_40, %c0_41] : memref<1x4x64x16xbf16, #tpu.memory_space<vmem>>, vector<1x1x64x16xbf16>
    %49 = vector.shape_cast %48 : vector<1x1x64x16xbf16> to vector<64x16xbf16>
    %cst_42 = arith.constant dense<0.000000e+00> : vector<25x16xf32>
    %50 = tpu.matmul %5, %49, %cst_42 {dimension_numbers = #tpu.dot_dimension_numbers<[1], [0], [0], [1], [0, 0, 1, 1], [], []>} : vector<25x64xbf16>, vector<64x16xbf16>, vector<25x16xf32> -> vector<25x16xf32>
    %c0_43 = arith.constant 0 : index
    %c1_44 = arith.constant 1 : index
    %c0_45 = arith.constant 0 : index
    %c0_46 = arith.constant 0 : index
    %51 = vector.load %arg6[%c0_43, %c1_44, %c0_45, %c0_46] : memref<1x4x1x16xf32, #tpu.memory_space<vmem>>, vector<1x1x1x16xf32>
    %52 = vector.shape_cast %51 : vector<1x1x1x16xf32> to vector<1x16xf32>
    %53 = vector.broadcast %52 : vector<1x16xf32> to vector<25x16xf32>
    %54 = arith.addf %50, %53 : vector<25x16xf32>
    %c0_47 = arith.constant 0 : index
    %c1_48 = arith.constant 1 : index
    %c0_49 = arith.constant 0 : index
    %c0_50 = arith.constant 0 : index
    %55 = vector.load %arg4[%c0_47, %c1_48, %c0_49, %c0_50] : memref<1x4x64x16xbf16, #tpu.memory_space<vmem>>, vector<1x1x64x16xbf16>
    %56 = vector.shape_cast %55 : vector<1x1x64x16xbf16> to vector<64x16xbf16>
    %cst_51 = arith.constant dense<0.000000e+00> : vector<25x16xf32>
    %57 = tpu.matmul %5, %56, %cst_51 {dimension_numbers = #tpu.dot_dimension_numbers<[1], [0], [0], [1], [0, 0, 1, 1], [], []>} : vector<25x64xbf16>, vector<64x16xbf16>, vector<25x16xf32> -> vector<25x16xf32>
    %c0_52 = arith.constant 0 : index
    %c1_53 = arith.constant 1 : index
    %c0_54 = arith.constant 0 : index
    %c0_55 = arith.constant 0 : index
    %58 = vector.load %arg7[%c0_52, %c1_53, %c0_54, %c0_55] : memref<1x4x1x16xf32, #tpu.memory_space<vmem>>, vector<1x1x1x16xf32>
    %59 = vector.shape_cast %58 : vector<1x1x1x16xf32> to vector<1x16xf32>
    %60 = vector.broadcast %59 : vector<1x16xf32> to vector<25x16xf32>
    %61 = arith.addf %57, %60 : vector<25x16xf32>
    %c0_56 = arith.constant 0 : index
    %c1_57 = arith.constant 1 : index
    %c0_58 = arith.constant 0 : index
    %c0_59 = arith.constant 0 : index
    %62 = vector.load %arg5[%c0_56, %c1_57, %c0_58, %c0_59] : memref<1x4x64x16xbf16, #tpu.memory_space<vmem>>, vector<1x1x64x16xbf16>
    %63 = vector.shape_cast %62 : vector<1x1x64x16xbf16> to vector<64x16xbf16>
    %cst_60 = arith.constant dense<0.000000e+00> : vector<25x16xf32>
    %64 = tpu.matmul %5, %63, %cst_60 {dimension_numbers = #tpu.dot_dimension_numbers<[1], [0], [0], [1], [0, 0, 1, 1], [], []>} : vector<25x64xbf16>, vector<64x16xbf16>, vector<25x16xf32> -> vector<25x16xf32>
    %c0_61 = arith.constant 0 : index
    %c1_62 = arith.constant 1 : index
    %c0_63 = arith.constant 0 : index
    %c0_64 = arith.constant 0 : index
    %65 = vector.load %arg8[%c0_61, %c1_62, %c0_63, %c0_64] : memref<1x4x1x16xf32, #tpu.memory_space<vmem>>, vector<1x1x1x16xf32>
    %66 = vector.shape_cast %65 : vector<1x1x1x16xf32> to vector<1x16xf32>
    %67 = vector.broadcast %66 : vector<1x16xf32> to vector<25x16xf32>
    %68 = arith.addf %64, %67 : vector<25x16xf32>
    %69 = arith.truncf %54 : vector<25x16xf32> to vector<25x16xbf16>
    %70 = arith.truncf %61 : vector<25x16xf32> to vector<25x16xbf16>
    %cst_65 = arith.constant dense<0.000000e+00> : vector<25x25xf32>
    %71 = tpu.matmul %69, %70, %cst_65 {dimension_numbers = #tpu.dot_dimension_numbers<[1], [1], [0], [0], [0, 0, 1, 0], [], []>} : vector<25x16xbf16>, vector<25x16xbf16>, vector<25x25xf32> -> vector<25x25xf32>
    %cst_66 = arith.constant 2.500000e-01 : f32
    %72 = vector.broadcast %cst_66 : f32 to vector<25x25xf32>
    %73 = arith.mulf %71, %72 : vector<25x25xf32>
    %cst_67 = arith.constant dense<0xFF800000> : vector<25xf32>
    %74 = vector.multi_reduction <maximumf>, %73, %cst_67 [1] : vector<25x25xf32> to vector<25xf32>
    %75 = vector.shape_cast %74 : vector<25xf32> to vector<25x1xf32>
    %76 = vector.broadcast %75 : vector<25x1xf32> to vector<25x25xf32>
    %77 = arith.subf %73, %76 : vector<25x25xf32>
    %78 = math.exp %77 : vector<25x25xf32>
    %cst_68 = arith.constant dense<0.000000e+00> : vector<25xf32>
    %79 = vector.multi_reduction <add>, %78, %cst_68 [1] : vector<25x25xf32> to vector<25xf32>
    %80 = vector.shape_cast %79 : vector<25xf32> to vector<25x1xf32>
    %81 = vector.broadcast %80 : vector<25x1xf32> to vector<25x25xf32>
    %82 = arith.divf %78, %81 : vector<25x25xf32>
    %83 = arith.truncf %82 : vector<25x25xf32> to vector<25x25xbf16>
    %84 = arith.truncf %68 : vector<25x16xf32> to vector<25x16xbf16>
    %cst_69 = arith.constant dense<0.000000e+00> : vector<25x16xf32>
    %85 = tpu.matmul %83, %84, %cst_69 {dimension_numbers = #tpu.dot_dimension_numbers<[1], [0], [0], [1], [0, 0, 1, 1], [], []>} : vector<25x25xbf16>, vector<25x16xbf16>, vector<25x16xf32> -> vector<25x16xf32>
    %86 = arith.truncf %85 : vector<25x16xf32> to vector<25x16xbf16>
    %c0_70 = arith.constant 0 : index
    %c1_71 = arith.constant 1 : index
    %c0_72 = arith.constant 0 : index
    %c0_73 = arith.constant 0 : index
    %87 = vector.load %arg9[%c0_70, %c1_71, %c0_72, %c0_73] : memref<1x4x16x64xbf16, #tpu.memory_space<vmem>>, vector<1x1x16x64xbf16>
    %88 = vector.shape_cast %87 : vector<1x1x16x64xbf16> to vector<16x64xbf16>
    %cst_74 = arith.constant dense<0.000000e+00> : vector<25x64xf32>
    %89 = tpu.matmul %86, %88, %cst_74 {dimension_numbers = #tpu.dot_dimension_numbers<[1], [0], [0], [1], [0, 0, 1, 1], [], []>} : vector<25x16xbf16>, vector<16x64xbf16>, vector<25x64xf32> -> vector<25x64xf32>
    %90 = arith.addf %47, %89 : vector<25x64xf32>
    %c0_75 = arith.constant 0 : index
    %c2 = arith.constant 2 : index
    %c0_76 = arith.constant 0 : index
    %c0_77 = arith.constant 0 : index
    %91 = vector.load %arg3[%c0_75, %c2, %c0_76, %c0_77] : memref<1x4x64x16xbf16, #tpu.memory_space<vmem>>, vector<1x1x64x16xbf16>
    %92 = vector.shape_cast %91 : vector<1x1x64x16xbf16> to vector<64x16xbf16>
    %cst_78 = arith.constant dense<0.000000e+00> : vector<25x16xf32>
    %93 = tpu.matmul %5, %92, %cst_78 {dimension_numbers = #tpu.dot_dimension_numbers<[1], [0], [0], [1], [0, 0, 1, 1], [], []>} : vector<25x64xbf16>, vector<64x16xbf16>, vector<25x16xf32> -> vector<25x16xf32>
    %c0_79 = arith.constant 0 : index
    %c2_80 = arith.constant 2 : index
    %c0_81 = arith.constant 0 : index
    %c0_82 = arith.constant 0 : index
    %94 = vector.load %arg6[%c0_79, %c2_80, %c0_81, %c0_82] : memref<1x4x1x16xf32, #tpu.memory_space<vmem>>, vector<1x1x1x16xf32>
    %95 = vector.shape_cast %94 : vector<1x1x1x16xf32> to vector<1x16xf32>
    %96 = vector.broadcast %95 : vector<1x16xf32> to vector<25x16xf32>
    %97 = arith.addf %93, %96 : vector<25x16xf32>
    %c0_83 = arith.constant 0 : index
    %c2_84 = arith.constant 2 : index
    %c0_85 = arith.constant 0 : index
    %c0_86 = arith.constant 0 : index
    %98 = vector.load %arg4[%c0_83, %c2_84, %c0_85, %c0_86] : memref<1x4x64x16xbf16, #tpu.memory_space<vmem>>, vector<1x1x64x16xbf16>
    %99 = vector.shape_cast %98 : vector<1x1x64x16xbf16> to vector<64x16xbf16>
    %cst_87 = arith.constant dense<0.000000e+00> : vector<25x16xf32>
    %100 = tpu.matmul %5, %99, %cst_87 {dimension_numbers = #tpu.dot_dimension_numbers<[1], [0], [0], [1], [0, 0, 1, 1], [], []>} : vector<25x64xbf16>, vector<64x16xbf16>, vector<25x16xf32> -> vector<25x16xf32>
    %c0_88 = arith.constant 0 : index
    %c2_89 = arith.constant 2 : index
    %c0_90 = arith.constant 0 : index
    %c0_91 = arith.constant 0 : index
    %101 = vector.load %arg7[%c0_88, %c2_89, %c0_90, %c0_91] : memref<1x4x1x16xf32, #tpu.memory_space<vmem>>, vector<1x1x1x16xf32>
    %102 = vector.shape_cast %101 : vector<1x1x1x16xf32> to vector<1x16xf32>
    %103 = vector.broadcast %102 : vector<1x16xf32> to vector<25x16xf32>
    %104 = arith.addf %100, %103 : vector<25x16xf32>
    %c0_92 = arith.constant 0 : index
    %c2_93 = arith.constant 2 : index
    %c0_94 = arith.constant 0 : index
    %c0_95 = arith.constant 0 : index
    %105 = vector.load %arg5[%c0_92, %c2_93, %c0_94, %c0_95] : memref<1x4x64x16xbf16, #tpu.memory_space<vmem>>, vector<1x1x64x16xbf16>
    %106 = vector.shape_cast %105 : vector<1x1x64x16xbf16> to vector<64x16xbf16>
    %cst_96 = arith.constant dense<0.000000e+00> : vector<25x16xf32>
    %107 = tpu.matmul %5, %106, %cst_96 {dimension_numbers = #tpu.dot_dimension_numbers<[1], [0], [0], [1], [0, 0, 1, 1], [], []>} : vector<25x64xbf16>, vector<64x16xbf16>, vector<25x16xf32> -> vector<25x16xf32>
    %c0_97 = arith.constant 0 : index
    %c2_98 = arith.constant 2 : index
    %c0_99 = arith.constant 0 : index
    %c0_100 = arith.constant 0 : index
    %108 = vector.load %arg8[%c0_97, %c2_98, %c0_99, %c0_100] : memref<1x4x1x16xf32, #tpu.memory_space<vmem>>, vector<1x1x1x16xf32>
    %109 = vector.shape_cast %108 : vector<1x1x1x16xf32> to vector<1x16xf32>
    %110 = vector.broadcast %109 : vector<1x16xf32> to vector<25x16xf32>
    %111 = arith.addf %107, %110 : vector<25x16xf32>
    %112 = arith.truncf %97 : vector<25x16xf32> to vector<25x16xbf16>
    %113 = arith.truncf %104 : vector<25x16xf32> to vector<25x16xbf16>
    %cst_101 = arith.constant dense<0.000000e+00> : vector<25x25xf32>
    %114 = tpu.matmul %112, %113, %cst_101 {dimension_numbers = #tpu.dot_dimension_numbers<[1], [1], [0], [0], [0, 0, 1, 0], [], []>} : vector<25x16xbf16>, vector<25x16xbf16>, vector<25x25xf32> -> vector<25x25xf32>
    %cst_102 = arith.constant 2.500000e-01 : f32
    %115 = vector.broadcast %cst_102 : f32 to vector<25x25xf32>
    %116 = arith.mulf %114, %115 : vector<25x25xf32>
    %cst_103 = arith.constant dense<0xFF800000> : vector<25xf32>
    %117 = vector.multi_reduction <maximumf>, %116, %cst_103 [1] : vector<25x25xf32> to vector<25xf32>
    %118 = vector.shape_cast %117 : vector<25xf32> to vector<25x1xf32>
    %119 = vector.broadcast %118 : vector<25x1xf32> to vector<25x25xf32>
    %120 = arith.subf %116, %119 : vector<25x25xf32>
    %121 = math.exp %120 : vector<25x25xf32>
    %cst_104 = arith.constant dense<0.000000e+00> : vector<25xf32>
    %122 = vector.multi_reduction <add>, %121, %cst_104 [1] : vector<25x25xf32> to vector<25xf32>
    %123 = vector.shape_cast %122 : vector<25xf32> to vector<25x1xf32>
    %124 = vector.broadcast %123 : vector<25x1xf32> to vector<25x25xf32>
    %125 = arith.divf %121, %124 : vector<25x25xf32>
    %126 = arith.truncf %125 : vector<25x25xf32> to vector<25x25xbf16>
    %127 = arith.truncf %111 : vector<25x16xf32> to vector<25x16xbf16>
    %cst_105 = arith.constant dense<0.000000e+00> : vector<25x16xf32>
    %128 = tpu.matmul %126, %127, %cst_105 {dimension_numbers = #tpu.dot_dimension_numbers<[1], [0], [0], [1], [0, 0, 1, 1], [], []>} : vector<25x25xbf16>, vector<25x16xbf16>, vector<25x16xf32> -> vector<25x16xf32>
    %129 = arith.truncf %128 : vector<25x16xf32> to vector<25x16xbf16>
    %c0_106 = arith.constant 0 : index
    %c2_107 = arith.constant 2 : index
    %c0_108 = arith.constant 0 : index
    %c0_109 = arith.constant 0 : index
    %130 = vector.load %arg9[%c0_106, %c2_107, %c0_108, %c0_109] : memref<1x4x16x64xbf16, #tpu.memory_space<vmem>>, vector<1x1x16x64xbf16>
    %131 = vector.shape_cast %130 : vector<1x1x16x64xbf16> to vector<16x64xbf16>
    %cst_110 = arith.constant dense<0.000000e+00> : vector<25x64xf32>
    %132 = tpu.matmul %129, %131, %cst_110 {dimension_numbers = #tpu.dot_dimension_numbers<[1], [0], [0], [1], [0, 0, 1, 1], [], []>} : vector<25x16xbf16>, vector<16x64xbf16>, vector<25x64xf32> -> vector<25x64xf32>
    %133 = arith.addf %90, %132 : vector<25x64xf32>
    %c0_111 = arith.constant 0 : index
    %c3 = arith.constant 3 : index
    %c0_112 = arith.constant 0 : index
    %c0_113 = arith.constant 0 : index
    %134 = vector.load %arg3[%c0_111, %c3, %c0_112, %c0_113] : memref<1x4x64x16xbf16, #tpu.memory_space<vmem>>, vector<1x1x64x16xbf16>
    %135 = vector.shape_cast %134 : vector<1x1x64x16xbf16> to vector<64x16xbf16>
    %cst_114 = arith.constant dense<0.000000e+00> : vector<25x16xf32>
    %136 = tpu.matmul %5, %135, %cst_114 {dimension_numbers = #tpu.dot_dimension_numbers<[1], [0], [0], [1], [0, 0, 1, 1], [], []>} : vector<25x64xbf16>, vector<64x16xbf16>, vector<25x16xf32> -> vector<25x16xf32>
    %c0_115 = arith.constant 0 : index
    %c3_116 = arith.constant 3 : index
    %c0_117 = arith.constant 0 : index
    %c0_118 = arith.constant 0 : index
    %137 = vector.load %arg6[%c0_115, %c3_116, %c0_117, %c0_118] : memref<1x4x1x16xf32, #tpu.memory_space<vmem>>, vector<1x1x1x16xf32>
    %138 = vector.shape_cast %137 : vector<1x1x1x16xf32> to vector<1x16xf32>
    %139 = vector.broadcast %138 : vector<1x16xf32> to vector<25x16xf32>
    %140 = arith.addf %136, %139 : vector<25x16xf32>
    %c0_119 = arith.constant 0 : index
    %c3_120 = arith.constant 3 : index
    %c0_121 = arith.constant 0 : index
    %c0_122 = arith.constant 0 : index
    %141 = vector.load %arg4[%c0_119, %c3_120, %c0_121, %c0_122] : memref<1x4x64x16xbf16, #tpu.memory_space<vmem>>, vector<1x1x64x16xbf16>
    %142 = vector.shape_cast %141 : vector<1x1x64x16xbf16> to vector<64x16xbf16>
    %cst_123 = arith.constant dense<0.000000e+00> : vector<25x16xf32>
    %143 = tpu.matmul %5, %142, %cst_123 {dimension_numbers = #tpu.dot_dimension_numbers<[1], [0], [0], [1], [0, 0, 1, 1], [], []>} : vector<25x64xbf16>, vector<64x16xbf16>, vector<25x16xf32> -> vector<25x16xf32>
    %c0_124 = arith.constant 0 : index
    %c3_125 = arith.constant 3 : index
    %c0_126 = arith.constant 0 : index
    %c0_127 = arith.constant 0 : index
    %144 = vector.load %arg7[%c0_124, %c3_125, %c0_126, %c0_127] : memref<1x4x1x16xf32, #tpu.memory_space<vmem>>, vector<1x1x1x16xf32>
    %145 = vector.shape_cast %144 : vector<1x1x1x16xf32> to vector<1x16xf32>
    %146 = vector.broadcast %145 : vector<1x16xf32> to vector<25x16xf32>
    %147 = arith.addf %143, %146 : vector<25x16xf32>
    %c0_128 = arith.constant 0 : index
    %c3_129 = arith.constant 3 : index
    %c0_130 = arith.constant 0 : index
    %c0_131 = arith.constant 0 : index
    %148 = vector.load %arg5[%c0_128, %c3_129, %c0_130, %c0_131] : memref<1x4x64x16xbf16, #tpu.memory_space<vmem>>, vector<1x1x64x16xbf16>
    %149 = vector.shape_cast %148 : vector<1x1x64x16xbf16> to vector<64x16xbf16>
    %cst_132 = arith.constant dense<0.000000e+00> : vector<25x16xf32>
    %150 = tpu.matmul %5, %149, %cst_132 {dimension_numbers = #tpu.dot_dimension_numbers<[1], [0], [0], [1], [0, 0, 1, 1], [], []>} : vector<25x64xbf16>, vector<64x16xbf16>, vector<25x16xf32> -> vector<25x16xf32>
    %c0_133 = arith.constant 0 : index
    %c3_134 = arith.constant 3 : index
    %c0_135 = arith.constant 0 : index
    %c0_136 = arith.constant 0 : index
    %151 = vector.load %arg8[%c0_133, %c3_134, %c0_135, %c0_136] : memref<1x4x1x16xf32, #tpu.memory_space<vmem>>, vector<1x1x1x16xf32>
    %152 = vector.shape_cast %151 : vector<1x1x1x16xf32> to vector<1x16xf32>
    %153 = vector.broadcast %152 : vector<1x16xf32> to vector<25x16xf32>
    %154 = arith.addf %150, %153 : vector<25x16xf32>
    %155 = arith.truncf %140 : vector<25x16xf32> to vector<25x16xbf16>
    %156 = arith.truncf %147 : vector<25x16xf32> to vector<25x16xbf16>
    %cst_137 = arith.constant dense<0.000000e+00> : vector<25x25xf32>
    %157 = tpu.matmul %155, %156, %cst_137 {dimension_numbers = #tpu.dot_dimension_numbers<[1], [1], [0], [0], [0, 0, 1, 0], [], []>} : vector<25x16xbf16>, vector<25x16xbf16>, vector<25x25xf32> -> vector<25x25xf32>
    %cst_138 = arith.constant 2.500000e-01 : f32
    %158 = vector.broadcast %cst_138 : f32 to vector<25x25xf32>
    %159 = arith.mulf %157, %158 : vector<25x25xf32>
    %cst_139 = arith.constant dense<0xFF800000> : vector<25xf32>
    %160 = vector.multi_reduction <maximumf>, %159, %cst_139 [1] : vector<25x25xf32> to vector<25xf32>
    %161 = vector.shape_cast %160 : vector<25xf32> to vector<25x1xf32>
    %162 = vector.broadcast %161 : vector<25x1xf32> to vector<25x25xf32>
    %163 = arith.subf %159, %162 : vector<25x25xf32>
    %164 = math.exp %163 : vector<25x25xf32>
    %cst_140 = arith.constant dense<0.000000e+00> : vector<25xf32>
    %165 = vector.multi_reduction <add>, %164, %cst_140 [1] : vector<25x25xf32> to vector<25xf32>
    %166 = vector.shape_cast %165 : vector<25xf32> to vector<25x1xf32>
    %167 = vector.broadcast %166 : vector<25x1xf32> to vector<25x25xf32>
    %168 = arith.divf %164, %167 : vector<25x25xf32>
    %169 = arith.truncf %168 : vector<25x25xf32> to vector<25x25xbf16>
    %170 = arith.truncf %154 : vector<25x16xf32> to vector<25x16xbf16>
    %cst_141 = arith.constant dense<0.000000e+00> : vector<25x16xf32>
    %171 = tpu.matmul %169, %170, %cst_141 {dimension_numbers = #tpu.dot_dimension_numbers<[1], [0], [0], [1], [0, 0, 1, 1], [], []>} : vector<25x25xbf16>, vector<25x16xbf16>, vector<25x16xf32> -> vector<25x16xf32>
    %172 = arith.truncf %171 : vector<25x16xf32> to vector<25x16xbf16>
    %c0_142 = arith.constant 0 : index
    %c3_143 = arith.constant 3 : index
    %c0_144 = arith.constant 0 : index
    %c0_145 = arith.constant 0 : index
    %173 = vector.load %arg9[%c0_142, %c3_143, %c0_144, %c0_145] : memref<1x4x16x64xbf16, #tpu.memory_space<vmem>>, vector<1x1x16x64xbf16>
    %174 = vector.shape_cast %173 : vector<1x1x16x64xbf16> to vector<16x64xbf16>
    %cst_146 = arith.constant dense<0.000000e+00> : vector<25x64xf32>
    %175 = tpu.matmul %172, %174, %cst_146 {dimension_numbers = #tpu.dot_dimension_numbers<[1], [0], [0], [1], [0, 0, 1, 1], [], []>} : vector<25x16xbf16>, vector<16x64xbf16>, vector<25x64xf32> -> vector<25x64xf32>
    %176 = arith.addf %133, %175 : vector<25x64xf32>
    %c0_147 = arith.constant 0 : index
    %c0_148 = arith.constant 0 : index
    %c0_149 = arith.constant 0 : index
    %177 = vector.load %arg10[%c0_147, %c0_148, %c0_149] : memref<1x1x64xf32, #tpu.memory_space<vmem>>, vector<1x1x64xf32>
    %178 = vector.shape_cast %177 : vector<1x1x64xf32> to vector<1x64xf32>
    %179 = vector.broadcast %178 : vector<1x64xf32> to vector<25x64xf32>
    %180 = arith.addf %176, %179 : vector<25x64xf32>
    %181 = arith.addf %180, %4 : vector<25x64xf32>
    %cst_150 = arith.constant dense<0.000000e+00> : vector<25xf32>
    %182 = vector.multi_reduction <add>, %181, %cst_150 [1] : vector<25x64xf32> to vector<25xf32>
    %183 = vector.shape_cast %182 : vector<25xf32> to vector<25x1xf32>
    %cst_151 = arith.constant 6.400000e+01 : f32
    %184 = vector.broadcast %cst_151 : f32 to vector<25x1xf32>
    %185 = arith.divf %183, %184 : vector<25x1xf32>
    %186 = vector.broadcast %185 : vector<25x1xf32> to vector<25x64xf32>
    %187 = arith.subf %181, %186 : vector<25x64xf32>
    %188 = vector.broadcast %185 : vector<25x1xf32> to vector<25x64xf32>
    %189 = arith.subf %181, %188 : vector<25x64xf32>
    %190 = arith.mulf %187, %189 : vector<25x64xf32>
    %cst_152 = arith.constant dense<0.000000e+00> : vector<25xf32>
    %191 = vector.multi_reduction <add>, %190, %cst_152 [1] : vector<25x64xf32> to vector<25xf32>
    %192 = vector.shape_cast %191 : vector<25xf32> to vector<25x1xf32>
    %cst_153 = arith.constant 6.400000e+01 : f32
    %193 = vector.broadcast %cst_153 : f32 to vector<25x1xf32>
    %194 = arith.divf %192, %193 : vector<25x1xf32>
    %195 = vector.broadcast %185 : vector<25x1xf32> to vector<25x64xf32>
    %196 = arith.subf %181, %195 : vector<25x64xf32>
    %cst_154 = arith.constant 9.99999974E-6 : f32
    %197 = vector.broadcast %cst_154 : f32 to vector<25x1xf32>
    %198 = arith.addf %194, %197 : vector<25x1xf32>
    %199 = math.rsqrt %198 : vector<25x1xf32>
    %200 = vector.broadcast %199 : vector<25x1xf32> to vector<25x64xf32>
    %201 = arith.mulf %196, %200 : vector<25x64xf32>
    %c0_155 = arith.constant 0 : index
    %c0_156 = arith.constant 0 : index
    %c0_157 = arith.constant 0 : index
    %202 = vector.load %arg11[%c0_155, %c0_156, %c0_157] : memref<1x1x64xf32, #tpu.memory_space<vmem>>, vector<1x1x64xf32>
    %203 = vector.shape_cast %202 : vector<1x1x64xf32> to vector<1x64xf32>
    %204 = vector.broadcast %203 : vector<1x64xf32> to vector<25x64xf32>
    %205 = arith.mulf %201, %204 : vector<25x64xf32>
    %c0_158 = arith.constant 0 : index
    %c0_159 = arith.constant 0 : index
    %c0_160 = arith.constant 0 : index
    %206 = vector.load %arg12[%c0_158, %c0_159, %c0_160] : memref<1x1x64xf32, #tpu.memory_space<vmem>>, vector<1x1x64xf32>
    %207 = vector.shape_cast %206 : vector<1x1x64xf32> to vector<1x64xf32>
    %208 = vector.broadcast %207 : vector<1x64xf32> to vector<25x64xf32>
    %209 = arith.addf %205, %208 : vector<25x64xf32>
    %210 = arith.truncf %209 : vector<25x64xf32> to vector<25x64xbf16>
    %c0_161 = arith.constant 0 : index
    %c0_162 = arith.constant 0 : index
    %c0_163 = arith.constant 0 : index
    %211 = vector.load %arg13[%c0_161, %c0_162, %c0_163] : memref<1x64x128xbf16, #tpu.memory_space<vmem>>, vector<1x64x128xbf16>
    %212 = vector.shape_cast %211 : vector<1x64x128xbf16> to vector<64x128xbf16>
    %cst_164 = arith.constant dense<0.000000e+00> : vector<25x128xf32>
    %213 = tpu.matmul %210, %212, %cst_164 {dimension_numbers = #tpu.dot_dimension_numbers<[1], [0], [0], [1], [0, 0, 1, 1], [], []>} : vector<25x64xbf16>, vector<64x128xbf16>, vector<25x128xf32> -> vector<25x128xf32>
    %c0_165 = arith.constant 0 : index
    %c0_166 = arith.constant 0 : index
    %c0_167 = arith.constant 0 : index
    %214 = vector.load %arg14[%c0_165, %c0_166, %c0_167] : memref<1x1x128xf32, #tpu.memory_space<vmem>>, vector<1x1x128xf32>
    %215 = vector.shape_cast %214 : vector<1x1x128xf32> to vector<1x128xf32>
    %216 = vector.broadcast %215 : vector<1x128xf32> to vector<25x128xf32>
    %217 = arith.addf %213, %216 : vector<25x128xf32>
    %cst_168 = arith.constant 5.000000e-01 : f32
    %218 = vector.broadcast %cst_168 : f32 to vector<25x128xf32>
    %219 = arith.mulf %218, %217 : vector<25x128xf32>
    %cst_169 = arith.constant 4.471500e-02 : f32
    %220 = vector.broadcast %cst_169 : f32 to vector<25x128xf32>
    %221 = arith.mulf %220, %217 : vector<25x128xf32>
    %222 = arith.mulf %221, %217 : vector<25x128xf32>
    %223 = arith.mulf %222, %217 : vector<25x128xf32>
    %224 = arith.addf %217, %223 : vector<25x128xf32>
    %cst_170 = arith.constant 0.797884583 : f32
    %225 = vector.broadcast %cst_170 : f32 to vector<25x128xf32>
    %226 = arith.mulf %225, %224 : vector<25x128xf32>
    %227 = math.tanh %226 : vector<25x128xf32>
    %cst_171 = arith.constant 1.000000e+00 : f32
    %228 = vector.broadcast %cst_171 : f32 to vector<25x128xf32>
    %229 = arith.addf %228, %227 : vector<25x128xf32>
    %230 = arith.mulf %219, %229 : vector<25x128xf32>
    %231 = arith.truncf %230 : vector<25x128xf32> to vector<25x128xbf16>
    %c0_172 = arith.constant 0 : index
    %c0_173 = arith.constant 0 : index
    %c0_174 = arith.constant 0 : index
    %232 = vector.load %arg15[%c0_172, %c0_173, %c0_174] : memref<1x128x64xbf16, #tpu.memory_space<vmem>>, vector<1x128x64xbf16>
    %233 = vector.shape_cast %232 : vector<1x128x64xbf16> to vector<128x64xbf16>
    %cst_175 = arith.constant dense<0.000000e+00> : vector<25x64xf32>
    %234 = tpu.matmul %231, %233, %cst_175 {dimension_numbers = #tpu.dot_dimension_numbers<[1], [0], [0], [1], [0, 0, 1, 1], [], []>} : vector<25x128xbf16>, vector<128x64xbf16>, vector<25x64xf32> -> vector<25x64xf32>
    %c0_176 = arith.constant 0 : index
    %c0_177 = arith.constant 0 : index
    %c0_178 = arith.constant 0 : index
    %235 = vector.load %arg16[%c0_176, %c0_177, %c0_178] : memref<1x1x64xf32, #tpu.memory_space<vmem>>, vector<1x1x64xf32>
    %236 = vector.shape_cast %235 : vector<1x1x64xf32> to vector<1x64xf32>
    %237 = vector.broadcast %236 : vector<1x64xf32> to vector<25x64xf32>
    %238 = arith.addf %234, %237 : vector<25x64xf32>
    %239 = arith.addf %238, %209 : vector<25x64xf32>
    %cst_179 = arith.constant dense<0.000000e+00> : vector<25xf32>
    %240 = vector.multi_reduction <add>, %239, %cst_179 [1] : vector<25x64xf32> to vector<25xf32>
    %241 = vector.shape_cast %240 : vector<25xf32> to vector<25x1xf32>
    %cst_180 = arith.constant 6.400000e+01 : f32
    %242 = vector.broadcast %cst_180 : f32 to vector<25x1xf32>
    %243 = arith.divf %241, %242 : vector<25x1xf32>
    %244 = vector.broadcast %243 : vector<25x1xf32> to vector<25x64xf32>
    %245 = arith.subf %239, %244 : vector<25x64xf32>
    %246 = vector.broadcast %243 : vector<25x1xf32> to vector<25x64xf32>
    %247 = arith.subf %239, %246 : vector<25x64xf32>
    %248 = arith.mulf %245, %247 : vector<25x64xf32>
    %cst_181 = arith.constant dense<0.000000e+00> : vector<25xf32>
    %249 = vector.multi_reduction <add>, %248, %cst_181 [1] : vector<25x64xf32> to vector<25xf32>
    %250 = vector.shape_cast %249 : vector<25xf32> to vector<25x1xf32>
    %cst_182 = arith.constant 6.400000e+01 : f32
    %251 = vector.broadcast %cst_182 : f32 to vector<25x1xf32>
    %252 = arith.divf %250, %251 : vector<25x1xf32>
    %253 = vector.broadcast %243 : vector<25x1xf32> to vector<25x64xf32>
    %254 = arith.subf %239, %253 : vector<25x64xf32>
    %cst_183 = arith.constant 9.99999974E-6 : f32
    %255 = vector.broadcast %cst_183 : f32 to vector<25x1xf32>
    %256 = arith.addf %252, %255 : vector<25x1xf32>
    %257 = math.rsqrt %256 : vector<25x1xf32>
    %258 = vector.broadcast %257 : vector<25x1xf32> to vector<25x64xf32>
    %259 = arith.mulf %254, %258 : vector<25x64xf32>
    %c0_184 = arith.constant 0 : index
    %c0_185 = arith.constant 0 : index
    %c0_186 = arith.constant 0 : index
    %260 = vector.load %arg17[%c0_184, %c0_185, %c0_186] : memref<1x1x64xf32, #tpu.memory_space<vmem>>, vector<1x1x64xf32>
    %261 = vector.shape_cast %260 : vector<1x1x64xf32> to vector<1x64xf32>
    %262 = vector.broadcast %261 : vector<1x64xf32> to vector<25x64xf32>
    %263 = arith.mulf %259, %262 : vector<25x64xf32>
    %c0_187 = arith.constant 0 : index
    %c0_188 = arith.constant 0 : index
    %c0_189 = arith.constant 0 : index
    %264 = vector.load %arg18[%c0_187, %c0_188, %c0_189] : memref<1x1x64xf32, #tpu.memory_space<vmem>>, vector<1x1x64xf32>
    %265 = vector.shape_cast %264 : vector<1x1x64xf32> to vector<1x64xf32>
    %266 = vector.broadcast %265 : vector<1x64xf32> to vector<25x64xf32>
    %267 = arith.addf %263, %266 : vector<25x64xf32>
    %c0_190 = arith.constant 0 : index
    %c0_191 = arith.constant 0 : index
    %c0_192 = arith.constant 0 : index
    %268 = vector.load %arg19[%c0_190, %c0_191, %c0_192] : memref<1x25x64xf32, #tpu.memory_space<vmem>>, vector<1x25x64xf32>
    %269 = vector.shape_cast %268 : vector<1x25x64xf32> to vector<25x64xf32>
    %270 = vector.shape_cast %267 : vector<25x64xf32> to vector<1x25x64xf32>
    tpu.vector_store %arg19[%c0_190, %c0_191, %c0_192], %270 {strides = array<i32>} : memref<1x25x64xf32, #tpu.memory_space<vmem>>, vector<1x25x64xf32>,
    return
  }
  func.func @transform_0(%arg0: i32, %arg1: i32) -> (i32, i32, i32) {
    %c0_i32 = arith.constant 0 : i32
    %c0_i32_0 = arith.constant 0 : i32
    %c0_i32_1 = arith.constant 0 : i32
    return %arg0, %c0_i32, %c0_i32_0 : i32, i32, i32
  }
  func.func @transform_1(%arg0: i32, %arg1: i32) -> (i32, i32, i32, i32) {
    %c0_i32 = arith.constant 0 : i32
    %c0_i32_0 = arith.constant 0 : i32
    %c0_i32_1 = arith.constant 0 : i32
    %c0_i32_2 = arith.constant 0 : i32
    return %arg1, %c0_i32, %c0_i32_0, %c0_i32_1 : i32, i32, i32, i32
  }
  func.func @transform_2(%arg0: i32, %arg1: i32) -> (i32, i32, i32, i32) {
    %c0_i32 = arith.constant 0 : i32
    %c0_i32_0 = arith.constant 0 : i32
    %c0_i32_1 = arith.constant 0 : i32
    %c0_i32_2 = arith.constant 0 : i32
    return %arg1, %c0_i32, %c0_i32_0, %c0_i32_1 : i32, i32, i32, i32
  }
  func.func @transform_3(%arg0: i32, %arg1: i32) -> (i32, i32, i32, i32) {
    %c0_i32 = arith.constant 0 : i32
    %c0_i32_0 = arith.constant 0 : i32
    %c0_i32_1 = arith.constant 0 : i32
    %c0_i32_2 = arith.constant 0 : i32
    return %arg1, %c0_i32, %c0_i32_0, %c0_i32_1 : i32, i32, i32, i32
  }
  func.func @transform_4(%arg0: i32, %arg1: i32) -> (i32, i32, i32, i32) {
    %c0_i32 = arith.constant 0 : i32
    %c0_i32_0 = arith.constant 0 : i32
    %c0_i32_1 = arith.constant 0 : i32
    %c0_i32_2 = arith.constant 0 : i32
    return %arg1, %c0_i32, %c0_i32_0, %c0_i32_1 : i32, i32, i32, i32
  }
  func.func @transform_5(%arg0: i32, %arg1: i32) -> (i32, i32, i32, i32) {
    %c0_i32 = arith.constant 0 : i32
    %c0_i32_0 = arith.constant 0 : i32
    %c0_i32_1 = arith.constant 0 : i32
    %c0_i32_2 = arith.constant 0 : i32
    return %arg1, %c0_i32, %c0_i32_0, %c0_i32_1 : i32, i32, i32, i32
  }
  func.func @transform_6(%arg0: i32, %arg1: i32) -> (i32, i32, i32, i32) {
    %c0_i32 = arith.constant 0 : i32
    %c0_i32_0 = arith.constant 0 : i32
    %c0_i32_1 = arith.constant 0 : i32
    %c0_i32_2 = arith.constant 0 : i32
    return %arg1, %c0_i32, %c0_i32_0, %c0_i32_1 : i32, i32, i32, i32
  }
  func.func @transform_7(%arg0: i32, %arg1: i32) -> (i32, i32, i32, i32) {
    %c0_i32 = arith.constant 0 : i32
    %c0_i32_0 = arith.constant 0 : i32
    %c0_i32_1 = arith.constant 0 : i32
    %c0_i32_2 = arith.constant 0 : i32
    return %arg1, %c0_i32, %c0_i32_0, %c0_i32_1 : i32, i32, i32, i32
  }
  func.func @transform_8(%arg0: i32, %arg1: i32) -> (i32, i32, i32) {
    %c0_i32 = arith.constant 0 : i32
    %c0_i32_0 = arith.constant 0 : i32
    %c0_i32_1 = arith.constant 0 : i32
    return %arg1, %c0_i32, %c0_i32_0 : i32, i32, i32
  }
  func.func @transform_9(%arg0: i32, %arg1: i32) -> (i32, i32, i32) {
    %c0_i32 = arith.constant 0 : i32
    %c0_i32_0 = arith.constant 0 : i32
    %c0_i32_1 = arith.constant 0 : i32
    return %arg1, %c0_i32, %c0_i32_0 : i32, i32, i32
  }
  func.func @transform_10(%arg0: i32, %arg1: i32) -> (i32, i32, i32) {
    %c0_i32 = arith.constant 0 : i32
    %c0_i32_0 = arith.constant 0 : i32
    %c0_i32_1 = arith.constant 0 : i32
    return %arg1, %c0_i32, %c0_i32_0 : i32, i32, i32
  }
  func.func @transform_11(%arg0: i32, %arg1: i32) -> (i32, i32, i32) {
    %c0_i32 = arith.constant 0 : i32
    %c0_i32_0 = arith.constant 0 : i32
    %c0_i32_1 = arith.constant 0 : i32
    return %arg1, %c0_i32, %c0_i32_0 : i32, i32, i32
  }
  func.func @transform_12(%arg0: i32, %arg1: i32) -> (i32, i32, i32) {
    %c0_i32 = arith.constant 0 : i32
    %c0_i32_0 = arith.constant 0 : i32
    %c0_i32_1 = arith.constant 0 : i32
    return %arg1, %c0_i32, %c0_i32_0 : i32, i32, i32
  }
  func.func @transform_13(%arg0: i32, %arg1: i32) -> (i32, i32, i32) {
    %c0_i32 = arith.constant 0 : i32
    %c0_i32_0 = arith.constant 0 : i32
    %c0_i32_1 = arith.constant 0 : i32
    return %arg1, %c0_i32, %c0_i32_0 : i32, i32, i32
  }
  func.func @transform_14(%arg0: i32, %arg1: i32) -> (i32, i32, i32) {
    %c0_i32 = arith.constant 0 : i32
    %c0_i32_0 = arith.constant 0 : i32
    %c0_i32_1 = arith.constant 0 : i32
    return %arg1, %c0_i32, %c0_i32_0 : i32, i32, i32
  }
  func.func @transform_15(%arg0: i32, %arg1: i32) -> (i32, i32, i32) {
    %c0_i32 = arith.constant 0 : i32
    %c0_i32_0 = arith.constant 0 : i32
    %c0_i32_1 = arith.constant 0 : i32
    return %arg1, %c0_i32, %c0_i32_0 : i32, i32, i32
  }
  func.func @transform_16(%arg0: i32, %arg1: i32) -> (i32, i32, i32) {
    %c0_i32 = arith.constant 0 : i32
    %c0_i32_0 = arith.constant 0 : i32
    %c0_i32_1 = arith.constant 0 : i32
    return %arg1, %c0_i32, %c0_i32_0 : i32, i32, i32
  }
  func.func @transform_17(%arg0: i32, %arg1: i32) -> (i32, i32, i32) {
    %c0_i32 = arith.constant 0 : i32
    %c0_i32_0 = arith.constant 0 : i32
    %c0_i32_1 = arith.constant 0 : i32
    return %arg0, %c0_i32, %c0_i32_0 : i32, i32, i32
  }
}

module attributes {stable_mosaic.version = 11 : i64} {
  func.func @_seqpool_head_kernel(%arg0: memref<2x25x64xf32, #tpu.memory_space<vmem>>, %arg1: memref<1x1x64xf32, #tpu.memory_space<vmem>>, %arg2: memref<64x10xbf16, #tpu.memory_space<vmem>>, %arg3: memref<1x10xf32, #tpu.memory_space<vmem>>, %arg4: memref<2x1x10xf32, #tpu.memory_space<vmem>>) attributes {dimension_semantics = [], scalar_prefetch = 0 : i64, scratch_operands = 0 : i64, tpu.core_type = #tpu.core_type<tc>} {
    %c0 = arith.constant 0 : index
    %c0_0 = arith.constant 0 : index
    %c0_1 = arith.constant 0 : index
    %0 = vector.load %arg1[%c0, %c0_0, %c0_1] : memref<1x1x64xf32, #tpu.memory_space<vmem>>, vector<1x1x64xf32>
    %1 = vector.shape_cast %0 : vector<1x1x64xf32> to vector<1x64xf32>
    %c0_2 = arith.constant 0 : index
    %c0_3 = arith.constant 0 : index
    %c0_4 = arith.constant 0 : index
    %2 = vector.load %arg0[%c0_2, %c0_3, %c0_4] : memref<2x25x64xf32, #tpu.memory_space<vmem>>, vector<1x25x64xf32>
    %3 = vector.shape_cast %2 : vector<1x25x64xf32> to vector<25x64xf32>
    %4 = vector.broadcast %1 : vector<1x64xf32> to vector<25x64xf32>
    %5 = arith.mulf %3, %4 : vector<25x64xf32>
    %cst = arith.constant dense<0.000000e+00> : vector<25xf32>
    %6 = vector.multi_reduction <add>, %5, %cst [1] : vector<25x64xf32> to vector<25xf32>
    %7 = vector.shape_cast %6 : vector<25xf32> to vector<25x1xf32>
    %cst_5 = arith.constant dense<0xFF800000> : vector<1xf32>
    %8 = vector.multi_reduction <maximumf>, %7, %cst_5 [0] : vector<25x1xf32> to vector<1xf32>
    %9 = vector.shape_cast %8 : vector<1xf32> to vector<1x1xf32>
    %10 = vector.broadcast %9 : vector<1x1xf32> to vector<25x1xf32>
    %11 = arith.subf %7, %10 : vector<25x1xf32>
    %12 = math.exp %11 : vector<25x1xf32>
    %cst_6 = arith.constant dense<0.000000e+00> : vector<1xf32>
    %13 = vector.multi_reduction <add>, %12, %cst_6 [0] : vector<25x1xf32> to vector<1xf32>
    %14 = vector.shape_cast %13 : vector<1xf32> to vector<1x1xf32>
    %15 = vector.broadcast %14 : vector<1x1xf32> to vector<25x1xf32>
    %16 = arith.divf %12, %15 : vector<25x1xf32>
    %17 = arith.truncf %16 : vector<25x1xf32> to vector<25x1xbf16>
    %18 = arith.truncf %3 : vector<25x64xf32> to vector<25x64xbf16>
    %cst_7 = arith.constant dense<0.000000e+00> : vector<1x64xf32>
    %19 = tpu.matmul %17, %18, %cst_7 {dimension_numbers = #tpu.dot_dimension_numbers<[0], [0], [1], [1], [0, 1, 1, 1], [], []>} : vector<25x1xbf16>, vector<25x64xbf16>, vector<1x64xf32> -> vector<1x64xf32>
    %20 = arith.truncf %19 : vector<1x64xf32> to vector<1x64xbf16>
    %c0_8 = arith.constant 0 : index
    %c0_9 = arith.constant 0 : index
    %21 = vector.load %arg2[%c0_8, %c0_9] : memref<64x10xbf16, #tpu.memory_space<vmem>>, vector<64x10xbf16>
    %cst_10 = arith.constant dense<0.000000e+00> : vector<1x10xf32>
    %22 = tpu.matmul %20, %21, %cst_10 {dimension_numbers = #tpu.dot_dimension_numbers<[1], [0], [0], [1], [0, 0, 1, 1], [], []>} : vector<1x64xbf16>, vector<64x10xbf16>, vector<1x10xf32> -> vector<1x10xf32>
    %c0_11 = arith.constant 0 : index
    %c0_12 = arith.constant 0 : index
    %23 = vector.load %arg3[%c0_11, %c0_12] : memref<1x10xf32, #tpu.memory_space<vmem>>, vector<1x10xf32>
    %24 = arith.addf %22, %23 : vector<1x10xf32>
    %c0_13 = arith.constant 0 : index
    %c0_14 = arith.constant 0 : index
    %c0_15 = arith.constant 0 : index
    %25 = vector.load %arg4[%c0_13, %c0_14, %c0_15] : memref<2x1x10xf32, #tpu.memory_space<vmem>>, vector<1x1x10xf32>
    %26 = vector.shape_cast %25 : vector<1x1x10xf32> to vector<1x10xf32>
    %27 = vector.shape_cast %24 : vector<1x10xf32> to vector<1x1x10xf32>
    tpu.vector_store %arg4[%c0_13, %c0_14, %c0_15], %27 {strides = array<i32>} : memref<2x1x10xf32, #tpu.memory_space<vmem>>, vector<1x1x10xf32>,
    %c1 = arith.constant 1 : index
    %c0_16 = arith.constant 0 : index
    %c0_17 = arith.constant 0 : index
    %28 = vector.load %arg0[%c1, %c0_16, %c0_17] : memref<2x25x64xf32, #tpu.memory_space<vmem>>, vector<1x25x64xf32>
    %29 = vector.shape_cast %28 : vector<1x25x64xf32> to vector<25x64xf32>
    %30 = vector.broadcast %1 : vector<1x64xf32> to vector<25x64xf32>
    %31 = arith.mulf %29, %30 : vector<25x64xf32>
    %cst_18 = arith.constant dense<0.000000e+00> : vector<25xf32>
    %32 = vector.multi_reduction <add>, %31, %cst_18 [1] : vector<25x64xf32> to vector<25xf32>
    %33 = vector.shape_cast %32 : vector<25xf32> to vector<25x1xf32>
    %cst_19 = arith.constant dense<0xFF800000> : vector<1xf32>
    %34 = vector.multi_reduction <maximumf>, %33, %cst_19 [0] : vector<25x1xf32> to vector<1xf32>
    %35 = vector.shape_cast %34 : vector<1xf32> to vector<1x1xf32>
    %36 = vector.broadcast %35 : vector<1x1xf32> to vector<25x1xf32>
    %37 = arith.subf %33, %36 : vector<25x1xf32>
    %38 = math.exp %37 : vector<25x1xf32>
    %cst_20 = arith.constant dense<0.000000e+00> : vector<1xf32>
    %39 = vector.multi_reduction <add>, %38, %cst_20 [0] : vector<25x1xf32> to vector<1xf32>
    %40 = vector.shape_cast %39 : vector<1xf32> to vector<1x1xf32>
    %41 = vector.broadcast %40 : vector<1x1xf32> to vector<25x1xf32>
    %42 = arith.divf %38, %41 : vector<25x1xf32>
    %43 = arith.truncf %42 : vector<25x1xf32> to vector<25x1xbf16>
    %44 = arith.truncf %29 : vector<25x64xf32> to vector<25x64xbf16>
    %cst_21 = arith.constant dense<0.000000e+00> : vector<1x64xf32>
    %45 = tpu.matmul %43, %44, %cst_21 {dimension_numbers = #tpu.dot_dimension_numbers<[0], [0], [1], [1], [0, 1, 1, 1], [], []>} : vector<25x1xbf16>, vector<25x64xbf16>, vector<1x64xf32> -> vector<1x64xf32>
    %46 = arith.truncf %45 : vector<1x64xf32> to vector<1x64xbf16>
    %c0_22 = arith.constant 0 : index
    %c0_23 = arith.constant 0 : index
    %47 = vector.load %arg2[%c0_22, %c0_23] : memref<64x10xbf16, #tpu.memory_space<vmem>>, vector<64x10xbf16>
    %cst_24 = arith.constant dense<0.000000e+00> : vector<1x10xf32>
    %48 = tpu.matmul %46, %47, %cst_24 {dimension_numbers = #tpu.dot_dimension_numbers<[1], [0], [0], [1], [0, 0, 1, 1], [], []>} : vector<1x64xbf16>, vector<64x10xbf16>, vector<1x10xf32> -> vector<1x10xf32>
    %c0_25 = arith.constant 0 : index
    %c0_26 = arith.constant 0 : index
    %49 = vector.load %arg3[%c0_25, %c0_26] : memref<1x10xf32, #tpu.memory_space<vmem>>, vector<1x10xf32>
    %50 = arith.addf %48, %49 : vector<1x10xf32>
    %c1_27 = arith.constant 1 : index
    %c0_28 = arith.constant 0 : index
    %c0_29 = arith.constant 0 : index
    %51 = vector.load %arg4[%c1_27, %c0_28, %c0_29] : memref<2x1x10xf32, #tpu.memory_space<vmem>>, vector<1x1x10xf32>
    %52 = vector.shape_cast %51 : vector<1x1x10xf32> to vector<1x10xf32>
    %53 = vector.shape_cast %50 : vector<1x10xf32> to vector<1x1x10xf32>
    tpu.vector_store %arg4[%c1_27, %c0_28, %c0_29], %53 {strides = array<i32>} : memref<2x1x10xf32, #tpu.memory_space<vmem>>, vector<1x1x10xf32>,
    return
  }
}

</mosaic_0001>

<bundles_post_ra>
// kernel: cct_forward.3
= control target key start
LH: loop header
LB: loop body
LE: loop exit
PB: predicated region body
PF: predicated region fallthrough
CT: control target
= control target key end

     0   :  { %s1577_s18 = smov 0   ;;  %s1927_s0 = inlined_call_operand.vmem [shape: bf16[2,9,25,27], index: 0, kind: input, shape index: {}]   ;;  %s1928_s1 = inlined_call_operand.vmem [shape: f32[9,25,1], index: 1, kind: input, shape index: {}]   ;;  %s1929_s2 = inlined_call_operand.vmem [shape: bf16[27,64], index: 2, kind: input, shape index: {}]   ;;  %s1930_s3 = inlined_call_operand.vmem [shape: f32[1,64], index: 3, kind: input, shape index: {}]   ;;  %s1931_s4 = inlined_call_operand.vmem [shape: f32[1,25,64], index: 4, kind: input, shape index: {}]   ;;  %s1932_s5 = inlined_call_operand.vmem [shape: f32[2,25,64], index: 5, kind: output, shape index: {}]  }
   0x1 LB: > { %s1282_s19 = sadd.s32 4294967295, %s1543_s18   ;;  %p1286_p0 = scmp.ge.s32.totalorder %s1543_s18, 1  ;;  %s1543_s18 = sphi %s1577_s18, %s15_s18  }
   0x2   : > { %p187_p1 = scmp.lt.s32.totalorder %s1543_s18, 3 }
   0x4   : > { %p188_p2 = pnand %p1286_p0, %p187_p1 }
   0x5   : > { %p215_p3 = scmp.lt.s32.totalorder (!%p188_p2), %s1282_s19, 1 }
   0x6   : > { %191 = sbr.rel (%p188_p2) target bundleno = 272 (0x110), region = 40 }
   0xb   : > { %v331_v0 = vld [vmem:[%s1928_s1 + $0x10] sm:$0xff]  ;;  %v329_v1 = vld [vmem:[%s1928_s1] sm:$0xff]  ;;  %vm269_vm0 = vcmask 1044480   ;;  %v1545_v2 = vmov 0   ;;  %v1517_v3 = vld [vmem:[%s1929_s2 + $0x8] sm:$0x3f]  }
   0xc   : > { %1516 = vset.pattern.permute.xlu1 %v1545_v2  ;;  %1515 = vset.pattern.permute.xlu0 %v1545_v2  ;;  %vm270_vm1 = vcmask 1045504   ;;  %v1546_v4 = vmov 65535   ;;  %v332_v8 = vld [vmem:[%s1928_s1 + $0x18] sm:$0x1]  ;;  %v330_v9 = vld [vmem:[%s1928_s1 + $0x8] sm:$0xff]  ;;  %v1605_v10 = vld [vmem:[%s1929_s2] sm:$0xff]  }
   0xd   : > { %345 = vperm.xlu1 %1516, %v331_v0   ;;  %335 = vperm.xlu0 %1515, %v329_v1   ;;  %v271_v5 = vsel %vm269_vm0, 4294967295, %v1546_v4  ;;  %s1934_s19 = smov (!%p215_p3, %s1282_s19), 1  ;;  %v1306_v11 = vld [vmem:[%s1928_s1 + $0x28] sm:$0xff]  ;;  %v1305_v12 = vld [vmem:[%s1928_s1 + $0x20] sm:$0xff]  ;;  %vm262_vm2 = vcmask 220160   ;;  %v1307_v16 = vld [vmem:[%s1928_s1 + $0x30] sm:$0xff] }
   0xe   : > { %v272_v6 = vsel %vm270_vm1, %v271_v5, 0  ;;  %s1504_s7 = smul.u32 144, %s1934_s19  ;;  %v1308_v15 = vld [vmem:[%s1928_s1 + $0x38] sm:$0x1]  ;;  %v1318_v21 = vld [vmem:[%s1928_s1 + $0x48] sm:$0xff]  ;;  %v1317_v22 = vld [vmem:[%s1928_s1 + $0x40] sm:$0xff] }
   0xf   : > { %v1594_v7 = vand.u32 %v1517_v3, %v272_v6  ;;  %v1320_v25 = vld [vmem:[%s1928_s1 + $0x58] sm:$0x1]  ;;  %v1319_v26 = vld [vmem:[%s1928_s1 + $0x50] sm:$0xff]  ;;  %v1330_v29 = vld [vmem:[%s1928_s1 + $0x68] sm:$0xff]  ;;  %vm1221_vm3 = vcmask 523264   ;;  %vm1225_vm4 = vcmask 516096  }
  0x10   : > { %s1625_s14 = scalar_lea.vmem %s1927_s0, %s1504_s7  ;;  %v1329_v30 = vld [vmem:[%s1928_s1 + $0x60] sm:$0xff]  ;;  %v1332_v33 = vld [vmem:[%s1928_s1 + $0x78] sm:$0x1]  ;;  %v1331_v34 = vld [vmem:[%s1928_s1 + $0x70] sm:$0xff] }
  0x11   : > { %1432 = vmatprep.subr.bf16.mxu0 %v1594_v7  ;;  %1440 = vmatprep.subr.bf16.mxu1 %v1594_v7  ;;  %v1519_v13 = vld [vmem:[%s1625_s14] sm:$0xff]   ;;  %v1520_v14 = vld [vmem:[%s1625_s14 + $0x10] sm:$0xff]   ;;  %v1521_v17 = vld [vmem:[%s1625_s14 + $0x8] sm:$0x1f]  }
  0x12   : > { %350 = vperm.xlu1 %1516, %v332_v8   ;;  %340 = vperm.xlu0 %1515, %v330_v9   ;;  %v1522_v18 = vld [vmem:[%s1625_s14 + $0x18] sm:$0x1f]   ;;  %v1523_v19 = vld [vmem:[%s1625_s14 + $0x20] sm:$0xff]   ;;  %v1524_v20 = vld [vmem:[%s1625_s14 + $0x30] sm:$0xff]  }
  0x13   : > { %1433 = vmatpush3.bf16.msra.mxu0 %v1594_v7  ;;  %1441 = vmatpush3.bf16.msra.mxu1 %v1594_v7  ;;  %v1525_v23 = vld [vmem:[%s1625_s14 + $0x28] sm:$0x1f]   ;;  %v1526_v24 = vld [vmem:[%s1625_s14 + $0x38] sm:$0x1f]   ;;  %v1527_v27 = vld [vmem:[%s1625_s14 + $0x40] sm:$0xff]  }
  0x14   : > { %1434 = vmatprep.subr.bf16.mxu0 %v1605_v10  ;;  %1442 = vmatprep.subr.bf16.mxu1 %v1605_v10  ;;  %v1528_v28 = vld [vmem:[%s1625_s14 + $0x50] sm:$0xff]   ;;  %v1529_v31 = vld [vmem:[%s1625_s14 + $0x48] sm:$0x1f]   ;;  %v1530_v32 = vld [vmem:[%s1625_s14 + $0x58] sm:$0x1f]  }
  0x15   : > { %1436 = vmatprep.mubr.msk.bf16.mxu0 %vm262_vm2, %v1519_v13  ;;  %1444 = vmatprep.mubr.msk.bf16.mxu1 %vm262_vm2, %v1520_v14  ;;  %v1531_v35 = vld [vmem:[%s1625_s14 + $0x60] sm:$0xff]   ;;  %v1532_v36 = vld [vmem:[%s1625_s14 + $0x70] sm:$0xff]   ;;  %v1342_v37 = vld [vmem:[%s1928_s1 + $0x88] sm:$0xff] }
  0x16   : > { %443 = vperm.xlu1 %1516, %v1306_v11   ;;  %438 = vperm.xlu0 %1515, %v1305_v12   ;;  %v1341_v38 = vld [vmem:[%s1928_s1 + $0x80] sm:$0xff]  ;;  %v1533_v39 = vld [vmem:[%s1625_s14 + $0x68] sm:$0x1f]   ;;  %v1534_v40 = vld [vmem:[%s1625_s14 + $0x78] sm:$0x1f]  }
  0x17   : > { %1435 = vmatpush3.bf16.msra.mxu0 %v1605_v10  ;;  %1443 = vmatpush3.bf16.msra.mxu1 %v1605_v10  ;;  %v1344_v41 = vld [vmem:[%s1928_s1 + $0x98] sm:$0x1]  ;;  %v1343_v42 = vld [vmem:[%s1928_s1 + $0x90] sm:$0xff]  ;;  %v1535_v43 = vld [vmem:[%s1625_s14 + $0x80] sm:$0xff]  }
  0x18   : > { %1448 = vmatprep.subr.bf16.mxu0 %v1594_v7  ;;  %1456 = vmatprep.subr.bf16.mxu1 %v1594_v7  ;;  %v1354_v44 = vld [vmem:[%s1928_s1 + $0xa8] sm:$0xff]  ;;  %v1353_v45 = vld [vmem:[%s1928_s1 + $0xa0] sm:$0xff]  ;;  %v1356_v47 = vld [vmem:[%s1928_s1 + $0xb8] sm:$0x1] }
  0x19   : > { %v1536_v46 = vld [vmem:[%s1625_s14 + $0x88] sm:$0x1f]   ;;  %v1355_v48 = vld [vmem:[%s1928_s1 + $0xb0] sm:$0xff]  ;;  %v1365_v50 = vld [vmem:[%s1928_s1 + $0xc0] sm:$0xff]  ;;  %s1395_s14 = sshll.u32 %s1934_s19, 5 }
  0x1a   : > { %1437 = vmatmul.mubr.msk.bf16.vlgmr.msra.gmra.mxu0 %vm262_vm2, %v1521_v17  ;;  %1445 = vmatmul.mubr.msk.bf16.vlgmr.msra.gmra.mxu1 %vm262_vm2, %v1522_v18  ;;  %v1366_v49 = vld [vmem:[%s1928_s1 + $0xc8] sm:$0xff]  ;;  %v1368_v51 = vld [vmem:[%s1928_s1 + $0xd8] sm:$0x1]  ;;  %v1367_v52 = vld [vmem:[%s1928_s1 + $0xd0] sm:$0xff]  ;;  %s224_s12 = scalar_lea.vmem %s1932_s5, %s1395_s14 }
  0x1b   : > { %453 = vperm.xlu1 %1516, %v1308_v15   ;;  %448 = vperm.xlu0 %1515, %v1307_v16   ;;  %v1378_v53 = vld [vmem:[%s1928_s1 + $0xe8] sm:$0xff]  ;;  %v1377_v54 = vld [vmem:[%s1928_s1 + $0xe0] sm:$0xff]  ;;  %v1380_v55 = vld [vmem:[%s1928_s1 + $0xf8] sm:$0x1] }
  0x1c   : > { %1449 = vmatpush3.bf16.msra.mxu0 %v1594_v7  ;;  %1457 = vmatpush3.bf16.msra.mxu1 %v1594_v7  ;;  %v1379_v56 = vld [vmem:[%s1928_s1 + $0xf0] sm:$0xff]  ;;  %v1390_v57 = vld [vmem:[%s1928_s1 + $0x108] sm:$0xff]  ;;  %v1389_v58 = vld [vmem:[%s1928_s1 + $0x100] sm:$0xff] }
  0x1d   : > { %1450 = vmatprep.subr.bf16.mxu0 %v1605_v10  ;;  %1458 = vmatprep.subr.bf16.mxu1 %v1605_v10  ;;  %v1392_v59 = vld [vmem:[%s1928_s1 + $0x118] sm:$0x1]  ;;  %v1391_v60 = vld [vmem:[%s1928_s1 + $0x110] sm:$0xff] }
  0x1e   : > { %1452 = vmatprep.mubr.msk.bf16.mxu0 %vm262_vm2, %v1523_v19  ;;  %1460 = vmatprep.mubr.msk.bf16.mxu1 %vm262_vm2, %v1524_v20 }
  0x1f   : > { %550 = vperm.xlu1 %1516, %v1318_v21   ;;  %545 = vperm.xlu0 %1515, %v1317_v22  }
  0x20   : > { %1451 = vmatpush3.bf16.msra.mxu0 %v1605_v10  ;;  %1459 = vmatpush3.bf16.msra.mxu1 %v1605_v10 }
  0x21   : > { %1464 = vmatprep.subr.bf16.mxu0 %v1594_v7  ;;  %1472 = vmatprep.subr.bf16.mxu1 %v1594_v7 }
  0x23   : > { %1453 = vmatmul.mubr.msk.bf16.vlgmr.msra.gmra.mxu0 %vm262_vm2, %v1525_v23  ;;  %1461 = vmatmul.mubr.msk.bf16.vlgmr.msra.gmra.mxu1 %vm262_vm2, %v1526_v24  ;;  %v1826_v24 = vld [vmem:[%s1930_s3] ss:$0 sm:$0xff] }
  0x24   : > { %560 = vperm.xlu1 %1516, %v1320_v25   ;;  %555 = vperm.xlu0 %1515, %v1319_v26  }
  0x25   : > { %1465 = vmatpush3.bf16.msra.mxu0 %v1594_v7  ;;  %1473 = vmatpush3.bf16.msra.mxu1 %v1594_v7 }
  0x26   : > { %1466 = vmatprep.subr.bf16.mxu0 %v1605_v10  ;;  %1474 = vmatprep.subr.bf16.mxu1 %v1605_v10 }
  0x27   : > { %1468 = vmatprep.mubr.msk.bf16.mxu0 %vm262_vm2, %v1527_v27  ;;  %1476 = vmatprep.mubr.msk.bf16.mxu1 %vm262_vm2, %v1528_v28 }
  0x28   : > { %657 = vperm.xlu1 %1516, %v1330_v29   ;;  %652 = vperm.xlu0 %1515, %v1329_v30  }
  0x29   : > { %1467 = vmatpush3.bf16.msra.mxu0 %v1605_v10  ;;  %1475 = vmatpush3.bf16.msra.mxu1 %v1605_v10 }
  0x2a   : > { %1480 = vmatprep.subr.bf16.mxu0 %v1594_v7  ;;  %1488 = vmatprep.subr.bf16.mxu1 %v1594_v7 }
  0x2c   : > { %1469 = vmatmul.mubr.msk.bf16.vlgmr.msra.gmra.mxu0 %vm262_vm2, %v1529_v31  ;;  %1477 = vmatmul.mubr.msk.bf16.vlgmr.msra.gmra.mxu1 %vm262_vm2, %v1530_v32 }
  0x2d   : > { %667 = vperm.xlu1 %1516, %v1332_v33   ;;  %662 = vperm.xlu0 %1515, %v1331_v34  }
  0x2e   : > { %1481 = vmatpush3.bf16.msra.mxu0 %v1594_v7  ;;  %1489 = vmatpush3.bf16.msra.mxu1 %v1594_v7 }
  0x2f   : > { %1482 = vmatprep.subr.bf16.mxu0 %v1605_v10  ;;  %1490 = vmatprep.subr.bf16.mxu1 %v1605_v10 }
  0x30   : > { %1484 = vmatprep.mubr.msk.bf16.mxu0 %vm262_vm2, %v1531_v35  ;;  %1492 = vmatprep.mubr.msk.bf16.mxu1 %vm262_vm2, %v1532_v36 }
  0x31   : > { %764 = vperm.xlu1 %1516, %v1342_v37   ;;  %759 = vperm.xlu0 %1515, %v1341_v38  }
  0x32   : > { %1483 = vmatpush3.bf16.msra.mxu0 %v1605_v10  ;;  %1491 = vmatpush3.bf16.msra.mxu1 %v1605_v10 }
  0x33   : > { %1496 = vmatprep.subr.bf16.mxu0 %v1594_v7 }
  0x35   : > { %1485 = vmatmul.mubr.msk.bf16.vlgmr.msra.gmra.mxu0 %vm262_vm2, %v1533_v39  ;;  %1493 = vmatmul.mubr.msk.bf16.vlgmr.msra.gmra.mxu1 %vm262_vm2, %v1534_v40 }
  0x36   : > { %774 = vperm.xlu1 %1516, %v1344_v41   ;;  %769 = vperm.xlu0 %1515, %v1343_v42  }
  0x37   : > { %1497 = vmatpush3.bf16.msra.mxu0 %v1594_v7  ;;  %1500 = vmatprep.mubr.msk.bf16.mxu0 %vm262_vm2, %v1535_v43 }
  0x38   : > { %1498 = vmatprep.subr.bf16.mxu0 %v1605_v10 }
  0x3a   : > { %871 = vperm.xlu1 %1516, %v1354_v44   ;;  %866 = vperm.xlu0 %1515, %v1353_v45  }
  0x3b   : > { %1499 = vmatpush3.bf16.msra.mxu0 %v1605_v10 }
  0x3e   : > { %1501 = vmatmul.mubr.msk.bf16.vlgmr.msra.gmra.mxu0 %vm262_vm2, %v1536_v46  ;;  %881 = vperm.xlu1 %1516, %v1356_v47  }
  0x3f   : > { %876 = vperm.xlu0 %1515, %v1355_v48  }
  0x42   : > { %978 = vperm.xlu1 %1516, %v1366_v49  }
  0x43   : > { %973 = vperm.xlu0 %1515, %v1365_v50  }
  0x46   : > { %988 = vperm.xlu1 %1516, %v1368_v51  }
  0x47   : > { %983 = vperm.xlu0 %1515, %v1367_v52  }
  0x4a   : > { %1085 = vperm.xlu1 %1516, %v1378_v53  }
  0x4b   : > { %1080 = vperm.xlu0 %1515, %v1377_v54  }
  0x4e   : > { %1095 = vperm.xlu1 %1516, %v1380_v55  }
  0x4f   : > { %1090 = vperm.xlu0 %1515, %v1379_v56  }
  0x52   : > { %1192 = vperm.xlu1 %1516, %v1390_v57  }
  0x53   : > { %1187 = vperm.xlu0 %1515, %v1389_v58  }
  0x56   : > { %1202 = vperm.xlu1 %1516, %v1392_v59  }
  0x57   : > { %1197 = vperm.xlu0 %1515, %v1391_v60  }
  0x88   : > { %v336_v61 = vpop.permute.xlu0 %335  ;;  %v346_v62 = vpop.permute.xlu1 %345 }
  0x8d   : > { %v1783_v63 = vpop.permute.xlu0 %340  ;;  %v1785_v0 = vpop.permute.xlu1 %350 }
  0x91   : > { %v1787_v1 = vpop.permute.xlu0 %438  ;;  %v1789_v2 = vpop.permute.xlu1 %443 }
  0x96   : > { %v449_v3 = vpop.permute.xlu0 %448  ;;  %v1791_v4 = vpop.permute.xlu1 %453 }
  0x9a   : > { %v1793_v5 = vpop.permute.xlu0 %545  ;;  %v1795_v6 = vpop.permute.xlu1 %550 }
  0x9f   : > { %v1797_v7 = vpop.permute.xlu0 %555  ;;  %v1799_v8 = vpop.permute.xlu1 %560 }
  0xa3   : > { %v1801_v9 = vpop.permute.xlu0 %652  ;;  %v1803_v10 = vpop.permute.xlu1 %657 }
  0xa8   : > { %v1805_v11 = vpop.permute.xlu0 %662  ;;  %v1807_v12 = vpop.permute.xlu1 %667 }
  0xac   : > { %v1809_v13 = vpop.permute.xlu0 %759  ;;  %v1811_v14 = vpop.permute.xlu1 %764 }
  0xb1   : > { %v1813_v15 = vpop.permute.xlu0 %769  ;;  %v1815_v16 = vpop.permute.xlu1 %774 }
  0xb5   : > { %v1817_v17 = vpop.permute.xlu0 %866  ;;  %v1819_v18 = vpop.permute.xlu1 %871 }
  0xb9   : > { %v1828_v27 = vpop.permute.xlu1 %881 }
  0xba   : > { %v1821_v21 = vpop.permute.xlu0 %876 }
  0xbd   : > { %v1841_v47 = vpop.permute.xlu1 %978 }
  0xbe   : > { %v1833_v33 = vpop.permute.xlu0 %973 }
  0xc2   : > { %v1844_v54 = vpop.permute.xlu0 %983 }
  0xda   : > { %v1438_v19 = vpop.f32.mrf.mxu0  ;;  %v1446_v20 = vpop.f32.mrf.mxu1 }
  0xdb   : > { %v319_v28 = vadd.f32 %v1438_v19, %v1826_v24  ;;  %v421_v29 = vadd.f32 %v1446_v20, %v1826_v24 }
  0xdc   : > { %v310_v22 = vpop.f32.mrf.mxu0  ;;  %v412_v23 = vpop.f32.mrf.mxu1 }
  0xdd   : > { %v311_v32 = vadd.f32 %v1826_v24, %v310_v22  ;;  %v413_v34 = vadd.f32 %v1826_v24, %v412_v23  ;;  %v327_v39 = vmax.f32 %v319_v28, 0.0  ;;  %v429_v40 = vmax.f32 %v421_v29, 0.0 }
  0xde   : > { %v1439_v25 = vpop.f32.mrf.mxu0  ;;  %v1447_v26 = vpop.f32.mrf.mxu1 }
  0xdf   : > { %v322_v35 = vadd.f32 %v1439_v25, %v1826_v24  ;;  %v424_v36 = vadd.f32 %v1447_v26, %v1826_v24  ;;  %v325_v42 = vmax.f32 %v311_v32, 0.0  ;;  %v427_v48 = vmax.f32 %v413_v34, 0.0 }
  0xe0   : > { %v313_v30 = vpop.f32.mrf.mxu0  ;;  %v415_v31 = vpop.f32.mrf.mxu1  ;;  %v355_v55 = vadd.f32 %v346_v62, %v327_v39  ;;  %v458_v56 = vadd.f32 %v449_v3, %v429_v40 }
  0xe1   : > { %v314_v43 = vadd.f32 %v1826_v24, %v313_v30  ;;  %v416_v44 = vadd.f32 %v1826_v24, %v415_v31  ;;  %v328_v50 = vmax.f32 %v322_v35, 0.0  ;;  %v430_v51 = vmax.f32 %v424_v36, 0.0  ;;  %v1854_v36 = vpop.permute.xlu1 %988 }
  0xe2   : > { %v353_v59 = vadd.f32 %v336_v61, %v325_v42  ;;  %v456_v23 = vadd.f32 %v1787_v1, %v427_v48  ;;  %v462_v30 = vmax.f32 %v355_v55, %v458_v56 }
  0xe3   : > { %v1454_v37 = vpop.f32.mrf.mxu0  ;;  %v1462_v38 = vpop.f32.mrf.mxu1  ;;  %v326_v60 = vmax.f32 %v314_v43, 0.0  ;;  %v428_v19 = vmax.f32 %v416_v44, 0.0  ;;  %v356_v29 = vadd.f32 %v1785_v0, %v328_v50  ;;  %v459_v62 = vadd.f32 %v1791_v4, %v430_v51 }
  0xe4   : > { %v528_v41 = vadd.f32 %v1454_v37, %v1826_v24  ;;  %v635_v25 = vadd.f32 %v1462_v38, %v1826_v24  ;;  %v460_v4 = vmax.f32 %v353_v59, %v456_v23  ;;  %v1862_v43 = vpop.permute.xlu0 %1080 }
  0xe5   : > { %v519_v45 = vpop.f32.mrf.mxu0  ;;  %v626_v46 = vpop.f32.mrf.mxu1  ;;  %v354_v1 = vadd.f32 %v1783_v63, %v326_v60  ;;  %v457_v37 = vadd.f32 %v1789_v2, %v428_v19  ;;  %v463_v44 = vmax.f32 %v356_v29, %v459_v62 }
  0xe6   : > { %v520_v49 = vadd.f32 %v1826_v24, %v519_v45  ;;  %v536_v57 = vmax.f32 %v528_v41, 0.0  ;;  %v627_v61 = vadd.f32 %v1826_v24, %v626_v46  ;;  %v643_v39 = vmax.f32 %v635_v25, 0.0  ;;  %v1873_v25 = vpop.permute.xlu1 %1085 }
  0xe7   : > { %v1455_v52 = vpop.f32.mrf.mxu0  ;;  %v1463_v53 = vpop.f32.mrf.mxu1 }
  0xe8   : > { %v531_v58 = vadd.f32 %v1455_v52, %v1826_v24  ;;  %v534_v26 = vmax.f32 %v520_v49, 0.0  ;;  %v565_v31 = vadd.f32 %v1797_v7, %v536_v57  ;;  %v638_v38 = vadd.f32 %v1463_v53, %v1826_v24 }
  0xe9   : > { %v522_v20 = vpop.f32.mrf.mxu0  ;;  %v629_v22 = vpop.f32.mrf.mxu1  ;;  %v641_v48 = vmax.f32 %v627_v61, 0.0  ;;  %v461_v52 = vmax.f32 %v354_v1, %v457_v37  ;;  %v672_v57 = vadd.f32 %v1805_v11, %v643_v39 }
  0xea   : > { %v523_v28 = vadd.f32 %v1826_v24, %v522_v20  ;;  %v537_v3 = vmax.f32 %v531_v58, 0.0  ;;  %v563_v40 = vadd.f32 %v1793_v5, %v534_v26  ;;  %v630_v7 = vadd.f32 %v1826_v24, %v629_v22 }
  0xeb   : > { %v569_v46 = vmax.f32 %v462_v30, %v565_v31  ;;  %v644_v53 = vmax.f32 %v638_v38, 0.0 }
  0xec   : > { %v535_v32 = vmax.f32 %v523_v28, 0.0  ;;  %v1470_v34 = vpop.f32.mrf.mxu0  ;;  %v1478_v35 = vpop.f32.mrf.mxu1  ;;  %v566_v45 = vadd.f32 %v1799_v8, %v537_v3  ;;  %v567_v58 = vmax.f32 %v460_v4, %v563_v40  ;;  %v642_v8 = vmax.f32 %v630_v7, 0.0 }
  0xed   : > { %v742_v0 = vadd.f32 %v1470_v34, %v1826_v24  ;;  %v849_v50 = vadd.f32 %v1478_v35, %v1826_v24  ;;  %v676_v26 = vmax.f32 %v569_v46, %v672_v57  ;;  %v670_v28 = vadd.f32 %v1801_v9, %v641_v48  ;;  %v1096_v46 = vpop.permute.xlu1 %1095 }
  0xee   : > { %v733_v41 = vpop.f32.mrf.mxu0  ;;  %v840_v42 = vpop.f32.mrf.mxu1  ;;  %v564_v49 = vadd.f32 %v1795_v6, %v535_v32  ;;  %v570_v20 = vmax.f32 %v463_v44, %v566_v45  ;;  %v673_v11 = vadd.f32 %v1807_v12, %v644_v53  ;;  %v671_v35 = vadd.f32 %v1803_v10, %v642_v8 }
  0xef   : > { %v750_v63 = vmax.f32 %v742_v0, 0.0  ;;  %v734_v2 = vadd.f32 %v1826_v24, %v733_v41  ;;  %v841_v59 = vadd.f32 %v1826_v24, %v840_v42  ;;  %v857_v62 = vmax.f32 %v849_v50, 0.0 }
  0xf0   : > { %v1471_v51 = vpop.f32.mrf.mxu0  ;;  %v1479_v5 = vpop.f32.mrf.mxu1  ;;  %v568_v29 = vmax.f32 %v461_v52, %v564_v49  ;;  %v674_v34 = vmax.f32 %v567_v58, %v670_v28  ;;  %v677_v38 = vmax.f32 %v570_v20, %v673_v11 }
  0xf1   : > { %v748_v55 = vmax.f32 %v734_v2, 0.0  ;;  %v745_v56 = vadd.f32 %v1471_v51, %v1826_v24  ;;  %v779_v6 = vadd.f32 %v1813_v15, %v750_v63  ;;  %v852_v30 = vadd.f32 %v1479_v5, %v1826_v24  ;;  %v1091_v15 = vpop.permute.xlu0 %1090 }
  0xf2   : > { %v736_v60 = vpop.f32.mrf.mxu0  ;;  %v843_v19 = vpop.f32.mrf.mxu1  ;;  %v855_v1 = vmax.f32 %v841_v59, 0.0  ;;  %v675_v39 = vmax.f32 %v568_v29, %v671_v35  ;;  %v886_v40 = vadd.f32 %v1821_v21, %v857_v62 }
  0xf3   : > { %v751_v22 = vmax.f32 %v745_v56, 0.0  ;;  %v737_v23 = vadd.f32 %v1826_v24, %v736_v60  ;;  %v777_v3 = vadd.f32 %v1809_v13, %v748_v55  ;;  %v783_v9 = vmax.f32 %v676_v26, %v779_v6  ;;  %v1193_v29 = vpop.permute.xlu1 %1192 }
  0xf4   : > { %v844_v12 = vadd.f32 %v1826_v24, %v843_v19  ;;  %v858_v44 = vmax.f32 %v852_v30, 0.0 }
  0xf5   : > { %v749_v31 = vmax.f32 %v737_v23, 0.0  ;;  %v1486_v61 = vpop.f32.mrf.mxu0  ;;  %v1494_v32 = vpop.f32.mrf.mxu1  ;;  %v780_v0 = vadd.f32 %v1815_v16, %v751_v22  ;;  %v781_v42 = vmax.f32 %v674_v34, %v777_v3  ;;  %v884_v16 = vadd.f32 %v1817_v17, %v855_v1 }
  0xf6   : > { %v956_v37 = vadd.f32 %v1486_v61, %v1826_v24  ;;  %v1063_v45 = vadd.f32 %v1494_v32, %v1826_v24  ;;  %v890_v21 = vmax.f32 %v783_v9, %v886_v40  ;;  %v856_v5 = vmax.f32 %v844_v12, 0.0 }
  0xf7   : > { %v947_v4 = vpop.f32.mrf.mxu0  ;;  %v1054_v13 = vpop.f32.mrf.mxu1  ;;  %v778_v10 = vadd.f32 %v1811_v14, %v749_v31  ;;  %v784_v51 = vmax.f32 %v677_v38, %v780_v0  ;;  %v888_v8 = vmax.f32 %v781_v42, %v884_v16  ;;  %v887_v59 = vadd.f32 %v1828_v27, %v858_v44 }
  0xf8   : > { %v964_v7 = vmax.f32 %v956_v37, 0.0  ;;  %v948_v41 = vadd.f32 %v1826_v24, %v947_v4  ;;  %v1055_v49 = vadd.f32 %v1826_v24, %v1054_v13  ;;  %v1188_v14 = vpop.permute.xlu0 %1187  ;;  %v1071_v19 = vmax.f32 %v1063_v45, 0.0  ;;  %v1203_v42 = vpop.permute.xlu1 %1202  ;;  %v1213_v45 = vld [vmem:[%s1931_s4] sm:$0xff] }
  0xf9   : > { %v1487_v63 = vpop.f32.mrf.mxu0  ;;  %v1495_v2 = vpop.f32.mrf.mxu1  ;;  %v782_v60 = vmax.f32 %v675_v39, %v778_v10  ;;  %v885_v26 = vadd.f32 %v1819_v18, %v856_v5  ;;  %v891_v62 = vmax.f32 %v784_v51, %v887_v59 }
  0xfa   : > { %v962_v48 = vmax.f32 %v948_v41, 0.0  ;;  %v959_v50 = vadd.f32 %v1487_v63, %v1826_v24  ;;  %v993_v52 = vadd.f32 %v1844_v54, %v964_v7  ;;  %v1066_v58 = vadd.f32 %v1495_v2, %v1826_v24 }
  0xfb   : > { %v950_v53 = vpop.f32.mrf.mxu0  ;;  %v1057_v55 = vpop.f32.mrf.mxu1  ;;  %v1069_v20 = vmax.f32 %v1055_v49, 0.0  ;;  %v1100_v31 = vadd.f32 %v1091_v15, %v1071_v19  ;;  %v889_v34 = vmax.f32 %v782_v60, %v885_v26  ;;  %v1215_v15 = vld [vmem:[%s1931_s4 + $0x10] sm:$0xff] }
  0xfc   : > { %v991_v56 = vadd.f32 %v1833_v33, %v962_v48  ;;  %v965_v57 = vmax.f32 %v959_v50, 0.0  ;;  %v951_v17 = vadd.f32 %v1826_v24, %v950_v53  ;;  %v1058_v54 = vadd.f32 %v1826_v24, %v1057_v55  ;;  %v1198_v32 = vpop.permute.xlu0 %1197 }
  0xfd   : > { %v997_v33 = vmax.f32 %v890_v21, %v993_v52  ;;  %v1072_v3 = vmax.f32 %v1066_v58, 0.0  ;;  %v1098_v35 = vadd.f32 %v1862_v43, %v1069_v20  ;;  %v1214_v21 = vld [vmem:[%s1931_s4 + $0x8] sm:$0xff] }
  0xfe   : > { %v994_v6 = vadd.f32 %v1854_v36, %v965_v57  ;;  %v963_v22 = vmax.f32 %v951_v17, 0.0  ;;  %v1502_v23 = vpop.f32.mrf.mxu0  ;;  %v995_v11 = vmax.f32 %v888_v8, %v991_v56  ;;  %v1070_v1 = vmax.f32 %v1058_v54, 0.0 }
  0xff   : > { %v1170_v28 = vadd.f32 %v1502_v23, %v1826_v24  ;;  %v1104_v38 = vmax.f32 %v997_v33, %v1100_v31 }
 0x100   : > { %v992_v27 = vadd.f32 %v1841_v47, %v963_v22  ;;  %v1161_v30 = vpop.f32.mrf.mxu0  ;;  %v998_v18 = vmax.f32 %v891_v62, %v994_v6  ;;  %v1102_v4 = vmax.f32 %v995_v11, %v1098_v35  ;;  %v1101_v47 = vadd.f32 %v1096_v46, %v1072_v3 }
 0x101   : > { %v1178_v61 = vmax.f32 %v1170_v28, 0.0  ;;  %v1162_v36 = vadd.f32 %v1826_v24, %v1161_v30  ;;  %v1099_v10 = vadd.f32 %v1873_v25, %v1070_v1 }
 0x102   : > { %v1503_v37 = vpop.f32.mrf.mxu0  ;;  %v996_v13 = vmax.f32 %v889_v34, %v992_v27  ;;  %v1105_v44 = vmax.f32 %v998_v18, %v1101_v47 }
 0x103   : > { %v1207_v9 = vadd.f32 %v1198_v32, %v1178_v61  ;;  %v1176_v0 = vmax.f32 %v1162_v36, 0.0  ;;  %v1173_v12 = vadd.f32 %v1503_v37, %v1826_v24 }
 0x104   : > { %v1164_v39 = vpop.f32.mrf.mxu0  ;;  %v1103_v48 = vmax.f32 %v996_v13, %v1099_v10 }
 0x105   : > { %v1211_v40 = vmax.f32 %v1104_v38, %v1207_v9  ;;  %v1205_v7 = vadd.f32 %v1188_v14, %v1176_v0  ;;  %v1179_v43 = vmax.f32 %v1173_v12, 0.0  ;;  %v1165_v41 = vadd.f32 %v1826_v24, %v1164_v39  ;;  %v1216_v24 = vld [vmem:[%s1931_s4 + $0x18] sm:$0x1] }
 0x107   : > { %v1219_v63 = vadd.f32 %v1215_v15, %v1211_v40  ;;  %v1209_v2 = vmax.f32 %v1102_v4, %v1205_v7  ;;  %v1208_v46 = vadd.f32 %v1203_v42, %v1179_v43  ;;  %v1177_v16 = vmax.f32 %v1165_v41, 0.0 }
 0x109   : > { %1224 = vst.msk [vmem:[%s224_s12 + $0x10] sm:$0xff] %vm1221_vm3, %v1219_v63  ;;  %v1217_v25 = vadd.f32 %v1213_v45, %v1209_v2  ;;  %v1212_v49 = vmax.f32 %v1105_v44, %v1208_v46  ;;  %v1206_v50 = vadd.f32 %v1193_v29, %v1177_v16 }
 0x10b   : > { %1222 = vst.msk [vmem:[%s224_s12] sm:$0xff] %vm1221_vm3, %v1217_v25  ;;  %v1220_v51 = vadd.f32 %v1216_v24, %v1212_v49  ;;  %v1210_v5 = vmax.f32 %v1103_v48, %v1206_v50 }
 0x10d   : > { %1226 = vst.msk [vmem:[%s224_s12 + $0x18] sm:$0x1] %vm1225_vm4, %v1220_v51  ;;  %v1218_v52 = vadd.f32 %v1214_v21, %v1210_v5 }
 0x10f   : > { %1223 = vst.msk [vmem:[%s224_s12 + $0x8] sm:$0xff] %vm1221_vm3, %v1218_v52 }
 0x110 PF: > { %s15_s18 = sadd.s32 1, %s1543_s18  }
 0x111   : > { %p12_p4 = scmp.ge.s32.totalorder %s15_s18, 4  }
 0x113   :  { %14 = sbr.rel (!%p12_p4) target bundleno = 1 (0x1), region = 86 }

// kernel: cct_forward.5
= control target key start
LH: loop header
LB: loop body
LE: loop exit
PB: predicated region body
PF: predicated region fallthrough
CT: control target
= control target key end

     0   :  { %vm44_vm0 = vcmask 516096   ;;  %vm34_vm1 = vcmask 523264   ;;  %s718_s0 = inlined_call_operand.vmem [shape: f32[2,25,64], index: 0, kind: input, shape index: {}]   ;;  %s719_s1 = inlined_call_operand.vmem [shape: f32[1,1,64], index: 1, kind: input, shape index: {}]   ;;  %s720_s2 = inlined_call_operand.vmem [shape: bf16[64,10], index: 2, kind: input, shape index: {}]   ;;  %s721_s3 = inlined_call_operand.vmem [shape: f32[1,10], index: 3, kind: input, shape index: {}]   ;;  %s722_s4 = inlined_call_operand.hbm [shape: f32[2,1,10], index: 4, kind: output, shape index: {}]  }
   0x1   :  { %v455_v0 = vld [vmem:[%s719_s1] ss:$0 sm:$0xff]  ;;  %v23_v1 = vld [vmem:[%s718_s0 + $0x18] sm:$0x1]  ;;  %v21_v6 = vld [vmem:[%s718_s0 + $0x8] sm:$0xff] }
   0x2   :  { %v20_v2 = vld [vmem:[%s718_s0] sm:$0xff]  ;;  %v33_v3 = vmul.f32 %v455_v0, %v23_v1  ;;  %v465_v5 = vld [vmem:[%s718_s0 + $0x38] sm:$0x1]  ;;  %v22_v7 = vld [vmem:[%s718_s0 + $0x10] sm:$0xff]  ;;  %v31_v9 = vmul.f32 %v455_v0, %v21_v6 }
   0x3   :  { %v30_v4 = vmul.f32 %v455_v0, %v20_v2  ;;  %v244_v8 = vmul.f32 %v465_v5, %v455_v0  ;;  %v32_v10 = vmul.f32 %v455_v0, %v22_v7  ;;  %v637_v11 = vld [vmem:[%s718_s0 + $0x20] sm:$0xff]  ;;  %v645_v15 = vld [vmem:[%s718_s0 + $0x28] sm:$0xff]  ;;  %v464_v16 = vld [vmem:[%s718_s0 + $0x30] sm:$0xff] }
   0x4   :  { %v45_v12 = vsel %vm44_vm0, %v33_v3, 0.0  ;;  %v241_v14 = vmul.f32 %v637_v11, %v455_v0  ;;  %v38_v18 = vsel %vm34_vm1, %v31_v9, 0.0  ;;  %v242_v21 = vmul.f32 %v645_v15, %v455_v0 }
   0x5   :  { %v35_v13 = vsel %vm34_vm1, %v30_v4, 0.0  ;;  %46 = vadd.xlane.f32.xlu0 %v45_v12  ;;  %v254_v17 = vsel %vm44_vm0, %v244_v8, 0.0  ;;  %v41_v19 = vsel %vm34_vm1, %v32_v10, 0.0  ;;  %v243_v22 = vmul.f32 %v464_v16, %v455_v0 }
   0x6   :  { %36 = vadd.xlane.f32.xlu1 %v35_v13  ;;  %v245_v20 = vsel %vm34_vm1, %v241_v14, 0.0 }
   0x9   :  { %255 = vadd.xlane.f32.xlu0 %v254_v17 }
   0xa   :  { %39 = vadd.xlane.f32.xlu1 %v38_v18 }
   0xb   :  { %9 = vsyncpa [#allocation3], 0  ;;  %v248_v23 = vsel %vm34_vm1, %v242_v21, 0.0  ;;  %v251_v24 = vsel %vm34_vm1, %v243_v22, 0.0  ;;  %v89_v25 = vpack.c.bf16 %v23_v1, %v22_v7  ;;  %vm110_vm2 = vcmask 1043456   ;;  %s588_s24 = smov [#allocation2]  }
   0xc   :  { %vm111_vm3 = vcmask 1044480   ;;  %v585_v26 = vmov 0.0   ;;  %v297_v27 = vpack.c.bf16 %v465_v5, %v464_v16  ;;  %v586_v28 = vmov 65535   ;;  %s444_s1 = sshll.u32 %s588_s24, 4  ;;  %s445_s1 = int_to_ptr.vmem [resolvable:$true] %s444_s1 }
   0xd   :  { %42 = vadd.xlane.f32.xlu0 %v41_v19  ;;  %488 = vmatprep.subr.bf16.mxu1 %v585_v26  ;;  %v112_v29 = vsel %vm110_vm2, 4294967295, %v586_v28  ;;  %vm587_vm4 = vmmov 0   ;;  %v88_v33 = vpack.c.bf16 %v21_v6, %v20_v2  ;;  %vm48_vm5 = vcmask 1040384   ;;  %s563_s25 = scalar_lea.vmem %s445_s1, 32  ;;  %p568_p1 = scmp.lt.s32.totalorder %s445_s1, %s445_s1 }
   0xe   :  { %246 = vadd.xlane.f32.xlu1 %v245_v20  ;;  %508 = vmatprep.subr.bf16.mxu0 %v585_v26  ;;  %v113_v30 = vsel %vm111_vm3, %v112_v29, 0  ;;  %vm106_vm6 = vcmask 203776   ;;  %vm234_vm7 = vcmask 73728   ;;  %p564_p0 = scmp.ne.s32.totalorder %s445_s1, %s563_s25  ;;  %p569_p2 = scmp.lt.s32.totalorder %s563_s25, %s563_s25 }
   0xf   :  { %492 = vmatprep.mubr.msk.bf16.mxu1 %vm587_vm4, %v585_v26  ;;  %512 = vmatprep.mubr.msk.bf16.mxu0 %vm587_vm4, %v585_v26  ;;  %v115_v31 = vand.u32 %v113_v30, %v89_v25  ;;  %v318_v32 = vand.u32 %v297_v27, %v113_v30 }
  0x10   :  { %p570_p3 = por %p569_p2, %p568_p1 }
  0x11   :  { %249 = vadd.xlane.f32.xlu0 %v248_v23  ;;  %489 = vmatpush3.bf16.msra.mxu1 %v115_v31 }
  0x12   :  { %252 = vadd.xlane.f32.xlu1 %v251_v24  ;;  %509 = vmatpush3.bf16.msra.mxu0 %v318_v32  ;;  %v296_v32 = vpack.c.bf16 %v645_v15, %v637_v11  ;;  %p571_p4 = pnand %p570_p3, %p564_p0 }
  0x13   :  { %490 = vmatprep.subr.bf16.mxu1 %v585_v26  ;;  %510 = vmatprep.subr.bf16.mxu0 %v585_v26 }
  0x15   :  { %491 = vmatpush3.bf16.msra.mxu1 %v88_v33 }
  0x16   :  { %496 = vmatprep.subr.bf16.mxu1 %v585_v26  ;;  %511 = vmatpush3.bf16.msra.mxu0 %v296_v32 }
  0x17   :  { %516 = vmatprep.subr.bf16.mxu0 %v585_v26 }
  0x8e   :  { %v47_v34 = vpop.xlane.xlu0 %46 }
  0x8f   :  { %v37_v35 = vpop.xlane.xlu1 %36  ;;  %v49_v38 = vsel %vm48_vm5, %v47_v34, -inf }
  0x92   :  { %v256_v36 = vpop.xlane.xlu0 %255 }
  0x93   :  { %v40_v37 = vpop.xlane.xlu1 %39  ;;  %v257_v44 = vsel %vm48_vm5, %v256_v36, -inf }
  0x94   :  { %v50_v41 = vmax.f32 %v37_v35, %v40_v37 }
  0x96   :  { %v43_v39 = vpop.xlane.xlu0 %42 }
  0x97   :  { %v247_v40 = vpop.xlane.xlu1 %246  ;;  %v51_v42 = vmax.f32 %v43_v39, %v49_v38 }
  0x99   :  { %v52_v43 = vmax.f32 %v50_v41, %v51_v42 }
  0x9a   :  { %v250_v45 = vpop.xlane.xlu0 %249 }
  0x9b   :  { %v253_v46 = vpop.xlane.xlu1 %252  ;;  %v53_v47 = vrot.slane %v52_v43, 4  ;;  %v258_v48 = vmax.f32 %v247_v40, %v250_v45 }
  0x9c   :  { %v259_v49 = vmax.f32 %v253_v46, %v257_v44 }
  0x9d   :  { %v54_v50 = vmax.f32 %v52_v43, %v53_v47 }
  0x9e   :  { %v260_v51 = vmax.f32 %v258_v48, %v259_v49 }
  0x9f   :  { %v55_v52 = vrot.slane %v54_v50, 2 }
  0xa0   :  { %v261_v53 = vrot.slane %v260_v51, 4 }
  0xa1   :  { %v56_v54 = vmax.f32 %v54_v50, %v55_v52 }
  0xa2   :  { %v262_v55 = vmax.f32 %v260_v51, %v261_v53 }
  0xa3   :  { %v57_v56 = vrot.slane %v56_v54, 1 }
  0xa4   :  { %v263_v57 = vrot.slane %v262_v55, 2 }
  0xa5   :  { %v58_v58 = vmax.f32 %v56_v54, %v57_v56 }
  0xa6   :  { %v264_v59 = vmax.f32 %v262_v55, %v263_v57 }
  0xa7   :  { %v59_v60 = vsub.f32 %v37_v35, %v58_v58  ;;  %v60_v61 = vsub.f32 %v40_v37, %v58_v58  ;;  %v61_v62 = vsub.f32 %v43_v39, %v58_v58  ;;  %v62_v63 = vsub.f32 %v47_v34, %v58_v58  ;;  %v535_v58 = vld [vmem:[%s720_s2 + $0x18] sm:$0xff]  }
  0xa8   :  { %v265_v0 = vrot.slane %v264_v59, 1 }
  0xa9   :  { %v63_v1 = vmul.f32 1.442695, %v59_v60  ;;  %v65_v2 = vmul.f32 1.442695, %v60_v61  ;;  %v67_v3 = vmul.f32 1.442695, %v61_v62 }
  0xaa   :  { %v69_v4 = vmul.f32 1.442695, %v62_v63  ;;  %v266_v5 = vmax.f32 %v264_v59, %v265_v0  ;;  %v536_v60 = vld [vmem:[%s720_s2 + $0x10] sm:$0xff]   ;;  %v537_v61 = vld [vmem:[%s720_s2 + $0x18] sm:$0xff]   ;;  %v538_v63 = vld [vmem:[%s720_s2 + $0x8] sm:$0xff]  }
  0xab   :  { %543 = vpow2.f32 %v63_v1  ;;  %v539_v0 = vld [vmem:[%s720_s2 + $0x10] sm:$0xff]   ;;  %v540_v1 = vld [vmem:[%s720_s2] sm:$0xff]  }
  0xac   :  { %545 = vpow2.f32 %v65_v2  ;;  %v267_v6 = vsub.f32 %v247_v40, %v266_v5  ;;  %v268_v7 = vsub.f32 %v250_v45, %v266_v5  ;;  %v269_v8 = vsub.f32 %v253_v46, %v266_v5  ;;  %v541_v2 = vld [vmem:[%s720_s2 + $0x8] sm:$0xff]  }
  0xad   :  { %547 = vpow2.f32 %v67_v3  ;;  %v270_v9 = vsub.f32 %v256_v36, %v266_v5  ;;  %v542_v3 = vld [vmem:[%s720_s2] sm:$0xff]  }
  0xae   :  { %549 = vpow2.f32 %v69_v4  ;;  %v271_v10 = vmul.f32 1.442695, %v267_v6  ;;  %v273_v12 = vmul.f32 1.442695, %v268_v7  ;;  %v275_v13 = vmul.f32 1.442695, %v269_v8 }
  0xaf   :  { %v277_v14 = vmul.f32 1.442695, %v270_v9 }
  0xb0   :  { %551 = vpow2.f32 %v271_v10 }
  0xb1   :  { %553 = vpow2.f32 %v273_v12 }
  0xb2   :  { %555 = vpow2.f32 %v275_v13 }
  0xb3   :  { %557 = vpow2.f32 %v277_v14 }
  0xb8   :  { %v544_v16 = vpop.eup %543 }
  0xb9   :  { %v546_v17 = vpop.eup %545 }
  0xba   :  { %v548_v18 = vpop.eup %547  ;;  %v71_v19 = vadd.f32 %v546_v17, %v544_v16 }
  0xbb   :  { %v550_v20 = vpop.eup %549 }
  0xbc   :  { %v72_v21 = vadd.f32 %v548_v18, %v71_v19  ;;  %v73_v23 = vsel %vm48_vm5, %v550_v20, 0.0  ;;  %v369_v19 = vld [vmem:[%s721_s3] sm:$0x1] }
  0xbd   :  { %v552_v22 = vpop.eup %551 }
  0xbe   :  { %v554_v24 = vpop.eup %553  ;;  %v74_v25 = vadd.f32 %v73_v23, %v72_v21 }
  0xbf   :  { %v556_v27 = vpop.eup %555  ;;  %v279_v28 = vadd.f32 %v554_v24, %v552_v22 }
  0xc0   :  { %v558_v29 = vpop.eup %557  ;;  %v75_v30 = vrot.slane %v74_v25, 4 }
  0xc1   :  { %v280_v31 = vadd.f32 %v556_v27, %v279_v28  ;;  %v281_v34 = vsel %vm48_vm5, %v558_v29, 0.0 }
  0xc2   :  { %v76_v33 = vadd.f32 %v75_v30, %v74_v25 }
  0xc3   :  { %v282_v35 = vadd.f32 %v281_v34, %v280_v31 }
  0xc4   :  { %v77_v36 = vrot.slane %v76_v33, 2 }
  0xc5   :  { %v283_v37 = vrot.slane %v282_v35, 4 }
  0xc6   :  { %v78_v38 = vadd.f32 %v77_v36, %v76_v33 }
  0xc7   :  { %v284_v39 = vadd.f32 %v283_v37, %v282_v35 }
  0xc8   :  { %v79_v40 = vrot.slane %v78_v38, 1 }
  0xc9   :  { %v285_v41 = vrot.slane %v284_v39, 2 }
  0xca   :  { %v80_v42 = vadd.f32 %v79_v40, %v78_v38 }
  0xcb   :  { %v286_v43 = vadd.f32 %v285_v41, %v284_v39 }
  0xcc   :  { %559 = vrcp.f32 %v80_v42 }
  0xcd   :  { %v287_v44 = vrot.slane %v286_v43, 1 }
  0xcf   :  { %v288_v45 = vadd.f32 %v287_v44, %v286_v43 }
  0xd1   :  { %561 = vrcp.f32 %v288_v45 }
  0xd9   :  { %v560_v11 = vpop.eup %559 }
  0xda   :  { %v82_v15 = vmul.f32 %v560_v11, %v544_v16  ;;  %v83_v46 = vmul.f32 %v560_v11, %v546_v17  ;;  %v84_v48 = vmul.f32 %v560_v11, %v548_v18  ;;  %v85_v49 = vmul.f32 %v560_v11, %v550_v20 }
  0xdc   :  { %v86_v47 = vpack.c.bf16 %v83_v46, %v82_v15  ;;  %v87_v53 = vpack.c.bf16 %v85_v49, %v84_v48 }
  0xde   :  { %v562_v50 = vpop.eup %561  ;;  %90 = vxpose.xlu0.c.b16.start [1/2] (short) (narrow) %v86_v47, 16 }
  0xdf   :  { %v290_v51 = vmul.f32 %v562_v50, %v552_v22  ;;  %v291_v52 = vmul.f32 %v562_v50, %v554_v24  ;;  %v292_v55 = vmul.f32 %v562_v50, %v556_v27  ;;  %v293_v56 = vmul.f32 %v562_v50, %v558_v29 }
  0xe1   :  { %v294_v54 = vpack.c.bf16 %v291_v52, %v290_v51  ;;  %v295_v57 = vpack.c.bf16 %v293_v56, %v292_v55 }
  0xe2   :  { %91 = vxpose.xlu0.c.b16.end [2/2] (short) (narrow) %v87_v53, 16 }
  0xe3   :  { %298 = vxpose.xlu1.c.b16.start [1/2] (short) (narrow) %v294_v54, 16 }
  0xe7   :  { %299 = vxpose.xlu1.c.b16.end [2/2] (short) (narrow) %v295_v57, 16 }
 0x140   :  { %v98_v59 = vpop.trf.xlu0 }
 0x141   :  { %493 = vmatmul.mubr.msk.bf16.vlgmr.msra.gmra.mxu1 %vm106_vm6, %v98_v59 }
 0x142   :  { %497 = vmatpush3.bf16.msra.mxu1 %v535_v58  ;;  %504 = vmatprep.mubr.msk.bf16.mxu1 %vm587_vm4, %v585_v26 }
 0x143   :  { %498 = vmatprep.subr.bf16.mxu1 %v585_v26 }
 0x145   :  { %v306_v62 = vpop.trf.xlu1 }
 0x146   :  { %513 = vmatmul.mubr.msk.bf16.vlgmr.msra.gmra.mxu0 %vm106_vm6, %v306_v62  ;;  %499 = vmatpush3.bf16.msra.mxu1 %v536_v60 }
 0x147   :  { %517 = vmatpush3.bf16.msra.mxu0 %v537_v61  ;;  %500 = vmatprep.subr.bf16.mxu1 %v585_v26 }
 0x148   :  { %518 = vmatprep.subr.bf16.mxu0 %v585_v26  ;;  %524 = vmatprep.mubr.msk.bf16.mxu0 %vm587_vm4, %v585_v26 }
 0x14a   :  { %501 = vmatpush3.bf16.msra.mxu1 %v538_v63 }
 0x14b   :  { %519 = vmatpush3.bf16.msra.mxu0 %v539_v0  ;;  %502 = vmatprep.subr.bf16.mxu1 %v585_v26 }
 0x14c   :  { %520 = vmatprep.subr.bf16.mxu0 %v585_v26 }
 0x14e   :  { %503 = vmatpush3.bf16.msra.mxu1 %v540_v1 }
 0x14f   :  { %521 = vmatpush3.bf16.msra.mxu0 %v541_v2 }
 0x150   :  { %522 = vmatprep.subr.bf16.mxu0 %v585_v26  ;;  %v166_v26 = vld [vmem:[%s721_s3] sm:$0x1] }
 0x153   :  { %523 = vmatpush3.bf16.msra.mxu0 %v542_v3 }
 0x201   :  { %v151_v4 = vpop.f32.mrf.mxu1 }
 0x202   :  { %v157_v5 = vpack.c.bf16 %v151_v4, %v151_v4 }
 0x203   :  { %v494_v6 = vpop.f32.mrf.mxu1 }
 0x204   :  { %505 = vmatmul.mubr.msk.bf16.vlgmr.msra.gmra.mxu1 %vm34_vm1, %v157_v5 }
 0x205   :  { %v154_v7 = vpop.f32.mrf.mxu1 }
 0x206   :  { %v354_v8 = vpop.f32.mrf.mxu0 }
 0x207   :  { %v360_v9 = vpack.c.bf16 %v354_v8, %v354_v8  ;;  %v495_v10 = vpop.f32.mrf.mxu1 }
 0x208   :  { %v514_v12 = vpop.f32.mrf.mxu0 }
 0x209   :  { %525 = vmatmul.mubr.msk.bf16.vlgmr.msra.gmra.mxu0 %vm34_vm1, %v360_v9 }
 0x20a   :  { %v357_v13 = vpop.f32.mrf.mxu0 }
 0x20c   :  { %v515_v14 = vpop.f32.mrf.mxu0 }
 0x2c4   :  { %v228_v16 = vpop.f32.mrf.mxu1 }
 0x2c5   :  { %v229_v17 = vadd.f32 %v228_v16, %v166_v26 }
 0x2c6   :  { %v506_v18 = vpop.f32.mrf.mxu1 }
 0x2c7   :  { %235 = vst.msk [vmem:[#allocation2] sm:$0x1] %vm234_vm7, %v229_v17 }
 0x2c8   :  { %v231_v20 = vpop.f32.mrf.mxu1 }
 0x2c9   :  { %v431_v21 = vpop.f32.mrf.mxu0 }
 0x2ca   :  { %v432_v22 = vadd.f32 %v431_v21, %v369_v19  ;;  %v507_v23 = vpop.f32.mrf.mxu1 }
 0x2cb   :  { %v526_v24 = vpop.f32.mrf.mxu0 }
 0x2cc   :  { %438 = vst.msk [vmem:[#allocation2 + $0x1] sm:$0x1] %vm234_vm7, %v432_v22 }
 0x2cd   :  { %v434_v25 = vpop.f32.mrf.mxu0 }
 0x2ce   :  { %574 = shalt.err (!%p571_p4)
}
 0x2cf   :  { %s589_s26 = smov 16   ;;  %s590_s27 = smov 1   ;;  %v527_v27 = vpop.f32.mrf.mxu0 }
 0x2d0   :  { %450 = dma.vmem_to_hbm [thread:$0]  %s445_s1, 32, %s722_s4, [#allocation3], %s589_s26, %s589_s26, %s590_s27  }
 0x2d1   :  { %583 = dma.done.wait [#allocation3], 32  }
 0x2d2   :  { %584 = vsyncadd [#allocation3], 4294967264 }
 0x2d3   :  { %454 = vsyncpa [#allocation3], 1 }

// kernel: cct_forward.4
= control target key start
LH: loop header
LB: loop body
LE: loop exit
PB: predicated region body
PF: predicated region fallthrough
CT: control target
= control target key end

     0   :  { %s4561_s24 = smov 0   ;;  %s4563_s25 = smov 0   ;;  %s5051_s0 = inlined_call_operand.vmem [shape: f32[2,25,64], index: 0, kind: input, shape index: {}]   ;;  %s5052_s1 = inlined_call_operand.vmem [shape: bf16[2,4,64,16], index: 1, kind: input, shape index: {}]   ;;  %s5053_s2 = inlined_call_operand.vmem [shape: bf16[2,4,64,16], index: 2, kind: input, shape index: {}]   ;;  %s5054_s3 = inlined_call_operand.vmem [shape: bf16[2,4,64,16], index: 3, kind: input, shape index: {}]   ;;  %s5055_s4 = inlined_call_operand.vmem [shape: f32[2,4,1,16], index: 4, kind: input, shape index: {}]   ;;  %s5056_s5 = inlined_call_operand.vmem [shape: f32[2,4,1,16], index: 5, kind: input, shape index: {}]   ;;  %s5057_s6 = inlined_call_operand.vmem [shape: f32[2,4,1,16], index: 6, kind: input, shape index: {}]   ;;  %s5058_s7 = inlined_call_operand.vmem [shape: bf16[2,4,16,64], index: 7, kind: input, shape index: {}]   ;;  %s5059_s8 = inlined_call_operand.vmem [shape: f32[2,1,64], index: 8, kind: input, shape index: {}]   ;;  %s5060_s9 = inlined_call_operand.vmem [shape: f32[2,1,64], index: 9, kind: input, shape index: {}]   ;;  %s5061_s10 = inlined_call_operand.vmem [shape: f32[2,1,64], index: 10, kind: input, shape index: {}]   ;;  %s5062_s11 = inlined_call_operand.vmem [shape: bf16[2,64,128], index: 11, kind: input, shape index: {}]   ;;  %s5063_s12 = inlined_call_operand.vmem [shape: f32[2,1,128], index: 12, kind: input, shape index: {}]   ;;  %s5064_s13 = inlined_call_operand.vmem [shape: bf16[2,128,64], index: 13, kind: input, shape index: {}]   ;;  %s5065_s14 = inlined_call_operand.vmem [shape: f32[2,1,64], index: 14, kind: input, shape index: {}]   ;;  %s5066_s15 = inlined_call_operand.vmem [shape: f32[2,1,64], index: 15, kind: input, shape index: {}]   ;;  %s5067_s16 = inlined_call_operand.vmem [shape: f32[2,1,64], index: 16, kind: input, shape index: {}]   ;;  %s5068_s17 = inlined_call_operand.vmem [shape: f32[2,25,64], index: 17, kind: output, shape index: {}]  }
   0x1   :  { %5078 = sst [smem:[#allocation13_spill]] %s5051_s0  ;;  %s4565_s26 = smov 0  }
   0x2   :  { %5079 = sst [smem:[#allocation14_spill]] %s5052_s1  ;;  %s4567_s27 = smov 0  }
   0x3   :  { %5080 = sst [smem:[#allocation15_spill]] %s5053_s2  ;;  %s4569_s28 = smov 0  }
   0x4   :  { %5081 = sst [smem:[#allocation16_spill]] %s5054_s3 }
   0x5   :  { %5082 = sst [smem:[#allocation17_spill]] %s5055_s4 }
   0x6   :  { %5083 = sst [smem:[#allocation18_spill]] %s5056_s5 }
   0x7   :  { %5084 = sst [smem:[#allocation19_spill]] %s5057_s6 }
   0x8   :  { %5085 = sst [smem:[#allocation20_spill]] %s5058_s7 }
   0x9   :  { %5086 = sst [smem:[#allocation21_spill]] %s5062_s11 }
   0xa   :  { %5087 = sst [smem:[#allocation22_spill]] %s5068_s17 }
   0xb LB: > { %5088 = sst [smem:[#allocation2_spill]] %s4452_s24  ;;  %s36_s29 = sadd.s32 1, %s4460_s26  ;;  %s4468_s28 = sphi %s4569_s28, %s27_s28   ;;  %s4464_s27 = sphi %s4567_s27, %s5123_s27   ;;  %s4460_s26 = sphi %s4565_s26, %s5122_s26   ;;  %s4456_s25 = sphi %s4563_s25, %s5121_s25   ;;  %s4452_s24 = sphi %s4561_s24, %s5120_s24  }
   0xc   : > { %5089 = sst [smem:[#allocation3_spill]] %s4460_s26  ;;  %s39_s0 = sadd.s32 1, %s4464_s27 }
   0xd   : > { %5090 = sst [smem:[#allocation4_spill]] %s4464_s27  ;;  %p37_p0 = scmp.ge.s32.totalorder %s36_s29, 2 }
   0xe   : > { %5091 = sst [smem:[#allocation5_spill]] %s4468_s28  ;;  %p3578_p1 = scmp.ge.s32.totalorder %s4468_s28, 1 }
   0xf   : > { %p642_p2 = scmp.lt.s32.totalorder %s4468_s28, 5  ;;  %s5125_s29 = smov (%p37_p0, %s36_s29), 0 }
  0x10   : > { %5092 = sst [smem:[#allocation6_spill]] %s5125_s29  ;;  %s5127_s0 = smov (!%p37_p0, %s39_s0), %s4464_s27 }
  0x11   : > { %p643_p3 = pnand %p3578_p1, %p642_p2  ;;  %p41_p4 = scmp.ge.s32.totalorder %s5127_s0, 2 }
  0x13   : > { %s5129_s0 = smov (%p41_p4, %s5127_s0), 0  ;;  %646 = sbr.rel (%p643_p3) target bundleno = 4928 (0x1340), region = 88 }
  0x14   : > { %5093 = sst [smem:[#allocation7_spill]] %s5129_s0 }
  0x18   : > { %p757_p5 = scmp.lt.s32.totalorder %s4456_s25, 1  ;;  %p762_p6 = scmp.lt.s32.totalorder %s4452_s24, 1 }
  0x19   : > { %s5094_s20 = sld [smem:[#allocation13_spill]] }
  0x1a   : > { %s5131_s25 = smov (!%p757_p5, %s4456_s25), 1  ;;  %s5096_s29 = sld [smem:[#allocation14_spill]] }
  0x1b   : > { %s4595_s30 = scalar_select %p762_p6, %s4452_s24, 1 }
  0x1c   : > { %s3821_s18 = sshll.u32 %s5131_s25, 5  ;;  %s5098_s2 = sld [smem:[#allocation15_spill]] }
  0x1d   : > { %s3822_s22 = sshll.u32 %s4595_s30, 7  ;;  %s5099_s3 = sld [smem:[#allocation16_spill]] }
  0x1e   : > { %s3587_s1 = sshll.u32 %s4595_s30, 2  ;;  %s5101_s4 = sld [smem:[#allocation17_spill]] }
  0x1f   : > { %s4600_s21 = scalar_lea.vmem %s5094_s20, %s3821_s18  ;;  %s5103_s5 = sld [smem:[#allocation18_spill]] }
  0x20   : > { %5095 = sst [smem:[#allocation8_spill]] %s4600_s21  ;;  %s4606_s27 = scalar_lea.vmem %s5096_s29, %s3822_s22 }
  0x21   : > { %5097 = sst [smem:[#allocation9_spill]] %s4606_s27  ;;  %s3825_s17 = sshll.u32 %s4595_s30, 5 }
  0x22   : > { %s4611_s24 = scalar_lea.vmem %s5098_s2, %s3822_s22  ;;  %s5104_s6 = sld [smem:[#allocation19_spill]] }
  0x23   : > { %s4616_s19 = scalar_lea.vmem %s5099_s3, %s3822_s22  ;;  %s5105_s7 = sld [smem:[#allocation20_spill]] }
  0x24   : > { %5100 = sst [smem:[#allocation10_spill]] %s4616_s19  ;;  %s4622_s0 = scalar_lea.vmem %s5101_s4, %s3587_s1 }
  0x25   : > { %5102 = sst [smem:[#allocation11_spill]] %s4622_s0  ;;  %s4627_s27 = scalar_lea.vmem %s5103_s5, %s3587_s1 }
  0x26   : > { %s5107_s11 = sld [smem:[#allocation21_spill]]  ;;  %s818_s20 = scalar_lea.vmem %s5065_s14, %s4595_s30 }
  0x27   : > { %s824_s26 = scalar_lea.vmem %s5067_s16, %s4595_s30  ;;  %s5109_s19 = sld [smem:[#allocation2_spill]] }
  0x28   : > { %s4632_s2 = scalar_lea.vmem %s5104_s6, %s3587_s1  ;;  %s821_s1 = scalar_lea.vmem %s5066_s15, %s4595_s30 }
  0x29   : > { %s4638_s3 = scalar_lea.vmem %s5105_s7, %s3825_s17  ;;  %s5108_s7 = sld [smem:[#allocation22_spill]] }
  0x2a   : > { %5106 = sst [smem:[#allocation12_spill]] %s4638_s3  ;;  %s3827_s3 = sshll.u32 %s4595_s30, 6 }
  0x2b   : > { %s4669_s29 = scalar_lea.vmem %s5064_s13, %s3827_s3 }
  0x2c   : > { %s4655_s6 = scalar_lea.vmem %s5107_s11, %s3825_s17 }
  0x2d   : > { %p3598_p7 = scmp.ne.s32.totalorder %s5109_s19, 0 }
  0x2e   : > { %s5110_s21 = sld [smem:[#allocation8_spill]] (!%p3598_p7) }
  0x2f   : > { %s4682_s11 = scalar_lea.vmem %s5108_s7, %s3821_s18  ;;  %834 = sbr.rel (%p3598_p7) target bundleno = 56 (0x38), region = 92 }
  0x34   : > { %v835_v0 = vld [vmem:[%s5110_s21] sm:$0xff]  ;;  %vm839_vm0 = vcmask 523264   ;;  %v836_v1 = vld [vmem:[%s5110_s21 + $0x8] sm:$0xff]  ;;  %v837_v2 = vld [vmem:[%s5110_s21 + $0x10] sm:$0xff]  ;;  %vm843_vm1 = vcmask 516096  }
  0x35   : > { %840 = vst.msk [vmem:[%s4682_s11] sm:$0xff] %vm839_vm0, %v835_v0  ;;  %841 = vst.msk [vmem:[%s4682_s11 + $0x8] sm:$0xff] %vm839_vm0, %v836_v1  ;;  %v838_v3 = vld [vmem:[%s5110_s21 + $0x18] sm:$0x1] }
  0x36   : > { %842 = vst.msk [vmem:[%s4682_s11 + $0x10] sm:$0xff] %vm839_vm0, %v837_v2 }
  0x37   : > { %844 = vst.msk [vmem:[%s4682_s11 + $0x18] sm:$0x1] %vm843_vm1, %v838_v3 }
  0x38 PF: > { %s5111_s3 = sld [smem:[#allocation9_spill]]  ;;  %v4274_v4 = vld [vmem:[%s4611_s24 + $0x18] sm:$0xff]   ;;  %v4275_v5 = vld [vmem:[%s4611_s24 + $0x10] sm:$0xff]   ;;  %v4277_v7 = vld [vmem:[%s4611_s24 + $0x8] sm:$0xff]   ;;  %vm890_vm2 = vcmask 523264   ;;  %vm1126_vm3 = vcmask 130048   ;;  %s5116_s5 = scalar_lea.vmem %s5060_s9, %s4595_s30 }
  0x39   : > { %3973 = vmatprep.subr.bf16.mxu1 %v4274_v4  ;;  %v4279_v12 = vld [vmem:[%s4611_s24] sm:$0xff]   ;;  %s5112_s7 = sld [smem:[#allocation11_spill]]  ;;  %vm1192_vm4 = vcmask 203776   ;;  %vm1202_vm5 = vcmask 196608   ;;  %vm1248_vm6 = vcmask 1043456   ;;  %vm1249_vm7 = vcmask 1044480   ;;  %s5117_s28 = scalar_lea.vmem %s5061_s10, %s4595_s30 }
  0x3a   : > { %3974 = vmatpush3.bf16.msra.mxu1 %v4274_v4  ;;  %v3606_v19 = vld [vmem:[%s4627_s27] ss:$0 sm:$0xff]  ;;  %s5113_s18 = sld [smem:[#allocation10_spill]]  ;;  %vm2934_vm8 = vcmask 516096   ;;  %s5118_s19 = scalar_lea.vmem %s5063_s12, %s4595_s30 }
  0x3b   : > { %3975 = vmatprep.subr.bf16.mxu1 %v4275_v5  ;;  %s5114_s4 = sld [smem:[#allocation12_spill]] }
  0x3c   : > { %v845_v10 = vld [vmem:[%s4682_s11] sm:$0xff]  ;;  %v846_v11 = vld [vmem:[%s4682_s11 + $0x8] sm:$0xff] }
  0x3d   : > { %v4702_v13 = vpack.c.bf16 %v846_v11, %v845_v10  ;;  %v847_v14 = vld [vmem:[%s4682_s11 + $0x10] sm:$0xff] }
  0x3e   : > { %v4276_v6 = vld [vmem:[%s5111_s3 + $0x18] sm:$0xff]   ;;  %v4278_v8 = vld [vmem:[%s5111_s3 + $0x10] sm:$0xff]   ;;  %v4280_v9 = vld [vmem:[%s5111_s3 + $0x8] sm:$0xff]   ;;  %3976 = vmatpush3.bf16.msra.mxu1 %v4275_v5 }
  0x3f   : > { %3961 = vmatprep.subr.bf16.mxu0 %v4276_v6  ;;  %3977 = vmatprep.subr.bf16.mxu1 %v4277_v7  ;;  %v848_v15 = vld [vmem:[%s4682_s11 + $0x18] sm:$0x1]  ;;  %v4281_v16 = vld [vmem:[%s5111_s3] sm:$0xff]  }
  0x40   : > { %3962 = vmatpush3.bf16.msra.mxu0 %v4276_v6  ;;  %3981 = vmatprep.mubr.msk.bf16.mxu1 %vm890_vm2, %v4702_v13  ;;  %v4711_v17 = vpack.c.bf16 %v848_v15, %v847_v14  ;;  %v3599_v23 = vld [vmem:[%s5112_s7] ss:$0 sm:$0xff]  ;;  %v4282_v42 = vld [vmem:[%s5113_s18 + $0x18] sm:$0xff]   ;;  %v4283_v43 = vld [vmem:[%s5113_s18 + $0x10] sm:$0xff]  }
  0x41   : > { %3963 = vmatprep.subr.bf16.mxu0 %v4278_v8  ;;  %3969 = vmatprep.mubr.msk.bf16.mxu0 %vm890_vm2, %v4702_v13  ;;  %v4284_v44 = vld [vmem:[%s5113_s18 + $0x8] sm:$0xff]   ;;  %v4285_v45 = vld [vmem:[%s5113_s18] sm:$0xff]  }
  0x42   : > { %3978 = vmatpush3.bf16.msra.mxu1 %v4277_v7 }
  0x43   : > { %3979 = vmatprep.subr.bf16.mxu1 %v4279_v12 }
  0x44   : > { %3964 = vmatpush3.bf16.msra.mxu0 %v4278_v8 }
  0x45   : > { %3965 = vmatprep.subr.bf16.mxu0 %v4280_v9 }
  0x46   : > { %3980 = vmatpush3.bf16.msra.mxu1 %v4279_v12 }
  0x48   : > { %3966 = vmatpush3.bf16.msra.mxu0 %v4280_v9 }
  0x49   : > { %3967 = vmatprep.subr.bf16.mxu0 %v4281_v16  ;;  %3982 = vmatmul.mubr.msk.bf16.vlgmr.msra.gmra.mxu1 %vm890_vm2, %v4711_v17 }
  0x4c   : > { %3968 = vmatpush3.bf16.msra.mxu0 %v4281_v16  ;;  %v3613_v16 = vld [vmem:[%s4632_s2] ss:$0 sm:$0xff] }
  0x4d   : > { %3985 = vmatprep.subr.bf16.mxu0 %v4282_v42 }
  0x4f   : > { %3970 = vmatmul.mubr.msk.bf16.vlgmr.msra.gmra.mxu0 %vm890_vm2, %v4711_v17 }
  0x50   : > { %3993 = vmatprep.mubr.msk.bf16.mxu0 %vm890_vm2, %v4702_v13  ;;  %3986 = vmatpush3.bf16.msra.mxu0 %v4282_v42 }
  0x51   : > { %3987 = vmatprep.subr.bf16.mxu0 %v4283_v43 }
  0x54   : > { %3988 = vmatpush3.bf16.msra.mxu0 %v4283_v43 }
  0x55   : > { %3989 = vmatprep.subr.bf16.mxu0 %v4284_v44 }
  0x58   : > { %3990 = vmatpush3.bf16.msra.mxu0 %v4284_v44 }
  0x59   : > { %3991 = vmatprep.subr.bf16.mxu0 %v4285_v45 }
  0x5c   : > { %3992 = vmatpush3.bf16.msra.mxu0 %v4285_v45 }
  0x5f   : > { %3994 = vmatmul.mubr.msk.bf16.vlgmr.msra.gmra.mxu0 %vm890_vm2, %v4711_v17 }
 0x109   : > { %v3983_v18 = vpop.f32.mrf.mxu1 }
 0x10a   : > { %v1028_v25 = vadd.f32 %v3983_v18, %v3606_v19 }
 0x10b   : > { %v1019_v20 = vpop.f32.mrf.mxu1 }
 0x10c   : > { %v1020_v29 = vadd.f32 %v3606_v19, %v1019_v20 }
 0x10d   : > { %v3984_v22 = vpop.f32.mrf.mxu1 }
 0x10e   : > { %v1031_v26 = vadd.f32 %v3984_v22, %v3606_v19 }
 0x10f   : > { %v3971_v21 = vpop.f32.mrf.mxu0  ;;  %v1022_v27 = vpop.f32.mrf.mxu1 }
 0x110   : > { %v1125_v30 = vpack.c.bf16 %v1031_v26, %v1028_v25  ;;  %v1023_v31 = vadd.f32 %v3606_v19, %v1022_v27  ;;  %v940_v39 = vadd.f32 %v3971_v21, %v3599_v23 }
 0x111   : > { %v931_v24 = vpop.f32.mrf.mxu0 }
 0x112   : > { %v932_v32 = vadd.f32 %v3599_v23, %v931_v24  ;;  %v1124_v34 = vpack.c.bf16 %v1023_v31, %v1020_v29  ;;  %4225 = vmatprep.subr.msk.bf16.mxu1 %vm1126_vm3, %v1125_v30  ;;  %v1137_v35 = vsel %vm1126_vm3, %v1125_v30, 0  ;;  %v4286_v31 = vld [vmem:[%s4611_s24 + $0x38] sm:$0xff]  }
 0x113   : > { %v3972_v28 = vpop.f32.mrf.mxu0  ;;  %3998 = vmatpush3.bf16.xpose.msra.mxu1 %v1137_v35  ;;  %v4293_v35 = vld [vmem:[%s5111_s3 + $0x20] sm:$0xff]  }
 0x114   : > { %4226 = vmatprep.subr.msk.bf16.mxu1 %vm1126_vm3, %v1124_v34  ;;  %v1134_v38 = vsel %vm1126_vm3, %v1124_v34, 0  ;;  %v943_v40 = vadd.f32 %v3972_v28, %v3599_v23  ;;  %v4292_v34 = vld [vmem:[%s5111_s3 + $0x28] sm:$0xff]  }
 0x115   : > { %v934_v33 = vpop.f32.mrf.mxu0 }
 0x116   : > { %v935_v36 = vadd.f32 %v3599_v23, %v934_v33  ;;  %v1123_v41 = vpack.c.bf16 %v943_v40, %v940_v39  ;;  %v4470_v23 = vmov 65535   ;;  %v4290_v33 = vld [vmem:[%s5111_s3 + $0x30] sm:$0xff]   ;;  %v4297_v39 = vld [vmem:[%s5113_s18 + $0x20] sm:$0xff]  }
 0x117   : > { %v1250_v24 = vsel %vm1248_vm6, 4294967295, %v4470_v23 }
 0x118   : > { %v1122_v37 = vpack.c.bf16 %v935_v36, %v932_v32  ;;  %v4756_v26 = vsel %vm1249_vm7, %v1250_v24, 0  ;;  %v4288_v32 = vld [vmem:[%s5111_s3 + $0x38] sm:$0xff]  }
 0x119   : > { %v4294_v36 = vld [vmem:[%s5113_s18 + $0x38] sm:$0xff]  }
 0x11a   : > { %4001 = vmatprep.mubr.msk.bf16.mxu1 %vm1126_vm3, %v1122_v37  ;;  %v4295_v37 = vld [vmem:[%s5113_s18 + $0x30] sm:$0xff]  }
 0x11b   : > { %4000 = vmatpush3.bf16.xpose.msra.mxu1 %v1134_v38  ;;  %v4296_v38 = vld [vmem:[%s5113_s18 + $0x28] sm:$0xff]  }
 0x11c   : > { %4013 = vmatprep.subr.bf16.mxu1 %v4288_v32 }
 0x11f   : > { %v3995_v6 = vpop.f32.mrf.mxu0 }
 0x120   : > { %v1116_v20 = vadd.f32 %v3995_v6, %v3613_v16 }
 0x121   : > { %v1107_v10 = vpop.f32.mrf.mxu0 }
 0x122   : > { %4002 = vmatmul.mubr.msk.bf16.vlgmr.msra.gmra.mxu1 %vm1126_vm3, %v1123_v41  ;;  %v1108_v25 = vadd.f32 %v3613_v16, %v1107_v10 }
 0x123   : > { %4021 = vmatprep.mubr.msk.bf16.mxu1 %vm890_vm2, %v4702_v13  ;;  %v3996_v18 = vpop.f32.mrf.mxu0  ;;  %4014 = vmatpush3.bf16.msra.mxu1 %v4288_v32 }
 0x124   : > { %v1119_v21 = vadd.f32 %v3996_v18, %v3613_v16  ;;  %4015 = vmatprep.subr.bf16.mxu1 %v4290_v33 }
 0x125   : > { %v1110_v27 = vpop.f32.mrf.mxu0 }
 0x126   : > { %v1241_v22 = vpack.c.bf16 %v1119_v21, %v1116_v20  ;;  %v1111_v29 = vadd.f32 %v3613_v16, %v1110_v27 }
 0x127   : > { %4016 = vmatpush3.bf16.msra.mxu1 %v4290_v33 }
 0x128   : > { %v1253_v28 = vand.u32 %v4756_v26, %v1241_v22  ;;  %v1240_v30 = vpack.c.bf16 %v1111_v29, %v1108_v25  ;;  %4017 = vmatprep.subr.bf16.mxu1 %v4292_v34 }
 0x12a   : > { %4005 = vmatprep.subr.bf16.mxu0 %v1253_v28 }
 0x12b   : > { %4006 = vmatpush3.bf16.msra.mxu0 %v1253_v28  ;;  %4018 = vmatpush3.bf16.msra.mxu1 %v4292_v34 }
 0x12c   : > { %4007 = vmatprep.subr.bf16.mxu0 %v1240_v30  ;;  %4019 = vmatprep.subr.bf16.mxu1 %v4293_v35 }
 0x12f   : > { %4008 = vmatpush3.bf16.msra.mxu0 %v1240_v30  ;;  %4020 = vmatpush3.bf16.msra.mxu1 %v4293_v35 }
 0x130   : > { %4025 = vmatprep.subr.bf16.mxu0 %v4286_v31  ;;  %4037 = vmatprep.subr.bf16.mxu1 %v4294_v36 }
 0x132   : > { %4022 = vmatmul.mubr.msk.bf16.vlgmr.msra.gmra.mxu1 %vm890_vm2, %v4711_v17 }
 0x133   : > { %4038 = vmatpush3.bf16.msra.mxu1 %v4294_v36  ;;  %4045 = vmatprep.mubr.msk.bf16.mxu1 %vm890_vm2, %v4702_v13 }
 0x134   : > { %4039 = vmatprep.subr.bf16.mxu1 %v4295_v37 }
 0x137   : > { %4040 = vmatpush3.bf16.msra.mxu1 %v4295_v37 }
 0x138   : > { %4041 = vmatprep.subr.bf16.mxu1 %v4296_v38 }
 0x13b   : > { %4042 = vmatpush3.bf16.msra.mxu1 %v4296_v38 }
 0x13c   : > { %4043 = vmatprep.subr.bf16.mxu1 %v4297_v39 }
 0x13f   : > { %4044 = vmatpush3.bf16.msra.mxu1 %v4297_v39 }
 0x142   : > { %4046 = vmatmul.mubr.msk.bf16.vlgmr.msra.gmra.mxu1 %vm890_vm2, %v4711_v17 }
 0x1e2   : > { %v4003_v46 = vpop.f32.mrf.mxu1 }
 0x1e3   : > { %v1190_v47 = vmul.f32 0.25, %v4003_v46 }
 0x1e4   : > { %v1173_v48 = vpop.f32.mrf.mxu1 }
 0x1e5   : > { %v1188_v49 = vmul.f32 0.25, %v1173_v48  ;;  %v1199_v50 = vsel %vm1192_vm4, %v1190_v47, -inf }
 0x1e6   : > { %1200 = vmax.xlane.f32.xlu1 %v1199_v50  ;;  %v4004_v51 = vpop.f32.mrf.mxu1 }
 0x1e7   : > { %v1191_v52 = vmul.f32 0.25, %v4004_v51  ;;  %v1193_v53 = vsel %vm1192_vm4, %v1188_v49, -inf }
 0x1e8   : > { %1194 = vmax.xlane.f32.xlu0 %v1193_v53  ;;  %v1176_v54 = vpop.f32.mrf.mxu1 }
 0x1e9   : > { %v1189_v55 = vmul.f32 0.25, %v1176_v54  ;;  %v1203_v56 = vsel %vm1202_vm5, %v1191_v52, -inf  ;;  %v4287_v54 = vld [vmem:[%s4611_s24 + $0x30] sm:$0xff]  }
 0x1ea   : > { %1204 = vmax.xlane.f32.xlu1 %v1203_v56  ;;  %v4291_v56 = vld [vmem:[%s4611_s24 + $0x20] sm:$0xff]  }
 0x1eb   : > { %v1196_v57 = vsel %vm1192_vm4, %v1189_v55, -inf }
 0x1ec   : > { %1197 = vmax.xlane.f32.xlu0 %v1196_v57  ;;  %v4298_v57 = vld [vmem:[%s5114_s4] sm:$0xff]  }
 0x1ed   : > { %4071 = vmatprep.subr.bf16.mxu1 %v4298_v57 }
 0x1ee   : > { %4072 = vmatpush3.bf16.msra.mxu1 %v4298_v57 }
 0x26f   : > { %v1201_v58 = vpop.xlane.xlu1 %1200 }
 0x270   : > { %v1208_v59 = vsub.f32 %v1190_v47, %v1201_v58  ;;  %v4023_v58 = vpop.f32.mrf.mxu1 }
 0x271   : > { %v1195_v60 = vpop.xlane.xlu0 %1194 }
 0x272   : > { %v1206_v61 = vsub.f32 %v1188_v49, %v1195_v60  ;;  %v1214_v63 = vmul.f32 1.442695, %v1208_v59  ;;  %v3633_v59 = vld [vmem:[%s5112_s7 + $0x1] ss:$0 sm:$0xff]  ;;  %v1383_v60 = vpop.f32.mrf.mxu1 }
 0x273   : > { %v1205_v62 = vpop.xlane.xlu1 %1204 }
 0x274   : > { %v1210_v0 = vmul.f32 1.442695, %v1206_v61  ;;  %v1209_v1 = vsub.f32 %v1191_v52, %v1205_v62  ;;  %v1392_v61 = vadd.f32 %v4023_v58, %v3633_v59  ;;  %v4024_v62 = vpop.f32.mrf.mxu1  ;;  %v3665_v58 = vld [vmem:[%s4632_s2 + $0x1] ss:$0 sm:$0xff] }
 0x275   : > { %v1198_v2 = vpop.xlane.xlu0 %1197 }
 0x276   : > { %4338 = vpow2.f32 %v1210_v0  ;;  %v1207_v3 = vsub.f32 %v1189_v55, %v1198_v2  ;;  %v1216_v4 = vmul.f32 1.442695, %v1209_v1  ;;  %v4289_v55 = vld [vmem:[%s4611_s24 + $0x28] sm:$0xff]   ;;  %v1395_v0 = vadd.f32 %v4024_v62, %v3633_v59  ;;  %v1386_v1 = vpop.f32.mrf.mxu1 }
 0x277   : > { %4340 = vpow2.f32 %v1214_v63  ;;  %v1384_v63 = vadd.f32 %v3633_v59, %v1383_v60 }
 0x278   : > { %v1212_v5 = vmul.f32 1.442695, %v1207_v3  ;;  %v1579_v2 = vpack.c.bf16 %v1395_v0, %v1392_v61  ;;  %v1387_v3 = vadd.f32 %v3633_v59, %v1386_v1 }
 0x27a   : > { %4342 = vpow2.f32 %v1212_v5 }
 0x27b   : > { %4344 = vpow2.f32 %v1216_v4  ;;  %v1578_v4 = vpack.c.bf16 %v1387_v3, %v1384_v63 }
 0x283   : > { %v4739_v7 = vpop.eup %4338 }
 0x284   : > { %v1218_v8 = vsel %vm1192_vm4, %v4739_v7, 0.0  ;;  %v4743_v9 = vpop.eup %4340 }
 0x285   : > { %1219 = vadd.xlane.f32.xlu0 %v1218_v8  ;;  %v1224_v12 = vsel %vm1192_vm4, %v4743_v9, 0.0 }
 0x287   : > { %v4745_v11 = vpop.eup %4342 }
 0x288   : > { %v1221_v14 = vsel %vm1192_vm4, %v4745_v11, 0.0  ;;  %v4751_v15 = vpop.eup %4344 }
 0x289   : > { %1225 = vadd.xlane.f32.xlu0 %v1224_v12  ;;  %1222 = vadd.xlane.f32.xlu1 %v1221_v14  ;;  %v1227_v19 = vsel %vm1202_vm5, %v4751_v15, 0.0  ;;  %v3649_v12 = vld [vmem:[%s4627_s27 + $0x1] ss:$0 sm:$0xff] }
 0x28d   : > { %1228 = vadd.xlane.f32.xlu1 %v1227_v19 }
 0x30e   : > { %v1220_v40 = vpop.xlane.xlu0 %1219 }
 0x30f   : > { %4346 = vrcp.f32 %v1220_v40 }
 0x312   : > { %v1223_v41 = vpop.xlane.xlu1 %1222  ;;  %v1226_v42 = vpop.xlane.xlu0 %1225 }
 0x313   : > { %4348 = vrcp.f32 %v1223_v41 }
 0x314   : > { %4350 = vrcp.f32 %v1226_v42 }
 0x316   : > { %v1229_v43 = vpop.xlane.xlu1 %1228 }
 0x317   : > { %4352 = vrcp.f32 %v1229_v43 }
 0x31c   : > { %v4347_v44 = vpop.eup %4346 }
 0x31d   : > { %v1231_v46 = vmul.f32 %v4347_v44, %v4739_v7 }
 0x320   : > { %v4349_v45 = vpop.eup %4348 }
 0x321   : > { %v1233_v47 = vmul.f32 %v4349_v45, %v4745_v11  ;;  %v4351_v48 = vpop.eup %4350 }
 0x322   : > { %v1235_v51 = vmul.f32 %v4351_v48, %v4743_v9 }
 0x323   : > { %v1238_v49 = vpack.c.bf16 %v1233_v47, %v1231_v46 }
 0x324   : > { %v4353_v50 = vpop.eup %4352 }
 0x325   : > { %4009 = vmatprep.mubr.msk.bf16.mxu0 %vm1192_vm4, %v1238_v49  ;;  %v1237_v52 = vmul.f32 %v4353_v50, %v4751_v15 }
 0x327   : > { %v1239_v53 = vpack.c.bf16 %v1237_v52, %v1235_v51  ;;  %v4047_v52 = vpop.f32.mrf.mxu1 }
 0x328   : > { %v1572_v62 = vadd.f32 %v4047_v52, %v3665_v58 }
 0x329   : > { %4010 = vmatmul.mubr.msk.bf16.vlgmr.msra.gmra.mxu0 %vm1192_vm4, %v1239_v53 }
 0x32a   : > { %4026 = vmatpush3.bf16.msra.mxu0 %v4286_v31  ;;  %4033 = vmatprep.mubr.msk.bf16.mxu0 %vm890_vm2, %v4702_v13 }
 0x32b   : > { %4027 = vmatprep.subr.bf16.mxu0 %v4287_v54 }
 0x32e   : > { %4028 = vmatpush3.bf16.msra.mxu0 %v4287_v54 }
 0x32f   : > { %4029 = vmatprep.subr.bf16.mxu0 %v4289_v55 }
 0x332   : > { %4030 = vmatpush3.bf16.msra.mxu0 %v4289_v55  ;;  %v1563_v55 = vpop.f32.mrf.mxu1 }
 0x333   : > { %4031 = vmatprep.subr.bf16.mxu0 %v4291_v56 }
 0x334   : > { %v4048_v61 = vpop.f32.mrf.mxu1 }
 0x335   : > { %v1575_v63 = vadd.f32 %v4048_v61, %v3665_v58 }
 0x336   : > { %4032 = vmatpush3.bf16.msra.mxu0 %v4291_v56  ;;  %v1566_v1 = vpop.f32.mrf.mxu1 }
 0x337   : > { %v1694_v3 = vpack.c.bf16 %v1575_v63, %v1572_v62  ;;  %v3693_v63 = vld [vmem:[%s5112_s7 + $0x2] ss:$0 sm:$0xff] }
 0x339   : > { %4034 = vmatmul.mubr.msk.bf16.vlgmr.msra.gmra.mxu0 %vm890_vm2, %v4711_v17 }
 0x33a   : > { %4053 = vmatprep.mubr.msk.bf16.mxu0 %vm1126_vm3, %v1578_v4  ;;  %v1567_v4 = vadd.f32 %v3665_v58, %v1566_v1 }
 0x3e9   : > { %v4011_v5 = vpop.f32.mrf.mxu0 }
 0x3eb   : > { %v1289_v6 = vpop.f32.mrf.mxu0 }
 0x3ed   : > { %v4012_v7 = vpop.f32.mrf.mxu0 }
 0x3ee   : > { %v1305_v10 = vpack.c.bf16 %v4012_v7, %v4011_v5  ;;  %v4299_v7 = vld [vmem:[%s4611_s24 + $0x58] sm:$0xff]  }
 0x3ef   : > { %v1292_v8 = vpop.f32.mrf.mxu0  ;;  %4089 = vmatprep.subr.bf16.mxu1 %v4299_v7 }
 0x3f0   : > { %v1304_v9 = vpack.c.bf16 %v1292_v8, %v1289_v6  ;;  %v1702_v6 = vand.u32 %v1694_v3, %v4756_v26  ;;  %v4300_v8 = vld [vmem:[%s4611_s24 + $0x50] sm:$0xff]  }
 0x3f2   : > { %4073 = vmatprep.mubr.msk.bf16.mxu1 %vm1126_vm3, %v1304_v9  ;;  %v4301_v9 = vld [vmem:[%s4611_s24 + $0x48] sm:$0xff]  }
 0x3f3   : > { %4074 = vmatmul.mubr.msk.bf16.vlgmr.msra.gmra.mxu1 %vm1126_vm3, %v1305_v10  ;;  %v4302_v10 = vld [vmem:[%s4611_s24 + $0x40] sm:$0xff]  }
 0x3f4   : > { %4097 = vmatprep.mubr.msk.bf16.mxu1 %vm890_vm2, %v4702_v13  ;;  %4090 = vmatpush3.bf16.msra.mxu1 %v4299_v7  ;;  %v4308_v7 = vld [vmem:[%s5113_s18 + $0x58] sm:$0xff]  }
 0x3f5   : > { %4091 = vmatprep.subr.bf16.mxu1 %v4300_v8 }
 0x3f8   : > { %4092 = vmatpush3.bf16.msra.mxu1 %v4300_v8  ;;  %v4309_v8 = vld [vmem:[%s5113_s18 + $0x50] sm:$0xff]  }
 0x3f9   : > { %v4035_v11 = vpop.f32.mrf.mxu0  ;;  %4093 = vmatprep.subr.bf16.mxu1 %v4301_v9 }
 0x3fa   : > { %v1482_v16 = vadd.f32 %v4035_v11, %v3649_v12 }
 0x3fb   : > { %v1473_v14 = vpop.f32.mrf.mxu0 }
 0x3fc   : > { %v1474_v20 = vadd.f32 %v3649_v12, %v1473_v14  ;;  %4094 = vmatpush3.bf16.msra.mxu1 %v4301_v9  ;;  %v4310_v9 = vld [vmem:[%s5113_s18 + $0x48] sm:$0xff]  }
 0x3fd   : > { %v4036_v15 = vpop.f32.mrf.mxu0  ;;  %4095 = vmatprep.subr.bf16.mxu1 %v4302_v10 }
 0x3fe   : > { %v1485_v18 = vadd.f32 %v4036_v15, %v3649_v12 }
 0x3ff   : > { %v1476_v19 = vpop.f32.mrf.mxu0 }
 0x400   : > { %v1581_v21 = vpack.c.bf16 %v1485_v18, %v1482_v16  ;;  %v1477_v22 = vadd.f32 %v3649_v12, %v1476_v19  ;;  %4096 = vmatpush3.bf16.msra.mxu1 %v4302_v10  ;;  %v4311_v10 = vld [vmem:[%s5113_s18 + $0x40] sm:$0xff]  }
 0x402   : > { %v1580_v23 = vpack.c.bf16 %v1477_v22, %v1474_v20  ;;  %4227 = vmatprep.subr.msk.bf16.mxu0 %vm1126_vm3, %v1581_v21  ;;  %v1592_v24 = vsel %vm1126_vm3, %v1581_v21, 0 }
 0x403   : > { %4050 = vmatpush3.bf16.xpose.msra.mxu0 %v1592_v24  ;;  %4098 = vmatmul.mubr.msk.bf16.vlgmr.msra.gmra.mxu1 %vm890_vm2, %v4711_v17 }
 0x404   : > { %4228 = vmatprep.subr.msk.bf16.mxu0 %vm1126_vm3, %v1580_v23  ;;  %v1589_v25 = vsel %vm1126_vm3, %v1580_v23, 0 }
 0x40b   : > { %4052 = vmatpush3.bf16.xpose.msra.mxu0 %v1589_v25 }
 0x40c   : > { %4057 = vmatprep.subr.bf16.mxu0 %v1702_v6 }
 0x412   : > { %4054 = vmatmul.mubr.msk.bf16.vlgmr.msra.gmra.mxu0 %vm1126_vm3, %v1579_v2  ;;  %v1564_v2 = vadd.f32 %v3665_v58, %v1563_v55 }
 0x413   : > { %4058 = vmatpush3.bf16.msra.mxu0 %v1702_v6 }
 0x414   : > { %v1693_v5 = vpack.c.bf16 %v1567_v4, %v1564_v2 }
 0x416   : > { %4059 = vmatprep.subr.bf16.mxu0 %v1693_v5 }
 0x417   : > { %4060 = vmatpush3.bf16.msra.mxu0 %v1693_v5 }
 0x4d2   : > { %v4055_v27 = vpop.f32.mrf.mxu0 }
 0x4d3   : > { %v1645_v31 = vmul.f32 0.25, %v4055_v27 }
 0x4d4   : > { %v1628_v28 = vpop.f32.mrf.mxu0 }
 0x4d5   : > { %v1643_v29 = vmul.f32 0.25, %v1628_v28  ;;  %v1653_v36 = vsel %vm1192_vm4, %v1645_v31, -inf  ;;  %v4303_v28 = vld [vmem:[%s5114_s4 + $0x8] sm:$0xff]  }
 0x4d6   : > { %v4056_v30 = vpop.f32.mrf.mxu0  ;;  %4065 = vmatprep.subr.bf16.mxu0 %v4303_v28 }
 0x4d7   : > { %v1647_v32 = vsel %vm1192_vm4, %v1643_v29, -inf  ;;  %v1646_v35 = vmul.f32 0.25, %v4056_v30  ;;  %v4820_v30 = vpop.f32.mrf.mxu1 }
 0x4d8   : > { %1648 = vmax.xlane.f32.xlu0 %v1647_v32  ;;  %v1631_v33 = vpop.f32.mrf.mxu0 }
 0x4d9   : > { %v1644_v34 = vmul.f32 0.25, %v1631_v33  ;;  %v1656_v38 = vsel %vm1202_vm5, %v1646_v35, -inf }
 0x4db   : > { %v1650_v37 = vsel %vm1192_vm4, %v1644_v34, -inf }
 0x4dc   : > { %1654 = vmax.xlane.f32.xlu0 %v1653_v36  ;;  %1651 = vmax.xlane.f32.xlu1 %v1650_v37 }
 0x4e0   : > { %1657 = vmax.xlane.f32.xlu1 %v1656_v38 }
 0x561   : > { %v1649_v39 = vpop.xlane.xlu0 %1648 }
 0x562   : > { %v1659_v40 = vsub.f32 %v1643_v29, %v1649_v39  ;;  %v4304_v29 = vld [vmem:[%s5111_s3 + $0x58] sm:$0xff]  }
 0x564   : > { %v1663_v41 = vmul.f32 1.442695, %v1659_v40 }
 0x565   : > { %v1655_v42 = vpop.xlane.xlu0 %1654  ;;  %v1652_v43 = vpop.xlane.xlu1 %1651 }
 0x566   : > { %4354 = vpow2.f32 %v1663_v41  ;;  %v1661_v44 = vsub.f32 %v1645_v31, %v1655_v42  ;;  %v1660_v45 = vsub.f32 %v1644_v34, %v1652_v43  ;;  %v4822_v31 = vpop.f32.mrf.mxu1 }
 0x568   : > { %v1667_v46 = vmul.f32 1.442695, %v1661_v44  ;;  %v1665_v47 = vmul.f32 1.442695, %v1660_v45  ;;  %v4824_v32 = vpop.f32.mrf.mxu1 }
 0x569   : > { %v1658_v48 = vpop.xlane.xlu1 %1657 }
 0x56a   : > { %4356 = vpow2.f32 %v1667_v46  ;;  %v1662_v49 = vsub.f32 %v1646_v35, %v1658_v48  ;;  %v4826_v33 = vpop.f32.mrf.mxu1  ;;  %v3709_v35 = vld [vmem:[%s4627_s27 + $0x2] ss:$0 sm:$0xff]  ;;  %v4306_v48 = vld [vmem:[%s5111_s3 + $0x48] sm:$0xff]  }
 0x56b   : > { %4358 = vpow2.f32 %v1665_v47  ;;  %v4305_v47 = vld [vmem:[%s5111_s3 + $0x50] sm:$0xff]  }
 0x56c   : > { %v1669_v50 = vmul.f32 1.442695, %v1662_v49  ;;  %v4099_v34 = vpop.f32.mrf.mxu1  ;;  %v4307_v49 = vld [vmem:[%s5111_s3 + $0x40] sm:$0xff]  }
 0x56d   : > { %v2054_v37 = vadd.f32 %v4099_v34, %v3709_v35 }
 0x56e   : > { %4360 = vpow2.f32 %v1669_v50  ;;  %v2045_v36 = vpop.f32.mrf.mxu1 }
 0x570   : > { %v4100_v38 = vpop.f32.mrf.mxu1 }
 0x571   : > { %v2057_v39 = vadd.f32 %v4100_v38, %v3709_v35 }
 0x572   : > { %v2048_v52 = vpop.f32.mrf.mxu1 }
 0x573   : > { %v4355_v51 = vpop.eup %4354  ;;  %v2153_v40 = vpack.c.bf16 %v2057_v39, %v2054_v37 }
 0x574   : > { %v1671_v53 = vsel %vm1192_vm4, %v4355_v51, 0.0 }
 0x575   : > { %1672 = vadd.xlane.f32.xlu0 %v1671_v53  ;;  %4229 = vmatprep.subr.msk.bf16.mxu1 %vm1126_vm3, %v2153_v40  ;;  %v2164_v50 = vsel %vm1126_vm3, %v2153_v40, 0  ;;  %v2049_v53 = vadd.f32 %v3709_v35, %v2048_v52 }
 0x576   : > { %4114 = vmatpush3.bf16.xpose.msra.mxu1 %v2164_v50  ;;  %v3725_v50 = vld [vmem:[%s4632_s2 + $0x2] ss:$0 sm:$0xff] }
 0x577   : > { %v4357_v54 = vpop.eup %4356 }
 0x578   : > { %v4359_v56 = vpop.eup %4358  ;;  %v1677_v57 = vsel %vm1192_vm4, %v4357_v54, 0.0 }
 0x579   : > { %1678 = vadd.xlane.f32.xlu0 %v1677_v57  ;;  %v1674_v59 = vsel %vm1192_vm4, %v4359_v56, 0.0 }
 0x57a   : > { %1675 = vadd.xlane.f32.xlu1 %v1674_v59 }
 0x57b   : > { %v4361_v60 = vpop.eup %4360 }
 0x57c   : > { %v1680_v0 = vsel %vm1202_vm5, %v4361_v60, 0.0 }
 0x57e   : > { %1681 = vadd.xlane.f32.xlu1 %v1680_v0 }
 0x5fe   : > { %v1673_v11 = vpop.xlane.xlu0 %1672 }
 0x5ff   : > { %4362 = vrcp.f32 %v1673_v11 }
 0x602   : > { %v1679_v12 = vpop.xlane.xlu0 %1678 }
 0x603   : > { %v1676_v14 = vpop.xlane.xlu1 %1675 }
 0x604   : > { %4364 = vrcp.f32 %v1676_v14 }
 0x605   : > { %4366 = vrcp.f32 %v1679_v12 }
 0x607   : > { %v1682_v15 = vpop.xlane.xlu1 %1681 }
 0x608   : > { %4368 = vrcp.f32 %v1682_v15 }
 0x60c   : > { %v4363_v16 = vpop.eup %4362 }
 0x60d   : > { %v1684_v19 = vmul.f32 %v4363_v16, %v4355_v51  ;;  %v2046_v51 = vadd.f32 %v3709_v35, %v2045_v36 }
 0x611   : > { %v4365_v18 = vpop.eup %4364 }
 0x612   : > { %v1686_v20 = vmul.f32 %v4365_v18, %v4359_v56  ;;  %v4367_v21 = vpop.eup %4366 }
 0x613   : > { %v1688_v24 = vmul.f32 %v4367_v21, %v4357_v54  ;;  %v2152_v54 = vpack.c.bf16 %v2049_v53, %v2046_v51 }
 0x614   : > { %v1691_v22 = vpack.c.bf16 %v1686_v20, %v1684_v19 }
 0x615   : > { %v4369_v23 = vpop.eup %4368  ;;  %4230 = vmatprep.subr.msk.bf16.mxu1 %vm1126_vm3, %v2152_v54  ;;  %v2161_v55 = vsel %vm1126_vm3, %v2152_v54, 0 }
 0x616   : > { %4061 = vmatprep.mubr.msk.bf16.mxu0 %vm1192_vm4, %v1691_v22  ;;  %v1690_v25 = vmul.f32 %v4369_v23, %v4361_v60  ;;  %4116 = vmatpush3.bf16.xpose.msra.mxu1 %v2161_v55 }
 0x618   : > { %v1692_v27 = vpack.c.bf16 %v1690_v25, %v1688_v24 }
 0x61a   : > { %4062 = vmatmul.mubr.msk.bf16.vlgmr.msra.gmra.mxu0 %vm1192_vm4, %v1692_v27 }
 0x61b   : > { %4066 = vmatpush3.bf16.msra.mxu0 %v4303_v28 }
 0x61c   : > { %4077 = vmatprep.subr.bf16.mxu0 %v4304_v29 }
 0x6da   : > { %v4063_v41 = vpop.f32.mrf.mxu0 }
 0x6dc   : > { %v1738_v42 = vpop.f32.mrf.mxu0 }
 0x6de   : > { %v4064_v43 = vpop.f32.mrf.mxu0 }
 0x6df   : > { %v1754_v46 = vpack.c.bf16 %v4064_v43, %v4063_v41 }
 0x6e0   : > { %v1741_v44 = vpop.f32.mrf.mxu0 }
 0x6e1   : > { %v1753_v45 = vpack.c.bf16 %v1741_v44, %v1738_v42 }
 0x6e3   : > { %4067 = vmatprep.mubr.msk.bf16.mxu0 %vm1126_vm3, %v1753_v45 }
 0x6e4   : > { %4068 = vmatmul.mubr.msk.bf16.vlgmr.msra.gmra.mxu0 %vm1126_vm3, %v1754_v46 }
 0x6e5   : > { %4078 = vmatpush3.bf16.msra.mxu0 %v4304_v29  ;;  %4085 = vmatprep.mubr.msk.bf16.mxu0 %vm890_vm2, %v4702_v13 }
 0x6e6   : > { %4079 = vmatprep.subr.bf16.mxu0 %v4305_v47 }
 0x6e9   : > { %4080 = vmatpush3.bf16.msra.mxu0 %v4305_v47 }
 0x6ea   : > { %4081 = vmatprep.subr.bf16.mxu0 %v4306_v48 }
 0x6ed   : > { %4082 = vmatpush3.bf16.msra.mxu0 %v4306_v48 }
 0x6ee   : > { %4083 = vmatprep.subr.bf16.mxu0 %v4307_v49 }
 0x6f1   : > { %4084 = vmatpush3.bf16.msra.mxu0 %v4307_v49 }
 0x6f2   : > { %4101 = vmatprep.subr.bf16.mxu0 %v4308_v7 }
 0x6f4   : > { %4086 = vmatmul.mubr.msk.bf16.vlgmr.msra.gmra.mxu0 %vm890_vm2, %v4711_v17 }
 0x6f5   : > { %4109 = vmatprep.mubr.msk.bf16.mxu0 %vm890_vm2, %v4702_v13  ;;  %4102 = vmatpush3.bf16.msra.mxu0 %v4308_v7 }
 0x6f6   : > { %4103 = vmatprep.subr.bf16.mxu0 %v4309_v8 }
 0x6f9   : > { %4104 = vmatpush3.bf16.msra.mxu0 %v4309_v8 }
 0x6fa   : > { %4105 = vmatprep.subr.bf16.mxu0 %v4310_v9 }
 0x6fd   : > { %4106 = vmatpush3.bf16.msra.mxu0 %v4310_v9 }
 0x6fe   : > { %4107 = vmatprep.subr.bf16.mxu0 %v4311_v10 }
 0x701   : > { %4108 = vmatpush3.bf16.msra.mxu0 %v4311_v10 }
 0x704   : > { %4110 = vmatmul.mubr.msk.bf16.vlgmr.msra.gmra.mxu0 %vm890_vm2, %v4711_v17 }
 0x7a4   : > { %v4844_v56 = vpop.f32.mrf.mxu0 }
 0x7a6   : > { %v4846_v57 = vpop.f32.mrf.mxu0 }
 0x7a8   : > { %v4848_v58 = vpop.f32.mrf.mxu0 }
 0x7aa   : > { %v4850_v59 = vpop.f32.mrf.mxu0 }
 0x7b4   : > { %v4087_v60 = vpop.f32.mrf.mxu0 }
 0x7b5   : > { %v1964_v4 = vadd.f32 %v4087_v60, %v3693_v63 }
 0x7b6   : > { %v1955_v61 = vpop.f32.mrf.mxu0 }
 0x7b7   : > { %v1956_v2 = vadd.f32 %v3693_v63, %v1955_v61 }
 0x7b8   : > { %v4088_v62 = vpop.f32.mrf.mxu0 }
 0x7b9   : > { %v1967_v0 = vadd.f32 %v4088_v62, %v3693_v63 }
 0x7ba   : > { %v1958_v1 = vpop.f32.mrf.mxu0 }
 0x7bb   : > { %v1959_v3 = vadd.f32 %v3693_v63, %v1958_v1  ;;  %v2151_v6 = vpack.c.bf16 %v1967_v0, %v1964_v4 }
 0x7bd   : > { %v2150_v5 = vpack.c.bf16 %v1959_v3, %v1956_v2 }
 0x7bf   : > { %4117 = vmatprep.mubr.msk.bf16.mxu1 %vm1126_vm3, %v2150_v5 }
 0x7c0   : > { %4118 = vmatmul.mubr.msk.bf16.vlgmr.msra.gmra.mxu1 %vm1126_vm3, %v2151_v6 }
 0x7c4   : > { %v4111_v42 = vpop.f32.mrf.mxu0 }
 0x7c5   : > { %v2144_v54 = vadd.f32 %v4111_v42, %v3725_v50 }
 0x7c6   : > { %v2135_v45 = vpop.f32.mrf.mxu0 }
 0x7c7   : > { %v2136_v61 = vadd.f32 %v3725_v50, %v2135_v45 }
 0x7c8   : > { %v4112_v51 = vpop.f32.mrf.mxu0 }
 0x7c9   : > { %v2147_v55 = vadd.f32 %v4112_v51, %v3725_v50 }
 0x7ca   : > { %v2138_v62 = vpop.f32.mrf.mxu0 }
 0x7cb   : > { %v2266_v60 = vpack.c.bf16 %v2147_v55, %v2144_v54  ;;  %v2139_v0 = vadd.f32 %v3725_v50, %v2138_v62  ;;  %v1866_v50 = vadd.f32 %v4822_v31, %v4846_v57 }
 0x7cd   : > { %v2274_v63 = vand.u32 %v2266_v60, %v4756_v26  ;;  %v2265_v1 = vpack.c.bf16 %v2139_v0, %v2136_v61  ;;  %v1869_v60 = vadd.f32 %v4826_v33, %v4850_v59 }
 0x7cf   : > { %4121 = vmatprep.subr.bf16.mxu0 %v2274_v63 }
 0x7d0   : > { %4122 = vmatpush3.bf16.msra.mxu0 %v2274_v63  ;;  %v3766_v63 = vld [vmem:[%s4627_s27 + $0x3] ss:$0 sm:$0xff]  ;;  %s5115_s27 = scalar_lea.vmem %s5059_s8, %s4595_s30 }
 0x7d1   : > { %4123 = vmatprep.subr.bf16.mxu0 %v2265_v1 }
 0x7d4   : > { %4124 = vmatpush3.bf16.msra.mxu0 %v2265_v1 }
 0x880   : > { %v4119_v11 = vpop.f32.mrf.mxu1 }
 0x881   : > { %v2217_v16 = vmul.f32 0.25, %v4119_v11 }
 0x882   : > { %v2200_v12 = vpop.f32.mrf.mxu1 }
 0x883   : > { %v2215_v14 = vmul.f32 0.25, %v2200_v12  ;;  %v2225_v22 = vsel %vm1192_vm4, %v2217_v16, -inf }
 0x884   : > { %v4120_v15 = vpop.f32.mrf.mxu1 }
 0x885   : > { %v2219_v18 = vsel %vm1192_vm4, %v2215_v14, -inf  ;;  %v2218_v21 = vmul.f32 0.25, %v4120_v15 }
 0x886   : > { %2220 = vmax.xlane.f32.xlu0 %v2219_v18  ;;  %v2203_v19 = vpop.f32.mrf.mxu1  ;;  %v4312_v18 = vld [vmem:[%s5114_s4 + $0x10] sm:$0xff]  }
 0x887   : > { %v2216_v20 = vmul.f32 0.25, %v2203_v19  ;;  %v2228_v24 = vsel %vm1202_vm5, %v2218_v21, -inf  ;;  %4129 = vmatprep.subr.bf16.mxu1 %v4312_v18  ;;  %v4313_v19 = vld [vmem:[%s4611_s24 + $0x78] sm:$0xff]  }
 0x888   : > { %4130 = vmatpush3.bf16.msra.mxu1 %v4312_v18 }
 0x889   : > { %v2222_v23 = vsel %vm1192_vm4, %v2216_v20, -inf  ;;  %4147 = vmatprep.subr.bf16.mxu1 %v4313_v19 }
 0x88a   : > { %2226 = vmax.xlane.f32.xlu0 %v2225_v22  ;;  %2223 = vmax.xlane.f32.xlu1 %v2222_v23  ;;  %v4319_v22 = vld [vmem:[%s5111_s3 + $0x68] sm:$0xff]   ;;  %v4320_v23 = vld [vmem:[%s5111_s3 + $0x60] sm:$0xff]  }
 0x88e   : > { %2229 = vmax.xlane.f32.xlu1 %v2228_v24 }
 0x90f   : > { %v2221_v25 = vpop.xlane.xlu0 %2220 }
 0x910   : > { %v2231_v27 = vsub.f32 %v2215_v14, %v2221_v25 }
 0x912   : > { %v2235_v28 = vmul.f32 1.442695, %v2231_v27 }
 0x913   : > { %v2227_v29 = vpop.xlane.xlu0 %2226  ;;  %v2224_v34 = vpop.xlane.xlu1 %2223 }
 0x914   : > { %4370 = vpow2.f32 %v2235_v28  ;;  %v2233_v35 = vsub.f32 %v2217_v16, %v2227_v29  ;;  %v2232_v36 = vsub.f32 %v2216_v20, %v2224_v34  ;;  %v4315_v20 = vld [vmem:[%s5111_s3 + $0x78] sm:$0xff]  }
 0x915   : > { %4135 = vmatprep.subr.bf16.mxu0 %v4315_v20 }
 0x916   : > { %v2239_v37 = vmul.f32 1.442695, %v2233_v35  ;;  %v2237_v38 = vmul.f32 1.442695, %v2232_v36  ;;  %v4314_v35 = vld [vmem:[%s4611_s24 + $0x70] sm:$0xff]   ;;  %v4316_v36 = vld [vmem:[%s4611_s24 + $0x68] sm:$0xff]  }
 0x917   : > { %v2230_v39 = vpop.xlane.xlu1 %2229 }
 0x918   : > { %4372 = vpow2.f32 %v2239_v37  ;;  %v2234_v40 = vsub.f32 %v2218_v21, %v2230_v39  ;;  %v4317_v21 = vld [vmem:[%s5111_s3 + $0x70] sm:$0xff]   ;;  %v4318_v37 = vld [vmem:[%s4611_s24 + $0x60] sm:$0xff]  }
 0x919   : > { %4374 = vpow2.f32 %v2237_v38  ;;  %v3750_v39 = vld [vmem:[%s5112_s7 + $0x3] ss:$0 sm:$0xff] }
 0x91a   : > { %v2241_v41 = vmul.f32 1.442695, %v2234_v40 }
 0x91c   : > { %4376 = vpow2.f32 %v2241_v41 }
 0x921   : > { %v4371_v43 = vpop.eup %4370 }
 0x922   : > { %v2243_v44 = vsel %vm1192_vm4, %v4371_v43, 0.0 }
 0x923   : > { %2244 = vadd.xlane.f32.xlu0 %v2243_v44 }
 0x925   : > { %v4373_v46 = vpop.eup %4372 }
 0x926   : > { %v4375_v47 = vpop.eup %4374  ;;  %v2249_v48 = vsel %vm1192_vm4, %v4373_v46, 0.0 }
 0x927   : > { %2250 = vadd.xlane.f32.xlu0 %v2249_v48  ;;  %v2246_v49 = vsel %vm1192_vm4, %v4375_v47, 0.0  ;;  %v1874_v48 = vadd.f32 %v4820_v30, %v4844_v56 }
 0x928   : > { %2247 = vadd.xlane.f32.xlu1 %v2246_v49 }
 0x929   : > { %v4377_v52 = vpop.eup %4376 }
 0x92a   : > { %v2252_v53 = vsel %vm1202_vm5, %v4377_v52, 0.0 }
 0x92c   : > { %2253 = vadd.xlane.f32.xlu1 %v2252_v53  ;;  %v1877_v53 = vadd.f32 %v4824_v32, %v4848_v58 }
 0x9ac   : > { %v2245_v2 = vpop.xlane.xlu0 %2244 }
 0x9ad   : > { %4378 = vrcp.f32 %v2245_v2 }
 0x9b0   : > { %v2251_v3 = vpop.xlane.xlu0 %2250 }
 0x9b1   : > { %v2248_v4 = vpop.xlane.xlu1 %2247 }
 0x9b2   : > { %4380 = vrcp.f32 %v2248_v4 }
 0x9b3   : > { %4382 = vrcp.f32 %v2251_v3 }
 0x9b5   : > { %v2254_v5 = vpop.xlane.xlu1 %2253 }
 0x9b6   : > { %4384 = vrcp.f32 %v2254_v5  ;;  %v4321_v5 = vld [vmem:[%s5113_s18 + $0x78] sm:$0xff]  }
 0x9ba   : > { %v4379_v6 = vpop.eup %4378 }
 0x9bb   : > { %v2256_v8 = vmul.f32 %v4379_v6, %v4371_v43  ;;  %v4322_v6 = vld [vmem:[%s5113_s18 + $0x70] sm:$0xff]  }
 0x9bf   : > { %v4381_v7 = vpop.eup %4380 }
 0x9c0   : > { %v2258_v9 = vmul.f32 %v4381_v7, %v4375_v47  ;;  %v4383_v10 = vpop.eup %4382  ;;  %v4323_v7 = vld [vmem:[%s5113_s18 + $0x68] sm:$0xff]  }
 0x9c1   : > { %v2260_v14 = vmul.f32 %v4383_v10, %v4373_v46 }
 0x9c2   : > { %v2263_v11 = vpack.c.bf16 %v2258_v9, %v2256_v8  ;;  %v4324_v8 = vld [vmem:[%s5113_s18 + $0x60] sm:$0xff]  }
 0x9c3   : > { %v4385_v12 = vpop.eup %4384 }
 0x9c4   : > { %4125 = vmatprep.mubr.msk.bf16.mxu0 %vm1192_vm4, %v2263_v11  ;;  %v2262_v15 = vmul.f32 %v4385_v12, %v4377_v52 }
 0x9c6   : > { %v2264_v16 = vpack.c.bf16 %v2262_v15, %v2260_v14 }
 0x9c8   : > { %4126 = vmatmul.mubr.msk.bf16.vlgmr.msra.gmra.mxu0 %vm1192_vm4, %v2264_v16 }
 0x9c9   : > { %4143 = vmatprep.mubr.msk.bf16.mxu0 %vm890_vm2, %v4702_v13  ;;  %4136 = vmatpush3.bf16.msra.mxu0 %v4315_v20 }
 0x9ca   : > { %4137 = vmatprep.subr.bf16.mxu0 %v4317_v21 }
 0x9cd   : > { %4138 = vmatpush3.bf16.msra.mxu0 %v4317_v21 }
 0x9ce   : > { %4139 = vmatprep.subr.bf16.mxu0 %v4319_v22 }
 0x9d1   : > { %4140 = vmatpush3.bf16.msra.mxu0 %v4319_v22 }
 0x9d2   : > { %4141 = vmatprep.subr.bf16.mxu0 %v4320_v23 }
 0x9d5   : > { %4142 = vmatpush3.bf16.msra.mxu0 %v4320_v23 }
 0x9d6   : > { %4159 = vmatprep.subr.bf16.mxu0 %v4321_v5 }
 0x9d8   : > { %4144 = vmatmul.mubr.msk.bf16.vlgmr.msra.gmra.mxu0 %vm890_vm2, %v4711_v17 }
 0x9d9   : > { %4167 = vmatprep.mubr.msk.bf16.mxu0 %vm890_vm2, %v4702_v13  ;;  %4160 = vmatpush3.bf16.msra.mxu0 %v4321_v5 }
 0x9da   : > { %4161 = vmatprep.subr.bf16.mxu0 %v4322_v6 }
 0x9dd   : > { %4162 = vmatpush3.bf16.msra.mxu0 %v4322_v6 }
 0x9de   : > { %4163 = vmatprep.subr.bf16.mxu0 %v4323_v7 }
 0x9e1   : > { %4164 = vmatpush3.bf16.msra.mxu0 %v4323_v7  ;;  %v4325_v7 = vld [vmem:[%s5114_s4 + $0x18] sm:$0xff]  }
 0x9e2   : > { %4165 = vmatprep.subr.bf16.mxu0 %v4324_v8 }
 0x9e5   : > { %4166 = vmatpush3.bf16.msra.mxu0 %v4324_v8 }
 0x9e8   : > { %4168 = vmatmul.mubr.msk.bf16.vlgmr.msra.gmra.mxu0 %vm890_vm2, %v4711_v17 }
 0xa88   : > { %v4127_v24 = vpop.f32.mrf.mxu0 }
 0xa8a   : > { %v2310_v25 = vpop.f32.mrf.mxu0 }
 0xa8c   : > { %v4128_v27 = vpop.f32.mrf.mxu0 }
 0xa8d   : > { %v2326_v34 = vpack.c.bf16 %v4128_v27, %v4127_v24 }
 0xa8e   : > { %v2313_v28 = vpop.f32.mrf.mxu0 }
 0xa8f   : > { %v2325_v29 = vpack.c.bf16 %v2313_v28, %v2310_v25 }
 0xa91   : > { %4131 = vmatprep.mubr.msk.bf16.mxu1 %vm1126_vm3, %v2325_v29 }
 0xa92   : > { %4132 = vmatmul.mubr.msk.bf16.vlgmr.msra.gmra.mxu1 %vm1126_vm3, %v2326_v34 }
 0xa93   : > { %4148 = vmatpush3.bf16.msra.mxu1 %v4313_v19  ;;  %4155 = vmatprep.mubr.msk.bf16.mxu1 %vm890_vm2, %v4702_v13 }
 0xa94   : > { %4149 = vmatprep.subr.bf16.mxu1 %v4314_v35 }
 0xa97   : > { %4150 = vmatpush3.bf16.msra.mxu1 %v4314_v35 }
 0xa98   : > { %4151 = vmatprep.subr.bf16.mxu1 %v4316_v36  ;;  %v4145_v38 = vpop.f32.mrf.mxu0 }
 0xa99   : > { %v2479_v41 = vadd.f32 %v4145_v38, %v3750_v39 }
 0xa9a   : > { %v2470_v40 = vpop.f32.mrf.mxu0 }
 0xa9b   : > { %4152 = vmatpush3.bf16.msra.mxu1 %v4316_v36  ;;  %v2471_v43 = vadd.f32 %v3750_v39, %v2470_v40 }
 0xa9c   : > { %4153 = vmatprep.subr.bf16.mxu1 %v4318_v37  ;;  %v4146_v42 = vpop.f32.mrf.mxu0 }
 0xa9d   : > { %v2482_v44 = vadd.f32 %v4146_v42, %v3750_v39 }
 0xa9e   : > { %v2473_v45 = vpop.f32.mrf.mxu0 }
 0xa9f   : > { %4154 = vmatpush3.bf16.msra.mxu1 %v4318_v37  ;;  %v2666_v13 = vpack.c.bf16 %v2482_v44, %v2479_v41  ;;  %v2474_v46 = vadd.f32 %v3750_v39, %v2473_v45 }
 0xaa1   : > { %v2665_v47 = vpack.c.bf16 %v2474_v46, %v2471_v43  ;;  %v3782_v46 = vld [vmem:[%s4632_s2 + $0x3] ss:$0 sm:$0xff] }
 0xaa2   : > { %4156 = vmatmul.mubr.msk.bf16.vlgmr.msra.gmra.mxu1 %vm890_vm2, %v4711_v17 }
 0xaa3   : > { %4175 = vmatprep.mubr.msk.bf16.mxu1 %vm1126_vm3, %v2665_v47 }
 0xaa8   : > { %v4169_v39 = vpop.f32.mrf.mxu0 }
 0xaaa   : > { %v2650_v42 = vpop.f32.mrf.mxu0 }
 0xaac   : > { %v4170_v47 = vpop.f32.mrf.mxu0 }
 0xb52   : > { %v4133_v49 = vpop.f32.mrf.mxu1 }
 0xb53   : > { %v4900_v51 = vadd.f32 %v4133_v49, %v1874_v48 }
 0xb54   : > { %v2376_v52 = vpop.f32.mrf.mxu1 }
 0xb55   : > { %v4904_v54 = vadd.f32 %v2376_v52, %v1866_v50  ;;  %v2659_v50 = vadd.f32 %v4169_v39, %v3782_v46  ;;  %v2662_v52 = vadd.f32 %v4170_v47, %v3782_v46 }
 0xb56   : > { %v4134_v55 = vpop.f32.mrf.mxu1 }
 0xb57   : > { %v4908_v61 = vadd.f32 %v4134_v55, %v1877_v53  ;;  %v2781_v53 = vpack.c.bf16 %v2662_v52, %v2659_v50  ;;  %v2651_v55 = vadd.f32 %v3782_v46, %v2650_v42 }
 0xb58   : > { %v2379_v62 = vpop.f32.mrf.mxu1 }
 0xb59   : > { %v4910_v30 = vadd.f32 %v2379_v62, %v1869_v60  ;;  %v2653_v60 = vpop.f32.mrf.mxu0  ;;  %v2789_v62 = vand.u32 %v2781_v53, %v4756_v26 }
 0xb5b   : > { %4179 = vmatprep.subr.bf16.mxu0 %v2789_v62 }
 0xb5c   : > { %4180 = vmatpush3.bf16.msra.mxu0 %v2789_v62 }
 0xb62   : > { %v4157_v56 = vpop.f32.mrf.mxu1 }
 0xb63   : > { %v2569_v0 = vadd.f32 %v4157_v56, %v3766_v63  ;;  %v2654_v56 = vadd.f32 %v3782_v46, %v2653_v60 }
 0xb64   : > { %v2560_v31 = vpop.f32.mrf.mxu1 }
 0xb65   : > { %v2561_v58 = vadd.f32 %v3766_v63, %v2560_v31 }
 0xb66   : > { %v4158_v57 = vpop.f32.mrf.mxu1 }
 0xb67   : > { %v2572_v1 = vadd.f32 %v4158_v57, %v3766_v63 }
 0xb68   : > { %v2563_v32 = vpop.f32.mrf.mxu1 }
 0xb69   : > { %v2668_v2 = vpack.c.bf16 %v2572_v1, %v2569_v0  ;;  %v2564_v3 = vadd.f32 %v3766_v63, %v2563_v32  ;;  %v2780_v63 = vpack.c.bf16 %v2654_v56, %v2651_v55 }
 0xb6b   : > { %v2667_v4 = vpack.c.bf16 %v2564_v3, %v2561_v58  ;;  %4231 = vmatprep.subr.msk.bf16.mxu1 %vm1126_vm3, %v2668_v2  ;;  %v2679_v33 = vsel %vm1126_vm3, %v2668_v2, 0  ;;  %4181 = vmatprep.subr.bf16.mxu0 %v2780_v63 }
 0xb6c   : > { %4172 = vmatpush3.bf16.xpose.msra.mxu1 %v2679_v33  ;;  %4182 = vmatpush3.bf16.msra.mxu0 %v2780_v63 }
 0xb6d   : > { %4232 = vmatprep.subr.msk.bf16.mxu1 %vm1126_vm3, %v2667_v4  ;;  %v2676_v59 = vsel %vm1126_vm3, %v2667_v4, 0 }
 0xb74   : > { %4174 = vmatpush3.bf16.xpose.msra.mxu1 %v2676_v59 }
 0xb75   : > { %4187 = vmatprep.subr.bf16.mxu1 %v4325_v7 }
 0xb7b   : > { %4176 = vmatmul.mubr.msk.bf16.vlgmr.msra.gmra.mxu1 %vm1126_vm3, %v2666_v13 }
 0xb7c   : > { %4188 = vmatpush3.bf16.msra.mxu1 %v4325_v7 }
 0xc3b   : > { %v4177_v9 = vpop.f32.mrf.mxu1 }
 0xc3c   : > { %v2732_v14 = vmul.f32 0.25, %v4177_v9 }
 0xc3d   : > { %v2715_v10 = vpop.f32.mrf.mxu1 }
 0xc3e   : > { %v2730_v11 = vmul.f32 0.25, %v2715_v10  ;;  %v2740_v20 = vsel %vm1192_vm4, %v2732_v14, -inf }
 0xc3f   : > { %v4178_v12 = vpop.f32.mrf.mxu1 }
 0xc40   : > { %v2734_v15 = vsel %vm1192_vm4, %v2730_v11, -inf  ;;  %v2733_v19 = vmul.f32 0.25, %v4178_v12 }
 0xc41   : > { %2735 = vmax.xlane.f32.xlu0 %v2734_v15  ;;  %v2718_v16 = vpop.f32.mrf.mxu1 }
 0xc42   : > { %v2731_v18 = vmul.f32 0.25, %v2718_v16  ;;  %v2743_v22 = vsel %vm1202_vm5, %v2733_v19, -inf }
 0xc44   : > { %v2737_v21 = vsel %vm1192_vm4, %v2731_v18, -inf }
 0xc45   : > { %2741 = vmax.xlane.f32.xlu0 %v2740_v20  ;;  %2738 = vmax.xlane.f32.xlu1 %v2737_v21 }
 0xc49   : > { %2744 = vmax.xlane.f32.xlu1 %v2743_v22 }
 0xcca   : > { %v2736_v17 = vpop.xlane.xlu0 %2735 }
 0xccb   : > { %v2746_v23 = vsub.f32 %v2730_v11, %v2736_v17 }
 0xccd   : > { %v2750_v24 = vmul.f32 1.442695, %v2746_v23 }
 0xcce   : > { %v2742_v25 = vpop.xlane.xlu0 %2741  ;;  %v2739_v27 = vpop.xlane.xlu1 %2738 }
 0xccf   : > { %4386 = vpow2.f32 %v2750_v24  ;;  %v2748_v28 = vsub.f32 %v2732_v14, %v2742_v25  ;;  %v2747_v29 = vsub.f32 %v2731_v18, %v2739_v27  ;;  %v3798_v18 = vld [vmem:[%s5115_s27] ss:$0 sm:$0xff] }
 0xcd0   : > { %v4426_v27 = vld [vmem:[%s4682_s11] sm:$0xff] }
 0xcd1   : > { %v2754_v34 = vmul.f32 1.442695, %v2748_v28  ;;  %v2752_v35 = vmul.f32 1.442695, %v2747_v29 }
 0xcd2   : > { %v2745_v36 = vpop.xlane.xlu1 %2744 }
 0xcd3   : > { %4388 = vpow2.f32 %v2754_v34  ;;  %v2749_v37 = vsub.f32 %v2733_v19, %v2745_v36 }
 0xcd4   : > { %4390 = vpow2.f32 %v2752_v35  ;;  %v4427_v35 = vld [vmem:[%s4682_s11 + $0x10] sm:$0xff] }
 0xcd5   : > { %v2756_v38 = vmul.f32 1.442695, %v2749_v37  ;;  %v4428_v37 = vld [vmem:[%s4682_s11 + $0x8] sm:$0xff] }
 0xcd7   : > { %4392 = vpow2.f32 %v2756_v38 }
 0xcdc   : > { %v4387_v40 = vpop.eup %4386 }
 0xcdd   : > { %v2758_v41 = vsel %vm1192_vm4, %v4387_v40, 0.0 }
 0xcde   : > { %2759 = vadd.xlane.f32.xlu0 %v2758_v41 }
 0xce0   : > { %v4389_v43 = vpop.eup %4388 }
 0xce1   : > { %v4391_v44 = vpop.eup %4390  ;;  %v2764_v45 = vsel %vm1192_vm4, %v4389_v43, 0.0 }
 0xce2   : > { %2765 = vadd.xlane.f32.xlu0 %v2764_v45  ;;  %v2761_v13 = vsel %vm1192_vm4, %v4391_v44, 0.0 }
 0xce3   : > { %2762 = vadd.xlane.f32.xlu1 %v2761_v13 }
 0xce4   : > { %v4393_v48 = vpop.eup %4392 }
 0xce5   : > { %v2767_v49 = vsel %vm1202_vm5, %v4393_v48, 0.0 }
 0xce7   : > { %2768 = vadd.xlane.f32.xlu1 %v2767_v49 }
 0xd67   : > { %v2760_v31 = vpop.xlane.xlu0 %2759 }
 0xd68   : > { %4394 = vrcp.f32 %v2760_v31 }
 0xd6b   : > { %v2766_v57 = vpop.xlane.xlu0 %2765 }
 0xd6c   : > { %v2763_v0 = vpop.xlane.xlu1 %2762 }
 0xd6d   : > { %4396 = vrcp.f32 %v2763_v0  ;;  %v4326_v0 = vld [vmem:[%s4655_s6 + $0x18] sm:$0xff]  }
 0xd6e   : > { %4398 = vrcp.f32 %v2766_v57  ;;  %4193 = vmatprep.subr.bf16.mxu0 %v4326_v0 }
 0xd70   : > { %v2769_v1 = vpop.xlane.xlu1 %2768 }
 0xd71   : > { %4400 = vrcp.f32 %v2769_v1  ;;  %v4327_v1 = vld [vmem:[%s4655_s6 + $0x10] sm:$0xff]  }
 0xd75   : > { %v4395_v32 = vpop.eup %4394 }
 0xd76   : > { %v2771_v2 = vmul.f32 %v4395_v32, %v4387_v40  ;;  %v4429_v40 = vld [vmem:[%s4682_s11 + $0x18] sm:$0x1]  ;;  %v4328_v32 = vld [vmem:[%s4655_s6 + $0x8] sm:$0xff]  }
 0xd7a   : > { %v4397_v58 = vpop.eup %4396 }
 0xd7b   : > { %v2773_v3 = vmul.f32 %v4397_v58, %v4391_v44  ;;  %v4399_v26 = vpop.eup %4398  ;;  %v4329_v58 = vld [vmem:[%s4655_s6] sm:$0xff]  }
 0xd7c   : > { %v2775_v59 = vmul.f32 %v4399_v26, %v4389_v43 }
 0xd7d   : > { %v2778_v4 = vpack.c.bf16 %v2773_v3, %v2771_v2 }
 0xd7e   : > { %v4401_v33 = vpop.eup %4400 }
 0xd7f   : > { %4183 = vmatprep.mubr.msk.bf16.mxu0 %vm1192_vm4, %v2778_v4  ;;  %v2777_v5 = vmul.f32 %v4401_v33, %v4393_v48 }
 0xd81   : > { %v2779_v6 = vpack.c.bf16 %v2777_v5, %v2775_v59 }
 0xd83   : > { %4184 = vmatmul.mubr.msk.bf16.vlgmr.msra.gmra.mxu0 %vm1192_vm4, %v2779_v6 }
 0xd84   : > { %4194 = vmatpush3.bf16.msra.mxu0 %v4326_v0 }
 0xd85   : > { %4195 = vmatprep.subr.bf16.mxu0 %v4327_v1 }
 0xd88   : > { %4196 = vmatpush3.bf16.msra.mxu0 %v4327_v1 }
 0xd89   : > { %4197 = vmatprep.subr.bf16.mxu0 %v4328_v32 }
 0xd8c   : > { %4198 = vmatpush3.bf16.msra.mxu0 %v4328_v32 }
 0xd8d   : > { %4199 = vmatprep.subr.bf16.mxu0 %v4329_v58 }
 0xd90   : > { %4200 = vmatpush3.bf16.msra.mxu0 %v4329_v58 }
 0xe43   : > { %v4185_v8 = vpop.f32.mrf.mxu0 }
 0xe45   : > { %v2825_v9 = vpop.f32.mrf.mxu0 }
 0xe47   : > { %v4186_v10 = vpop.f32.mrf.mxu0 }
 0xe48   : > { %v2841_v14 = vpack.c.bf16 %v4186_v10, %v4185_v8 }
 0xe49   : > { %v2828_v11 = vpop.f32.mrf.mxu0 }
 0xe4a   : > { %v2840_v12 = vpack.c.bf16 %v2828_v11, %v2825_v9 }
 0xe4c   : > { %4189 = vmatprep.mubr.msk.bf16.mxu1 %vm1126_vm3, %v2840_v12 }
 0xe4d   : > { %4190 = vmatmul.mubr.msk.bf16.vlgmr.msra.gmra.mxu1 %vm1126_vm3, %v2841_v14  ;;  %v3799_v14 = vld [vmem:[%s5116_s5] ss:$0 sm:$0xff] }
 0xf0d   : > { %v4191_v15 = vpop.f32.mrf.mxu1 }
 0xf0e   : > { %v2908_v16 = vadd.f32 %v4191_v15, %v4900_v51 }
 0xf0f   : > { %v2891_v19 = vpop.f32.mrf.mxu1 }
 0xf10   : > { %v2906_v20 = vadd.f32 %v2891_v19, %v4904_v54  ;;  %v2919_v22 = vadd.f32 %v3798_v18, %v2908_v16 }
 0xf11   : > { %v4192_v21 = vpop.f32.mrf.mxu1 }
 0xf12   : > { %v2917_v17 = vadd.f32 %v3798_v18, %v2906_v20  ;;  %v2909_v23 = vadd.f32 %v4192_v21, %v4908_v61  ;;  %v2923_v36 = vadd.f32 %v4427_v35, %v2919_v22  ;;  %v3800_v21 = vld [vmem:[%s5117_s28] ss:$0 sm:$0xff] }
 0xf13   : > { %v2894_v24 = vpop.f32.mrf.mxu1 }
 0xf14   : > { %v2907_v25 = vadd.f32 %v2894_v24, %v4910_v30  ;;  %v2921_v51 = vadd.f32 %v4426_v27, %v2917_v17  ;;  %v2920_v28 = vadd.f32 %v3798_v18, %v2909_v23  ;;  %v2931_v39 = vsel %vm890_vm2, %v2923_v36, 0.0 }
 0xf16   : > { %v2918_v29 = vadd.f32 %v3798_v18, %v2907_v25  ;;  %v2925_v34 = vsel %vm890_vm2, %v2921_v51, 0.0  ;;  %v2924_v61 = vadd.f32 %v4429_v40, %v2920_v28  ;;  %v4335_v40 = vld [vmem:[%s4669_s29 + $0x10] sm:$0xff]  }
 0xf17   : > { %2926 = vadd.xlane.f32.xlu0 %v2925_v34 }
 0xf18   : > { %v2922_v54 = vadd.f32 %v4428_v37, %v2918_v29  ;;  %v2935_v30 = vsel %vm2934_vm8, %v2924_v61, 0.0  ;;  %v4331_v37 = vld [vmem:[%s4669_s29 + $0x30] sm:$0xff]  }
 0xf1a   : > { %v2928_v38 = vsel %vm890_vm2, %v2922_v54, 0.0 }
 0xf1b   : > { %2929 = vadd.xlane.f32.xlu1 %v2928_v38  ;;  %2932 = vadd.xlane.f32.xlu0 %v2931_v39  ;;  %v4333_v38 = vld [vmem:[%s4669_s29 + $0x20] sm:$0xff]   ;;  %v4334_v39 = vld [vmem:[%s4669_s29 + $0x18] sm:$0xff]  }
 0xf1f   : > { %2936 = vadd.xlane.f32.xlu1 %v2935_v30  ;;  %v4337_v30 = vld [vmem:[%s4669_s29] sm:$0xff]  }
 0xfa0   : > { %v2927_v41 = vpop.xlane.xlu0 %2926 }
 0xfa1   : > { %v2939_v42 = vmul.f32 0.015625, %v2927_v41  ;;  %v3801_v41 = vld [vmem:[%s5118_s19] ss:$0 sm:$0xff] }
 0xfa3   : > { %v2943_v43 = vsub.f32 %v2921_v51, %v2939_v42 }
 0xfa4   : > { %v2930_v44 = vpop.xlane.xlu1 %2929  ;;  %v2933_v45 = vpop.xlane.xlu0 %2932 }
 0xfa5   : > { %v2940_v13 = vmul.f32 0.015625, %v2930_v44  ;;  %v2941_v46 = vmul.f32 0.015625, %v2933_v45  ;;  %v2947_v47 = vmul.f32 %v2943_v43, %v2943_v43 }
 0xfa7   : > { %v2944_v48 = vsub.f32 %v2922_v54, %v2940_v13  ;;  %v2945_v49 = vsub.f32 %v2923_v36, %v2941_v46  ;;  %v2951_v50 = vsel %vm890_vm2, %v2947_v47, 0.0  ;;  %v4330_v36 = vld [vmem:[%s4669_s29 + $0x38] sm:$0xff]   ;;  %v4332_v54 = vld [vmem:[%s4669_s29 + $0x28] sm:$0xff]  }
 0xfa8   : > { %v2937_v52 = vpop.xlane.xlu1 %2936  ;;  %2952 = vadd.xlane.f32.xlu0 %v2951_v50  ;;  %4205 = vmatprep.subr.bf16.mxu1 %v4330_v36 }
 0xfa9   : > { %v2942_v53 = vmul.f32 0.015625, %v2937_v52  ;;  %v2948_v55 = vmul.f32 %v2944_v48, %v2944_v48  ;;  %v2949_v60 = vmul.f32 %v2945_v49, %v2945_v49  ;;  %4206 = vmatpush3.bf16.msra.mxu1 %v4330_v36 }
 0xfaa   : > { %4207 = vmatprep.subr.bf16.mxu1 %v4331_v37 }
 0xfab   : > { %v2946_v62 = vsub.f32 %v2924_v61, %v2942_v53  ;;  %v2954_v56 = vsel %vm890_vm2, %v2948_v55, 0.0  ;;  %v2957_v63 = vsel %vm890_vm2, %v2949_v60, 0.0  ;;  %v4336_v61 = vld [vmem:[%s4669_s29 + $0x8] sm:$0xff]  }
 0xfac   : > { %2955 = vadd.xlane.f32.xlu1 %v2954_v56  ;;  %2958 = vadd.xlane.f32.xlu0 %v2957_v63 }
 0xfad   : > { %v2950_v31 = vmul.f32 %v2946_v62, %v2946_v62  ;;  %4208 = vmatpush3.bf16.msra.mxu1 %v4331_v37 }
 0xfae   : > { %4209 = vmatprep.subr.bf16.mxu1 %v4332_v54 }
 0xfaf   : > { %v2960_v57 = vsel %vm2934_vm8, %v2950_v31, 0.0 }
 0xfb0   : > { %2961 = vadd.xlane.f32.xlu1 %v2960_v57 }
 0xfb1   : > { %4210 = vmatpush3.bf16.msra.mxu1 %v4332_v54 }
 0xfb2   : > { %4211 = vmatprep.subr.bf16.mxu1 %v4333_v38 }
 0xfb5   : > { %4212 = vmatpush3.bf16.msra.mxu1 %v4333_v38 }
 0xfb6   : > { %4213 = vmatprep.subr.bf16.mxu1 %v4334_v39 }
 0xfb9   : > { %4214 = vmatpush3.bf16.msra.mxu1 %v4334_v39 }
 0xfba   : > { %4215 = vmatprep.subr.bf16.mxu1 %v4335_v40 }
 0xfbd   : > { %4216 = vmatpush3.bf16.msra.mxu1 %v4335_v40 }
 0xfbe   : > { %4217 = vmatprep.subr.bf16.mxu1 %v4336_v61 }
 0xfc1   : > { %4218 = vmatpush3.bf16.msra.mxu1 %v4336_v61 }
 0xfc2   : > { %4219 = vmatprep.subr.bf16.mxu1 %v4337_v30 }
 0xfc5   : > { %4220 = vmatpush3.bf16.msra.mxu1 %v4337_v30 }
0x1031   : > { %v2953_v2 = vpop.xlane.xlu0 %2952 }
0x1032   : > { %v2963_v3 = vmul.f32 0.015625, %v2953_v2 }
0x1034   : > { %v2967_v26 = vadd.f32 1e-05, %v2963_v3 }
0x1035   : > { %v2956_v4 = vpop.xlane.xlu1 %2955  ;;  %v2959_v33 = vpop.xlane.xlu0 %2958 }
0x1036   : > { %4402 = vrsqrt.f32 %v2967_v26  ;;  %v2964_v59 = vmul.f32 0.015625, %v2956_v4  ;;  %v2965_v5 = vmul.f32 0.015625, %v2959_v33 }
0x1038   : > { %v2968_v6 = vadd.f32 1e-05, %v2964_v59  ;;  %v2969_v7 = vadd.f32 1e-05, %v2965_v5 }
0x1039   : > { %v2962_v8 = vpop.xlane.xlu1 %2961 }
0x103a   : > { %4404 = vrsqrt.f32 %v2968_v6  ;;  %v2966_v9 = vmul.f32 0.015625, %v2962_v8 }
0x103b   : > { %4406 = vrsqrt.f32 %v2969_v7 }
0x103c   : > { %v2970_v10 = vadd.f32 1e-05, %v2966_v9 }
0x103e   : > { %4408 = vrsqrt.f32 %v2970_v10 }
0x1043   : > { %v4403_v11 = vpop.eup %4402 }
0x1044   : > { %v2975_v12 = vmul.f32 %v4403_v11, %v2943_v43 }
0x1046   : > { %v2986_v19 = vmul.f32 %v3799_v14, %v2975_v12 }
0x1047   : > { %v4405_v15 = vpop.eup %4404 }
0x1048   : > { %v4407_v16 = vpop.eup %4406  ;;  %v2976_v18 = vmul.f32 %v4405_v15, %v2944_v48  ;;  %v4974_v24 = vadd.f32 %v3800_v21, %v2986_v19 }
0x1049   : > { %v2977_v20 = vmul.f32 %v4407_v16, %v2945_v49 }
0x104a   : > { %v2987_v22 = vmul.f32 %v3799_v14, %v2976_v18 }
0x104b   : > { %v4409_v17 = vpop.eup %4408  ;;  %v2988_v27 = vmul.f32 %v3799_v14, %v2977_v20 }
0x104c   : > { %v2978_v23 = vmul.f32 %v4409_v17, %v2946_v62  ;;  %v4976_v25 = vadd.f32 %v3800_v21, %v2987_v22 }
0x104d   : > { %v4981_v29 = vadd.f32 %v3800_v21, %v2988_v27  ;;  %v3808_v27 = vld [vmem:[%s818_s20] ss:$0 sm:$0xff] }
0x104e   : > { %v3001_v51 = vpack.c.bf16 %v4976_v25, %v4974_v24  ;;  %v2989_v28 = vmul.f32 %v3799_v14, %v2978_v23 }
0x1050   : > { %4201 = vmatprep.mubr.msk.bf16.mxu0 %vm890_vm2, %v3001_v51  ;;  %v4983_v34 = vadd.f32 %v3800_v21, %v2989_v28 }
0x1052   : > { %v3002_v35 = vpack.c.bf16 %v4983_v34, %v4981_v29 }
0x1054   : > { %4202 = vmatmul.mubr.msk.bf16.vlgmr.msra.gmra.mxu0 %vm890_vm2, %v3002_v35 }
0x1114   : > { %v4203_v42 = vpop.f32.mrf.mxu0 }
0x1115   : > { %v3091_v43 = vadd.f32 %v4203_v42, %v3801_v41 }
0x1116   : > { %v3082_v44 = vpop.f32.mrf.mxu0 }
0x1117   : > { %v3103_v45 = vmul.f32 0.044715, %v3091_v43  ;;  %v3083_v13 = vadd.f32 %v3801_v41, %v3082_v44  ;;  %v3099_v16 = vmul.f32 0.5, %v3091_v43 }
0x1118   : > { %v4204_v46 = vpop.f32.mrf.mxu0 }
0x1119   : > { %v3107_v47 = vmul.f32 %v3103_v45, %v3091_v43  ;;  %v3101_v48 = vmul.f32 0.044715, %v3083_v13  ;;  %v3094_v49 = vadd.f32 %v4204_v46, %v3801_v41  ;;  %v3097_v12 = vmul.f32 0.5, %v3083_v13 }
0x111a   : > { %v3085_v50 = vpop.f32.mrf.mxu0 }
0x111b   : > { %v3111_v52 = vmul.f32 %v3107_v47, %v3091_v43  ;;  %v3105_v53 = vmul.f32 %v3101_v48, %v3083_v13  ;;  %v3104_v55 = vmul.f32 0.044715, %v3094_v49  ;;  %v3086_v60 = vadd.f32 %v3801_v41, %v3085_v50 }
0x111c   : > { %v3100_v10 = vmul.f32 0.5, %v3094_v49 }
0x111d   : > { %v3115_v62 = vadd.f32 %v3111_v52, %v3091_v43  ;;  %v3109_v56 = vmul.f32 %v3105_v53, %v3083_v13  ;;  %v3108_v63 = vmul.f32 %v3104_v55, %v3094_v49  ;;  %v3102_v31 = vmul.f32 0.044715, %v3086_v60 }
0x111e   : > { %v3098_v14 = vmul.f32 0.5, %v3086_v60 }
0x111f   : > { %v3112_v57 = vmul.f32 %v3108_v63, %v3094_v49  ;;  %v3106_v0 = vmul.f32 %v3102_v31, %v3086_v60  ;;  %v3113_v1 = vadd.f32 %v3109_v56, %v3083_v13  ;;  %v3119_v32 = vmul.f32 0.7978846, %v3115_v62 }
0x1121   : > { %v3116_v58 = vadd.f32 %v3112_v57, %v3094_v49  ;;  %v3110_v2 = vmul.f32 %v3106_v0, %v3086_v60  ;;  %v3117_v3 = vmul.f32 0.7978846, %v3113_v1 }
0x1123   : > { %v3120_v26 = vmul.f32 0.7978846, %v3116_v58  ;;  %v3114_v4 = vadd.f32 %v3110_v2, %v3086_v60  ;;  %4410 = vtanh.f32 %v3117_v3 }
0x1124   : > { %4412 = vtanh.f32 %v3119_v32 }
0x1125   : > { %4414 = vtanh.f32 %v3120_v26  ;;  %v3118_v33 = vmul.f32 0.7978846, %v3114_v4 }
0x1127   : > { %4416 = vtanh.f32 %v3118_v33 }
0x1130   : > { %v4411_v59 = vpop.eup %4410 }
0x1131   : > { %v4413_v5 = vpop.eup %4412  ;;  %v3125_v7 = vadd.f32 1.0, %v4411_v59 }
0x1132   : > { %v4415_v6 = vpop.eup %4414  ;;  %v3127_v11 = vadd.f32 1.0, %v4413_v5 }
0x1133   : > { %v3128_v8 = vadd.f32 1.0, %v4415_v6  ;;  %v3129_v19 = vmul.f32 %v3125_v7, %v3097_v12 }
0x1134   : > { %v4417_v9 = vpop.eup %4416  ;;  %v3131_v21 = vmul.f32 %v3127_v11, %v3099_v16 }
0x1135   : > { %v3126_v15 = vadd.f32 1.0, %v4417_v9  ;;  %v3132_v18 = vmul.f32 %v3128_v8, %v3100_v10  ;;  %v3817_v8 = vld [vmem:[%s821_s1] ss:$0 sm:$0xff] }
0x1136   : > { %v3818_v10 = vld [vmem:[%s824_s26] ss:$0 sm:$0xff] }
0x1137   : > { %v3130_v20 = vmul.f32 %v3126_v15, %v3098_v14  ;;  %v3134_v17 = vpack.c.bf16 %v3132_v18, %v3131_v21 }
0x1139   : > { %v3133_v22 = vpack.c.bf16 %v3130_v20, %v3129_v19 }
0x113b   : > { %4221 = vmatprep.mubr.bf16.mxu1 %v3133_v22 }
0x113c   : > { %4222 = vmatmul.mubr.bf16.vlgmr.msra.gmra.mxu1 %v3134_v17 }
0x11fc   : > { %v4223_v23 = vpop.f32.mrf.mxu1 }
0x11fd   : > { %v3249_v28 = vadd.f32 %v4223_v23, %v3808_v27 }
0x11fe   : > { %v3240_v51 = vpop.f32.mrf.mxu1 }
0x11ff   : > { %v3241_v35 = vadd.f32 %v3808_v27, %v3240_v51  ;;  %v3257_v61 = vadd.f32 %v3249_v28, %v4981_v29 }
0x1200   : > { %v4224_v36 = vpop.f32.mrf.mxu1 }
0x1201   : > { %v3255_v37 = vadd.f32 %v3241_v35, %v4974_v24  ;;  %v3252_v38 = vadd.f32 %v4224_v36, %v3808_v27  ;;  %v3265_v42 = vsel %vm890_vm2, %v3257_v61, 0.0 }
0x1202   : > { %v3243_v54 = vpop.f32.mrf.mxu1 }
0x1203   : > { %v3244_v39 = vadd.f32 %v3808_v27, %v3243_v54  ;;  %v3259_v40 = vsel %vm890_vm2, %v3255_v37, 0.0  ;;  %v3258_v43 = vadd.f32 %v3252_v38, %v4983_v34 }
0x1204   : > { %3260 = vadd.xlane.f32.xlu0 %v3259_v40 }
0x1205   : > { %v3256_v30 = vadd.f32 %v3244_v39, %v4976_v25  ;;  %v3268_v24 = vsel %vm2934_vm8, %v3258_v43, 0.0 }
0x1207   : > { %v3262_v41 = vsel %vm890_vm2, %v3256_v30, 0.0 }
0x1208   : > { %3263 = vadd.xlane.f32.xlu1 %v3262_v41  ;;  %3266 = vadd.xlane.f32.xlu0 %v3265_v42 }
0x120c   : > { %3269 = vadd.xlane.f32.xlu1 %v3268_v24 }
0x128d   : > { %v3261_v44 = vpop.xlane.xlu0 %3260 }
0x128e   : > { %v3271_v45 = vmul.f32 0.015625, %v3261_v44 }
0x1290   : > { %v3275_v13 = vsub.f32 %v3255_v37, %v3271_v45 }
0x1291   : > { %v3264_v46 = vpop.xlane.xlu1 %3263  ;;  %v3267_v47 = vpop.xlane.xlu0 %3266 }
0x1292   : > { %v3272_v29 = vmul.f32 0.015625, %v3264_v46  ;;  %v3273_v48 = vmul.f32 0.015625, %v3267_v47  ;;  %v3279_v49 = vmul.f32 %v3275_v13, %v3275_v13 }
0x1294   : > { %v3276_v25 = vsub.f32 %v3256_v30, %v3272_v29  ;;  %v3277_v50 = vsub.f32 %v3257_v61, %v3273_v48  ;;  %v3283_v52 = vsel %vm890_vm2, %v3279_v49, 0.0 }
0x1295   : > { %v3270_v53 = vpop.xlane.xlu1 %3269  ;;  %3284 = vadd.xlane.f32.xlu0 %v3283_v52 }
0x1296   : > { %v3274_v34 = vmul.f32 0.015625, %v3270_v53  ;;  %v3280_v55 = vmul.f32 %v3276_v25, %v3276_v25  ;;  %v3281_v60 = vmul.f32 %v3277_v50, %v3277_v50 }
0x1298   : > { %v3278_v62 = vsub.f32 %v3258_v43, %v3274_v34  ;;  %v3286_v56 = vsel %vm890_vm2, %v3280_v55, 0.0  ;;  %v3289_v63 = vsel %vm890_vm2, %v3281_v60, 0.0 }
0x1299   : > { %3287 = vadd.xlane.f32.xlu1 %v3286_v56  ;;  %3290 = vadd.xlane.f32.xlu0 %v3289_v63 }
0x129a   : > { %v3282_v31 = vmul.f32 %v3278_v62, %v3278_v62 }
0x129c   : > { %v3292_v57 = vsel %vm2934_vm8, %v3282_v31, 0.0 }
0x129d   : > { %3293 = vadd.xlane.f32.xlu1 %v3292_v57 }
0x131e   : > { %v3285_v0 = vpop.xlane.xlu0 %3284 }
0x131f   : > { %v3295_v1 = vmul.f32 0.015625, %v3285_v0 }
0x1321   : > { %v3299_v32 = vadd.f32 1e-05, %v3295_v1 }
0x1322   : > { %v3288_v58 = vpop.xlane.xlu1 %3287  ;;  %v3291_v2 = vpop.xlane.xlu0 %3290 }
0x1323   : > { %4418 = vrsqrt.f32 %v3299_v32  ;;  %v3296_v3 = vmul.f32 0.015625, %v3288_v58  ;;  %v3297_v26 = vmul.f32 0.015625, %v3291_v2 }
0x1325   : > { %v3300_v4 = vadd.f32 1e-05, %v3296_v3  ;;  %v3301_v33 = vadd.f32 1e-05, %v3297_v26 }
0x1326   : > { %v3294_v59 = vpop.xlane.xlu1 %3293 }
0x1327   : > { %4420 = vrsqrt.f32 %v3300_v4  ;;  %v3298_v5 = vmul.f32 0.015625, %v3294_v59 }
0x1328   : > { %4422 = vrsqrt.f32 %v3301_v33 }
0x1329   : > { %v3302_v6 = vadd.f32 1e-05, %v3298_v5 }
0x132b   : > { %4424 = vrsqrt.f32 %v3302_v6 }
0x1330   : > { %v4419_v7 = vpop.eup %4418 }
0x1331   : > { %v3307_v9 = vmul.f32 %v4419_v7, %v3275_v13 }
0x1333   : > { %v3318_v11 = vmul.f32 %v3817_v8, %v3307_v9 }
0x1334   : > { %v4421_v12 = vpop.eup %4420 }
0x1335   : > { %v4423_v14 = vpop.eup %4422  ;;  %v3329_v15 = vadd.f32 %v3818_v10, %v3318_v11  ;;  %v3308_v16 = vmul.f32 %v4421_v12, %v3276_v25 }
0x1336   : > { %v3309_v18 = vmul.f32 %v4423_v14, %v3277_v50 }
0x1337   : > { %3333 = vst.msk [vmem:[%s4682_s11] sm:$0xff] %vm890_vm2, %v3329_v15  ;;  %v3319_v19 = vmul.f32 %v3817_v8, %v3308_v16 }
0x1338   : > { %v4425_v20 = vpop.eup %4424  ;;  %v3320_v21 = vmul.f32 %v3817_v8, %v3309_v18 }
0x1339   : > { %v3330_v22 = vadd.f32 %v3818_v10, %v3319_v19  ;;  %v3310_v17 = vmul.f32 %v4425_v20, %v3278_v62 }
0x133a   : > { %v3331_v23 = vadd.f32 %v3818_v10, %v3320_v21 }
0x133b   : > { %3334 = vst.msk [vmem:[%s4682_s11 + $0x8] sm:$0xff] %vm890_vm2, %v3330_v22  ;;  %v3321_v27 = vmul.f32 %v3817_v8, %v3310_v17 }
0x133c   : > { %3335 = vst.msk [vmem:[%s4682_s11 + $0x10] sm:$0xff] %vm890_vm2, %v3331_v23 }
0x133d   : > { %v3332_v51 = vadd.f32 %v3818_v10, %v3321_v27 }
0x133f   : > { %3336 = vst.msk [vmem:[%s4682_s11 + $0x18] sm:$0x1] %vm2934_vm8, %v3332_v51 }
0x1340 PF: > { %s5119_s30 = sld [smem:[#allocation5_spill]] }
0x1341   : > { %s5120_s24 = sld [smem:[#allocation3_spill]] }
0x1342   : > { %s5121_s25 = sld [smem:[#allocation4_spill]] }
0x1343   : > { %s5122_s26 = sld [smem:[#allocation6_spill]] }
0x1344   : > { %s5123_s27 = sld [smem:[#allocation7_spill]] }
0x1346   : > { %s27_s28 = sadd.s32 1, %s5119_s30  }
0x1347   : > { %p24_p8 = scmp.ge.s32.totalorder %s27_s28, 6  }
0x1349   :  { %26 = sbr.rel (!%p24_p8) target bundleno = 11 (0xb), region = 191 }

</bundles_post_ra>
